<compile_context>
chip_gen: v7x
topology: tpu7x:2x2x1
jax: 0.10.0
libtpu: 0.0.40
codegen_flags: <defaults>
</compile_context>

<pallas_src>
import functools

import jax
import jax.numpy as jnp
from jax.experimental import pallas as pl
from jax.experimental.pallas import tpu as pltpu


def _round_up(x, m):
    return (x + m - 1) // m * m


# ---------------------------------------------------------------------------
# Encoder-weight re-layout (done ONCE at init, not in the forward pass)
# ---------------------------------------------------------------------------
def _expand_encoder_weight(enc_w, *, C, R, Wp, S, VIEW):
    """Scatter dense (C*R*Wp, D) encoder rows into the kernel's flat conv layout.

    Kernel activation position p = h*S + 2*j  <-  dense NCHW-flatten index
    c*R*Wp + h*Wp + j.  All other positions ("holes": odd pool columns, the
    dropped last conv column, halo columns) get zero rows, so the kernel can
    matmul the pooled activation exactly as it is produced.
    To import real torch weights: enc_w = encoder_output_layer.weight.T.
    """
    D = enc_w.shape[1]
    w4 = enc_w.reshape(C, R, Wp, D)
    exp = jnp.zeros((C, R, S, D), enc_w.dtype)
    exp = exp.at[:, :, 0:2 * Wp:2, :].set(w4)
    return exp.reshape(C, R * S, D)[:, :VIEW, :]


# ---------------------------------------------------------------------------
# The fused kernel: conv1x3 + ReLU + maxpool[1,2] + 3 Linears, all in VMEM
# ---------------------------------------------------------------------------
def _ae_fused_kernel(x_ref, cw_ref, cb_ref, enc_w_ref, enc_b_ref,
                     dhw_ref, dhb_ref, dow_ref, dob_ref,
                     code_ref, recon_ref, *, C, VIEW, N):
    f32 = jnp.float32
    bf16 = jnp.bfloat16

    x0 = x_ref[...]                          # (Mp, R*S) f32, zero-padded halo
    # Four shifted views of the flat padded image, shared by all channels.
    s0 = x0[:, 0:VIEW]
    s1 = x0[:, 1:VIEW + 1]
    s2 = x0[:, 2:VIEW + 2]
    s3 = x0[:, 3:VIEW + 3]

    code_acc = None
    for c in range(C):                       # C is tiny & static -> unrolled
        w0 = cw_ref[3 * c + 0]
        w1 = cw_ref[3 * c + 1]
        w2 = cw_ref[3 * c + 2]
        bc = cb_ref[c]
        # conv output at flat position p (taps p, p+1, p+2) and at p+1:
        even = w0 * s0 + w1 * s1 + w2 * s2 + bc
        odd = w0 * s1 + w1 * s2 + w2 * s3 + bc
        # Fused ReLU + 1x2 max-pool.  Positions that are not real pooled
        # outputs hold finite garbage and are nulled by enc_w_exp's zero rows.
        act_c = jnp.maximum(jnp.maximum(even, odd), 0.0)           # (Mp, VIEW)
        part = jnp.dot(act_c.astype(bf16), enc_w_ref[c],
                       preferred_element_type=f32)                  # (Mp, D)
        code_acc = part if code_acc is None else code_acc + part

    code = jnp.maximum(code_acc + enc_b_ref[...], 0.0)              # (Mp, D)
    code_ref[...] = code[:N]

    hid = jnp.maximum(
        jnp.dot(code.astype(bf16), dhw_ref[...],
                preferred_element_type=f32) + dhb_ref[...], 0.0)    # (Mp, 256)
    # TODO(synk): training-mode dropout (stochastic Bernoulli mask) is omitted;
    # it is the identity at inference.
    rec = jnp.maximum(
        jnp.dot(hid.astype(bf16), dow_ref[...],
                preferred_element_type=f32) + dob_ref[...], 0.0)    # (Mp, W*H)
    recon_ref[...] = rec[:N]


# ---------------------------------------------------------------------------
# Forward pass (matches AE_Conv1x3.forward at inference)
# ---------------------------------------------------------------------------
def ae_conv1x3_forward(params, features, *, H, W, eval_mode=False):
    C = params["conv_b"].shape[0]
    D = params["enc_b"].shape[1]
    R = W + 2                    # conv/pool output rows (padding=1 in the no-conv dim)
    S = H + 3                    # flat row stride: 1 left pad + H cols + 2 right pad
    VIEW = R * S - 3
    # model consistency: flatten size must equal the encoder Linear's in_features
    assert C * R * (H // 2) == 33 * (W // 2) * C

    x = features.reshape(-1, W, H).astype(jnp.float32)    # torch: [-1, 1, W, H]
    N = x.shape[0]
    Mp = _round_up(N, 8)
    # Single tiny XLA pad: batch -> Mp (MXU sublane alignment), +1 zero row
    # top/bottom, +1/+2 zero cols (3-tap halo).  The flat reshape is free.
    xflat = jnp.pad(x, ((0, Mp - N), (1, 1), (1, 2))).reshape(Mp, R * S)

    vmem = pl.BlockSpec(memory_space=pltpu.MemorySpace.VMEM)
    smem = pl.BlockSpec(memory_space=pltpu.MemorySpace.SMEM)
    code, recon = pl.pallas_call(
        functools.partial(_ae_fused_kernel, C=C, VIEW=VIEW, N=N),
        out_shape=(jax.ShapeDtypeStruct((N, D), jnp.float32),
                   jax.ShapeDtypeStruct((N, W * H), jnp.float32)),
        in_specs=[vmem,                 # xflat (Mp, R*S) f32
                  smem, smem,           # conv weights (C*3,), bias (C,)  f32
                  vmem, vmem,           # enc_w_exp (C, VIEW, D) bf16, enc_b (1, D)
                  vmem, vmem,           # dec_h_w (D, 256) bf16, dec_h_b (1, 256)
                  vmem, vmem],          # dec_o_w (256, W*H) bf16, dec_o_b (1, W*H)
        out_specs=(vmem, vmem),
    )(xflat, params["conv_w"], params["conv_b"],
      params["enc_w_exp"], params["enc_b"],
      params["dec_h_w"], params["dec_h_b"],
      params["dec_o_w"], params["dec_o_b"])
    return code if eval_mode else recon


# ---------------------------------------------------------------------------
# Parameters (deterministic, PyTorch-style U(-1/sqrt(fan_in), 1/sqrt(fan_in)))
# ---------------------------------------------------------------------------
def init_params(key, *, H, W, compression_dim, num_channels):
    """Returns (kernel_params, reference_params).

    kernel_params are Pallas-ready layouts (conv weights flattened tap-major per
    channel; Linear weights transposed to (in, out), bf16, with the encoder
    weight scattered to the kernel's flat conv layout).  reference_params are
    the dense f32 weights used only by the pure-JAX reference check.
    """
    C = num_channels
    R, Wp, S = W + 2, H // 2, H + 3
    VIEW = R * S - 3
    enc_in = 33 * (W // 2) * C
    assert enc_in == C * R * Wp

    ks = jax.random.split(key, 8)

    def u(k, shape, fan_in):
        b = 1.0 / float(fan_in) ** 0.5
        return jax.random.uniform(k, shape, jnp.float32, -b, b)

    conv_w = u(ks[0], (C, 3), 1 * 1 * 3)     # == torch conv.weight.reshape(C, 3)
    conv_b = u(ks[1], (C,), 1 * 1 * 3)
    enc_w = u(ks[2], (enc_in, compression_dim), enc_in)   # torch weight.T
    enc_b = u(ks[3], (compression_dim,), enc_in)
    dec_h_w = u(ks[4], (compression_dim, 256), compression_dim)
    dec_h_b = u(ks[5], (256,), compression_dim)
    dec_o_w = u(ks[6], (256, W * H), 256)
    dec_o_b = u(ks[7], (W * H,), 256)

    params = {
        "conv_w": conv_w.reshape(C * 3),                                    # SMEM f32
        "conv_b": conv_b,                                                   # SMEM f32
        "enc_w_exp": _expand_encoder_weight(
            enc_w, C=C, R=R, Wp=Wp, S=S, VIEW=VIEW).astype(jnp.bfloat16),
        "enc_b": enc_b.reshape(1, compression_dim),
        "dec_h_w": dec_h_w.astype(jnp.bfloat16),
        "dec_h_b": dec_h_b.reshape(1, 256),
        "dec_o_w": dec_o_w.astype(jnp.bfloat16),
        "dec_o_b": dec_o_b.reshape(1, W * H),
    }
    ref = {"conv_w": conv_w, "conv_b": conv_b, "enc_w": enc_w, "enc_b": enc_b,
           "dec_h_w": dec_h_w, "dec_h_b": dec_h_b,
           "dec_o_w": dec_o_w, "dec_o_b": dec_o_b}
    return params, ref


# ---------------------------------------------------------------------------
# Pure-JAX f32 reference (torch semantics, inference mode) for validation
# ---------------------------------------------------------------------------
def _reference_forward(ref, features, *, H, W):
    x = features.reshape(-1, 1, W, H).astype(jnp.float32)
    N = x.shape[0]
    xpad = jnp.pad(x[:, 0], ((0, 0), (1, 1), (1, 1)))          # (N, W+2, H+2)
    cw, cb = ref["conv_w"], ref["conv_b"]                      # (C, 3), (C,)
    w0 = cw[:, 0][None, :, None, None]
    w1 = cw[:, 1][None, :, None, None]
    w2 = cw[:, 2][None, :, None, None]
    conv = (w0 * xpad[:, None, :, 0:H]
            + w1 * xpad[:, None, :, 1:H + 1]
            + w2 * xpad[:, None, :, 2:H + 2]
            + cb[None, :, None, None])                         # (N, C, W+2, H)
    act = jnp.maximum(conv, 0.0)
    half = H // 2
    pooled = jnp.maximum(act[..., 0:2 * half:2], act[..., 1:2 * half:2])
    flat = pooled.reshape(N, -1)                               # NCHW flatten
    code = jnp.maximum(flat @ ref["enc_w"] + ref["enc_b"], 0.0)
    hid = jnp.maximum(code @ ref["dec_h_w"] + ref["dec_h_b"], 0.0)
    rec = jnp.maximum(hid @ ref["dec_o_w"] + ref["dec_o_b"], 0.0)
    return code, rec


if __name__ == "__main__":
    # Shapes the model's Linear sizes require: 33*(W//2) == (W+2)*(H//2) -> H=W=31.
    H = W = 31
    compression_dim = 32
    num_channels = 5
    batch = 2

    key = jax.random.PRNGKey(0)
    pkey, xkey = jax.random.split(key)
    params, ref_params = init_params(pkey, H=H, W=W,
                                     compression_dim=compression_dim,
                                     num_channels=num_channels)
    features = jax.random.normal(xkey, (batch, W, H), jnp.float32)

    fwd = jax.jit(functools.partial(ae_conv1x3_forward, H=H, W=W,
                                    eval_mode=False))
    recon = fwd(params, features)
    jax.block_until_ready(recon)

    ref_code, ref_recon = _reference_forward(ref_params, features, H=H, W=W)

    assert recon.shape == (batch, W * H)
    assert bool(jnp.all(jnp.isfinite(recon)))
    assert bool(jnp.all(recon >= 0.0))                 # final torch.relu
    # bf16 GEMM inputs with f32 accumulation -> loose tolerance vs f32 reference
    assert bool(jnp.allclose(recon, ref_recon, rtol=3e-2, atol=3e-2)), (
        float(jnp.max(jnp.abs(recon - ref_recon))))

    # eval_mode returns the code, exactly like the torch forward()
    code = jax.jit(functools.partial(ae_conv1x3_forward, H=H, W=W,
                                     eval_mode=True))(params, features)
    jax.block_until_ready(code)
    assert code.shape == (batch, compression_dim)
    assert bool(jnp.allclose(code, ref_code, rtol=3e-2, atol=3e-2))

    print("KERNEL_OK")
</pallas_src>

<mosaic_0001>
module attributes {stable_mosaic.version = 11 : i64} {
  func.func @_ae_fused_kernel(%arg0: memref<8x1122xf32, #tpu.memory_space<vmem>>, %arg1: memref<15xf32, #tpu.memory_space<smem>>, %arg2: memref<5xf32, #tpu.memory_space<smem>>, %arg3: memref<5x1119x32xbf16, #tpu.memory_space<vmem>>, %arg4: memref<1x32xf32, #tpu.memory_space<vmem>>, %arg5: memref<32x256xbf16, #tpu.memory_space<vmem>>, %arg6: memref<1x256xf32, #tpu.memory_space<vmem>>, %arg7: memref<256x961xbf16, #tpu.memory_space<vmem>>, %arg8: memref<1x961xf32, #tpu.memory_space<vmem>>, %arg9: memref<2x32xf32, #tpu.memory_space<vmem>>, %arg10: memref<2x961xf32, #tpu.memory_space<vmem>>) attributes {dimension_semantics = [], scalar_prefetch = 0 : i64, scratch_operands = 0 : i64, tpu.core_type = #tpu.core_type<tc>} {
    %c0 = arith.constant 0 : index
    %c0_0 = arith.constant 0 : index
    %0 = vector.load %arg0[%c0, %c0_0] : memref<8x1122xf32, #tpu.memory_space<vmem>>, vector<8x1122xf32>
    %1 = vector.extract_strided_slice %0 {offsets = [0, 0], sizes = [8, 1119], strides = [1, 1]} : vector<8x1122xf32> to vector<8x1119xf32>
    %2 = vector.extract_strided_slice %0 {offsets = [0, 1], sizes = [8, 1119], strides = [1, 1]} : vector<8x1122xf32> to vector<8x1119xf32>
    %3 = vector.extract_strided_slice %0 {offsets = [0, 2], sizes = [8, 1119], strides = [1, 1]} : vector<8x1122xf32> to vector<8x1119xf32>
    %4 = vector.extract_strided_slice %0 {offsets = [0, 3], sizes = [8, 1119], strides = [1, 1]} : vector<8x1122xf32> to vector<8x1119xf32>
    %c0_1 = arith.constant 0 : index
    %5 = memref.load %arg1[%c0_1] : memref<15xf32, #tpu.memory_space<smem>>
    %c1 = arith.constant 1 : index
    %6 = memref.load %arg1[%c1] : memref<15xf32, #tpu.memory_space<smem>>
    %c2 = arith.constant 2 : index
    %7 = memref.load %arg1[%c2] : memref<15xf32, #tpu.memory_space<smem>>
    %c0_2 = arith.constant 0 : index
    %8 = memref.load %arg2[%c0_2] : memref<5xf32, #tpu.memory_space<smem>>
    %9 = vector.broadcast %5 : f32 to vector<8x1119xf32>
    %10 = arith.mulf %9, %1 : vector<8x1119xf32>
    %11 = vector.broadcast %6 : f32 to vector<8x1119xf32>
    %12 = arith.mulf %11, %2 : vector<8x1119xf32>
    %13 = arith.addf %10, %12 : vector<8x1119xf32>
    %14 = vector.broadcast %7 : f32 to vector<8x1119xf32>
    %15 = arith.mulf %14, %3 : vector<8x1119xf32>
    %16 = arith.addf %13, %15 : vector<8x1119xf32>
    %17 = vector.broadcast %8 : f32 to vector<8x1119xf32>
    %18 = arith.addf %16, %17 : vector<8x1119xf32>
    %19 = vector.broadcast %5 : f32 to vector<8x1119xf32>
    %20 = arith.mulf %19, %2 : vector<8x1119xf32>
    %21 = vector.broadcast %6 : f32 to vector<8x1119xf32>
    %22 = arith.mulf %21, %3 : vector<8x1119xf32>
    %23 = arith.addf %20, %22 : vector<8x1119xf32>
    %24 = vector.broadcast %7 : f32 to vector<8x1119xf32>
    %25 = arith.mulf %24, %4 : vector<8x1119xf32>
    %26 = arith.addf %23, %25 : vector<8x1119xf32>
    %27 = vector.broadcast %8 : f32 to vector<8x1119xf32>
    %28 = arith.addf %26, %27 : vector<8x1119xf32>
    %29 = arith.maximumf %18, %28 : vector<8x1119xf32>
    %cst = arith.constant 0.000000e+00 : f32
    %30 = vector.broadcast %cst : f32 to vector<8x1119xf32>
    %31 = arith.maximumf %29, %30 : vector<8x1119xf32>
    %32 = arith.truncf %31 : vector<8x1119xf32> to vector<8x1119xbf16>
    %c0_3 = arith.constant 0 : index
    %c0_4 = arith.constant 0 : index
    %c0_5 = arith.constant 0 : index
    %33 = vector.load %arg3[%c0_3, %c0_4, %c0_5] : memref<5x1119x32xbf16, #tpu.memory_space<vmem>>, vector<1x1119x32xbf16>
    %34 = vector.shape_cast %33 : vector<1x1119x32xbf16> to vector<1119x32xbf16>
    %cst_6 = arith.constant dense<0.000000e+00> : vector<8x32xf32>
    %35 = tpu.matmul %32, %34, %cst_6 {dimension_numbers = #tpu.dot_dimension_numbers<[1], [0], [0], [1], [0, 0, 1, 1], [], []>} : vector<8x1119xbf16>, vector<1119x32xbf16>, vector<8x32xf32> -> vector<8x32xf32>
    %c3 = arith.constant 3 : index
    %36 = memref.load %arg1[%c3] : memref<15xf32, #tpu.memory_space<smem>>
    %c4 = arith.constant 4 : index
    %37 = memref.load %arg1[%c4] : memref<15xf32, #tpu.memory_space<smem>>
    %c5 = arith.constant 5 : index
    %38 = memref.load %arg1[%c5] : memref<15xf32, #tpu.memory_space<smem>>
    %c1_7 = arith.constant 1 : index
    %39 = memref.load %arg2[%c1_7] : memref<5xf32, #tpu.memory_space<smem>>
    %40 = vector.broadcast %36 : f32 to vector<8x1119xf32>
    %41 = arith.mulf %40, %1 : vector<8x1119xf32>
    %42 = vector.broadcast %37 : f32 to vector<8x1119xf32>
    %43 = arith.mulf %42, %2 : vector<8x1119xf32>
    %44 = arith.addf %41, %43 : vector<8x1119xf32>
    %45 = vector.broadcast %38 : f32 to vector<8x1119xf32>
    %46 = arith.mulf %45, %3 : vector<8x1119xf32>
    %47 = arith.addf %44, %46 : vector<8x1119xf32>
    %48 = vector.broadcast %39 : f32 to vector<8x1119xf32>
    %49 = arith.addf %47, %48 : vector<8x1119xf32>
    %50 = vector.broadcast %36 : f32 to vector<8x1119xf32>
    %51 = arith.mulf %50, %2 : vector<8x1119xf32>
    %52 = vector.broadcast %37 : f32 to vector<8x1119xf32>
    %53 = arith.mulf %52, %3 : vector<8x1119xf32>
    %54 = arith.addf %51, %53 : vector<8x1119xf32>
    %55 = vector.broadcast %38 : f32 to vector<8x1119xf32>
    %56 = arith.mulf %55, %4 : vector<8x1119xf32>
    %57 = arith.addf %54, %56 : vector<8x1119xf32>
    %58 = vector.broadcast %39 : f32 to vector<8x1119xf32>
    %59 = arith.addf %57, %58 : vector<8x1119xf32>
    %60 = arith.maximumf %49, %59 : vector<8x1119xf32>
    %cst_8 = arith.constant 0.000000e+00 : f32
    %61 = vector.broadcast %cst_8 : f32 to vector<8x1119xf32>
    %62 = arith.maximumf %60, %61 : vector<8x1119xf32>
    %63 = arith.truncf %62 : vector<8x1119xf32> to vector<8x1119xbf16>
    %c1_9 = arith.constant 1 : index
    %c0_10 = arith.constant 0 : index
    %c0_11 = arith.constant 0 : index
    %64 = vector.load %arg3[%c1_9, %c0_10, %c0_11] : memref<5x1119x32xbf16, #tpu.memory_space<vmem>>, vector<1x1119x32xbf16>
    %65 = vector.shape_cast %64 : vector<1x1119x32xbf16> to vector<1119x32xbf16>
    %cst_12 = arith.constant dense<0.000000e+00> : vector<8x32xf32>
    %66 = tpu.matmul %63, %65, %cst_12 {dimension_numbers = #tpu.dot_dimension_numbers<[1], [0], [0], [1], [0, 0, 1, 1], [], []>} : vector<8x1119xbf16>, vector<1119x32xbf16>, vector<8x32xf32> -> vector<8x32xf32>
    %67 = arith.addf %35, %66 : vector<8x32xf32>
    %c6 = arith.constant 6 : index
    %68 = memref.load %arg1[%c6] : memref<15xf32, #tpu.memory_space<smem>>
    %c7 = arith.constant 7 : index
    %69 = memref.load %arg1[%c7] : memref<15xf32, #tpu.memory_space<smem>>
    %c8 = arith.constant 8 : index
    %70 = memref.load %arg1[%c8] : memref<15xf32, #tpu.memory_space<smem>>
    %c2_13 = arith.constant 2 : index
    %71 = memref.load %arg2[%c2_13] : memref<5xf32, #tpu.memory_space<smem>>
    %72 = vector.broadcast %68 : f32 to vector<8x1119xf32>
    %73 = arith.mulf %72, %1 : vector<8x1119xf32>
    %74 = vector.broadcast %69 : f32 to vector<8x1119xf32>
    %75 = arith.mulf %74, %2 : vector<8x1119xf32>
    %76 = arith.addf %73, %75 : vector<8x1119xf32>
    %77 = vector.broadcast %70 : f32 to vector<8x1119xf32>
    %78 = arith.mulf %77, %3 : vector<8x1119xf32>
    %79 = arith.addf %76, %78 : vector<8x1119xf32>
    %80 = vector.broadcast %71 : f32 to vector<8x1119xf32>
    %81 = arith.addf %79, %80 : vector<8x1119xf32>
    %82 = vector.broadcast %68 : f32 to vector<8x1119xf32>
    %83 = arith.mulf %82, %2 : vector<8x1119xf32>
    %84 = vector.broadcast %69 : f32 to vector<8x1119xf32>
    %85 = arith.mulf %84, %3 : vector<8x1119xf32>
    %86 = arith.addf %83, %85 : vector<8x1119xf32>
    %87 = vector.broadcast %70 : f32 to vector<8x1119xf32>
    %88 = arith.mulf %87, %4 : vector<8x1119xf32>
    %89 = arith.addf %86, %88 : vector<8x1119xf32>
    %90 = vector.broadcast %71 : f32 to vector<8x1119xf32>
    %91 = arith.addf %89, %90 : vector<8x1119xf32>
    %92 = arith.maximumf %81, %91 : vector<8x1119xf32>
    %cst_14 = arith.constant 0.000000e+00 : f32
    %93 = vector.broadcast %cst_14 : f32 to vector<8x1119xf32>
    %94 = arith.maximumf %92, %93 : vector<8x1119xf32>
    %95 = arith.truncf %94 : vector<8x1119xf32> to vector<8x1119xbf16>
    %c2_15 = arith.constant 2 : index
    %c0_16 = arith.constant 0 : index
    %c0_17 = arith.constant 0 : index
    %96 = vector.load %arg3[%c2_15, %c0_16, %c0_17] : memref<5x1119x32xbf16, #tpu.memory_space<vmem>>, vector<1x1119x32xbf16>
    %97 = vector.shape_cast %96 : vector<1x1119x32xbf16> to vector<1119x32xbf16>
    %cst_18 = arith.constant dense<0.000000e+00> : vector<8x32xf32>
    %98 = tpu.matmul %95, %97, %cst_18 {dimension_numbers = #tpu.dot_dimension_numbers<[1], [0], [0], [1], [0, 0, 1, 1], [], []>} : vector<8x1119xbf16>, vector<1119x32xbf16>, vector<8x32xf32> -> vector<8x32xf32>
    %99 = arith.addf %67, %98 : vector<8x32xf32>
    %c9 = arith.constant 9 : index
    %100 = memref.load %arg1[%c9] : memref<15xf32, #tpu.memory_space<smem>>
    %c10 = arith.constant 10 : index
    %101 = memref.load %arg1[%c10] : memref<15xf32, #tpu.memory_space<smem>>
    %c11 = arith.constant 11 : index
    %102 = memref.load %arg1[%c11] : memref<15xf32, #tpu.memory_space<smem>>
    %c3_19 = arith.constant 3 : index
    %103 = memref.load %arg2[%c3_19] : memref<5xf32, #tpu.memory_space<smem>>
    %104 = vector.broadcast %100 : f32 to vector<8x1119xf32>
    %105 = arith.mulf %104, %1 : vector<8x1119xf32>
    %106 = vector.broadcast %101 : f32 to vector<8x1119xf32>
    %107 = arith.mulf %106, %2 : vector<8x1119xf32>
    %108 = arith.addf %105, %107 : vector<8x1119xf32>
    %109 = vector.broadcast %102 : f32 to vector<8x1119xf32>
    %110 = arith.mulf %109, %3 : vector<8x1119xf32>
    %111 = arith.addf %108, %110 : vector<8x1119xf32>
    %112 = vector.broadcast %103 : f32 to vector<8x1119xf32>
    %113 = arith.addf %111, %112 : vector<8x1119xf32>
    %114 = vector.broadcast %100 : f32 to vector<8x1119xf32>
    %115 = arith.mulf %114, %2 : vector<8x1119xf32>
    %116 = vector.broadcast %101 : f32 to vector<8x1119xf32>
    %117 = arith.mulf %116, %3 : vector<8x1119xf32>
    %118 = arith.addf %115, %117 : vector<8x1119xf32>
    %119 = vector.broadcast %102 : f32 to vector<8x1119xf32>
    %120 = arith.mulf %119, %4 : vector<8x1119xf32>
    %121 = arith.addf %118, %120 : vector<8x1119xf32>
    %122 = vector.broadcast %103 : f32 to vector<8x1119xf32>
    %123 = arith.addf %121, %122 : vector<8x1119xf32>
    %124 = arith.maximumf %113, %123 : vector<8x1119xf32>
    %cst_20 = arith.constant 0.000000e+00 : f32
    %125 = vector.broadcast %cst_20 : f32 to vector<8x1119xf32>
    %126 = arith.maximumf %124, %125 : vector<8x1119xf32>
    %127 = arith.truncf %126 : vector<8x1119xf32> to vector<8x1119xbf16>
    %c3_21 = arith.constant 3 : index
    %c0_22 = arith.constant 0 : index
    %c0_23 = arith.constant 0 : index
    %128 = vector.load %arg3[%c3_21, %c0_22, %c0_23] : memref<5x1119x32xbf16, #tpu.memory_space<vmem>>, vector<1x1119x32xbf16>
    %129 = vector.shape_cast %128 : vector<1x1119x32xbf16> to vector<1119x32xbf16>
    %cst_24 = arith.constant dense<0.000000e+00> : vector<8x32xf32>
    %130 = tpu.matmul %127, %129, %cst_24 {dimension_numbers = #tpu.dot_dimension_numbers<[1], [0], [0], [1], [0, 0, 1, 1], [], []>} : vector<8x1119xbf16>, vector<1119x32xbf16>, vector<8x32xf32> -> vector<8x32xf32>
    %131 = arith.addf %99, %130 : vector<8x32xf32>
    %c12 = arith.constant 12 : index
    %132 = memref.load %arg1[%c12] : memref<15xf32, #tpu.memory_space<smem>>
    %c13 = arith.constant 13 : index
    %133 = memref.load %arg1[%c13] : memref<15xf32, #tpu.memory_space<smem>>
    %c14 = arith.constant 14 : index
    %134 = memref.load %arg1[%c14] : memref<15xf32, #tpu.memory_space<smem>>
    %c4_25 = arith.constant 4 : index
    %135 = memref.load %arg2[%c4_25] : memref<5xf32, #tpu.memory_space<smem>>
    %136 = vector.broadcast %132 : f32 to vector<8x1119xf32>
    %137 = arith.mulf %136, %1 : vector<8x1119xf32>
    %138 = vector.broadcast %133 : f32 to vector<8x1119xf32>
    %139 = arith.mulf %138, %2 : vector<8x1119xf32>
    %140 = arith.addf %137, %139 : vector<8x1119xf32>
    %141 = vector.broadcast %134 : f32 to vector<8x1119xf32>
    %142 = arith.mulf %141, %3 : vector<8x1119xf32>
    %143 = arith.addf %140, %142 : vector<8x1119xf32>
    %144 = vector.broadcast %135 : f32 to vector<8x1119xf32>
    %145 = arith.addf %143, %144 : vector<8x1119xf32>
    %146 = vector.broadcast %132 : f32 to vector<8x1119xf32>
    %147 = arith.mulf %146, %2 : vector<8x1119xf32>
    %148 = vector.broadcast %133 : f32 to vector<8x1119xf32>
    %149 = arith.mulf %148, %3 : vector<8x1119xf32>
    %150 = arith.addf %147, %149 : vector<8x1119xf32>
    %151 = vector.broadcast %134 : f32 to vector<8x1119xf32>
    %152 = arith.mulf %151, %4 : vector<8x1119xf32>
    %153 = arith.addf %150, %152 : vector<8x1119xf32>
    %154 = vector.broadcast %135 : f32 to vector<8x1119xf32>
    %155 = arith.addf %153, %154 : vector<8x1119xf32>
    %156 = arith.maximumf %145, %155 : vector<8x1119xf32>
    %cst_26 = arith.constant 0.000000e+00 : f32
    %157 = vector.broadcast %cst_26 : f32 to vector<8x1119xf32>
    %158 = arith.maximumf %156, %157 : vector<8x1119xf32>
    %159 = arith.truncf %158 : vector<8x1119xf32> to vector<8x1119xbf16>
    %c4_27 = arith.constant 4 : index
    %c0_28 = arith.constant 0 : index
    %c0_29 = arith.constant 0 : index
    %160 = vector.load %arg3[%c4_27, %c0_28, %c0_29] : memref<5x1119x32xbf16, #tpu.memory_space<vmem>>, vector<1x1119x32xbf16>
    %161 = vector.shape_cast %160 : vector<1x1119x32xbf16> to vector<1119x32xbf16>
    %cst_30 = arith.constant dense<0.000000e+00> : vector<8x32xf32>
    %162 = tpu.matmul %159, %161, %cst_30 {dimension_numbers = #tpu.dot_dimension_numbers<[1], [0], [0], [1], [0, 0, 1, 1], [], []>} : vector<8x1119xbf16>, vector<1119x32xbf16>, vector<8x32xf32> -> vector<8x32xf32>
    %163 = arith.addf %131, %162 : vector<8x32xf32>
    %c0_31 = arith.constant 0 : index
    %c0_32 = arith.constant 0 : index
    %164 = vector.load %arg4[%c0_31, %c0_32] : memref<1x32xf32, #tpu.memory_space<vmem>>, vector<1x32xf32>
    %165 = vector.broadcast %164 : vector<1x32xf32> to vector<8x32xf32>
    %166 = arith.addf %163, %165 : vector<8x32xf32>
    %cst_33 = arith.constant 0.000000e+00 : f32
    %167 = vector.broadcast %cst_33 : f32 to vector<8x32xf32>
    %168 = arith.maximumf %166, %167 : vector<8x32xf32>
    %169 = vector.extract_strided_slice %168 {offsets = [0, 0], sizes = [2, 32], strides = [1, 1]} : vector<8x32xf32> to vector<2x32xf32>
    %c0_34 = arith.constant 0 : index
    %c0_35 = arith.constant 0 : index
    %170 = vector.load %arg9[%c0_34, %c0_35] : memref<2x32xf32, #tpu.memory_space<vmem>>, vector<2x32xf32>
    tpu.vector_store %arg9[%c0_34, %c0_35], %169 {strides = array<i32>} : memref<2x32xf32, #tpu.memory_space<vmem>>, vector<2x32xf32>,
    %171 = arith.truncf %168 : vector<8x32xf32> to vector<8x32xbf16>
    %c0_36 = arith.constant 0 : index
    %c0_37 = arith.constant 0 : index
    %172 = vector.load %arg5[%c0_36, %c0_37] : memref<32x256xbf16, #tpu.memory_space<vmem>>, vector<32x256xbf16>
    %cst_38 = arith.constant dense<0.000000e+00> : vector<8x256xf32>
    %173 = tpu.matmul %171, %172, %cst_38 {dimension_numbers = #tpu.dot_dimension_numbers<[1], [0], [0], [1], [0, 0, 1, 1], [], []>} : vector<8x32xbf16>, vector<32x256xbf16>, vector<8x256xf32> -> vector<8x256xf32>
    %c0_39 = arith.constant 0 : index
    %c0_40 = arith.constant 0 : index
    %174 = vector.load %arg6[%c0_39, %c0_40] : memref<1x256xf32, #tpu.memory_space<vmem>>, vector<1x256xf32>
    %175 = vector.broadcast %174 : vector<1x256xf32> to vector<8x256xf32>
    %176 = arith.addf %173, %175 : vector<8x256xf32>
    %cst_41 = arith.constant 0.000000e+00 : f32
    %177 = vector.broadcast %cst_41 : f32 to vector<8x256xf32>
    %178 = arith.maximumf %176, %177 : vector<8x256xf32>
    %179 = arith.truncf %178 : vector<8x256xf32> to vector<8x256xbf16>
    %c0_42 = arith.constant 0 : index
    %c0_43 = arith.constant 0 : index
    %180 = vector.load %arg7[%c0_42, %c0_43] : memref<256x961xbf16, #tpu.memory_space<vmem>>, vector<256x961xbf16>
    %cst_44 = arith.constant dense<0.000000e+00> : vector<8x961xf32>
    %181 = tpu.matmul %179, %180, %cst_44 {dimension_numbers = #tpu.dot_dimension_numbers<[1], [0], [0], [1], [0, 0, 1, 1], [], []>} : vector<8x256xbf16>, vector<256x961xbf16>, vector<8x961xf32> -> vector<8x961xf32>
    %c0_45 = arith.constant 0 : index
    %c0_46 = arith.constant 0 : index
    %182 = vector.load %arg8[%c0_45, %c0_46] : memref<1x961xf32, #tpu.memory_space<vmem>>, vector<1x961xf32>
    %183 = vector.broadcast %182 : vector<1x961xf32> to vector<8x961xf32>
    %184 = arith.addf %181, %183 : vector<8x961xf32>
    %cst_47 = arith.constant 0.000000e+00 : f32
    %185 = vector.broadcast %cst_47 : f32 to vector<8x961xf32>
    %186 = arith.maximumf %184, %185 : vector<8x961xf32>
    %187 = vector.extract_strided_slice %186 {offsets = [0, 0], sizes = [2, 961], strides = [1, 1]} : vector<8x961xf32> to vector<2x961xf32>
    %c0_48 = arith.constant 0 : index
    %c0_49 = arith.constant 0 : index
    %188 = vector.load %arg10[%c0_48, %c0_49] : memref<2x961xf32, #tpu.memory_space<vmem>>, vector<2x961xf32>
    tpu.vector_store %arg10[%c0_48, %c0_49], %187 {strides = array<i32>} : memref<2x961xf32, #tpu.memory_space<vmem>>, vector<2x961xf32>,
    return
  }
}

</mosaic_0001>

<bundles_post_ra>
// kernel: ae_conv1x3_forward.1
= control target key start
LH: loop header
LB: loop body
LE: loop exit
PB: predicated region body
PF: predicated region fallthrough
CT: control target
= control target key end

     0   :  { %16 = vsyncpa [#allocation4], 0  ;;  %s11090_s0 = inlined_call_operand.vmem [shape: f32[8,1122], index: 0, kind: input, shape index: {}]   ;;  %s11091_s1 = inlined_call_operand.vmem [shape: f32[15], index: 1, kind: input, shape index: {}]   ;;  %s11092_s2 = inlined_call_operand.vmem [shape: f32[5], index: 2, kind: input, shape index: {}]   ;;  %s11093_s3 = inlined_call_operand.vmem [shape: bf16[5,1119,32], index: 3, kind: input, shape index: {}]   ;;  %s11094_s4 = inlined_call_operand.vmem [shape: f32[1,32], index: 4, kind: input, shape index: {}]   ;;  %s11095_s5 = inlined_call_operand.vmem [shape: bf16[32,256], index: 5, kind: input, shape index: {}]   ;;  %s11096_s6 = inlined_call_operand.vmem [shape: f32[1,256], index: 6, kind: input, shape index: {}]   ;;  %s11097_s7 = inlined_call_operand.vmem [shape: bf16[256,961], index: 7, kind: input, shape index: {}]   ;;  %s11098_s8 = inlined_call_operand.vmem [shape: f32[1,961], index: 8, kind: input, shape index: {}]   ;;  %s11099_s9 = inlined_call_operand.hbm [shape: f32[2,32], index: 9, kind: output, shape index: {0}]   ;;  %s11100_s10 = inlined_call_operand.hbm [shape: f32[2,961], index: 10, kind: output, shape index: {1}]  }
   0x1   :  { %17 = vsyncpa [#allocation6], 0 }
   0x2   :  { %18 = vsyncpa [#allocation3], 0 }
   0x3   :  { %19 = vsyncpa [#allocation9], 0  ;;  %s28_s15 = sshll.u32 %s11091_s1, 4  ;;  %s38_s18 = sshll.u32 %s11092_s2, 4  ;;  %s29_s15 = int_to_ptr.vmem [resolvable:$true] %s28_s15  ;;  %s39_s18 = int_to_ptr.vmem [resolvable:$true] %s38_s18 }
   0x4   :  { %s8293_s19 = scalar_lea.vmem %s29_s15, 16  ;;  %p8298_p1 = scmp.lt.s32.totalorder %s29_s15, %s29_s15 }
   0x5   :  { %p8294_p0 = scmp.ne.s32.totalorder %s29_s15, %s8293_s19  ;;  %p8299_p2 = scmp.lt.s32.totalorder %s8293_s19, %s8293_s19 }
   0x7   :  { %p8300_p3 = por %p8299_p2, %p8298_p1 }
   0x9   :  { %p8301_p4 = pnand %p8300_p3, %p8294_p0 }
   0xb   :  { %8304 = shalt.err (!%p8301_p4)
}
   0xc   :  { %s8369_s20 = smov [#allocation2]   ;;  %s8305_s21 = scalar_lea.vmem %s39_s18, 16 }
   0xd   :  { %31 = dma.vmem_to_smem %s29_s15, 16, %s8369_s20, [#allocation4]  }
   0xe   :  { %p8306_p5 = scmp.ne.s32.totalorder %s39_s18, %s8305_s21  ;;  %p8310_p6 = scmp.lt.s32.totalorder %s39_s18, %s39_s18 }
   0xf   :  { %p8311_p7 = scmp.lt.s32.totalorder %s8305_s21, %s8305_s21 }
  0x11   :  { %p8312_p8 = por %p8311_p7, %p8310_p6 }
  0x13   :  { %p8313_p9 = pnand %p8312_p8, %p8306_p5 }
  0x15   :  { %8316 = shalt.err (!%p8313_p9)
}
  0x16   :  { %s8370_s1 = smov [#allocation5]  }
  0x17   :  { %41 = dma.vmem_to_smem %s39_s18, 16, %s8370_s1, [#allocation6]  }
  0x18   :  { %8361 = dma.done.wait [#allocation4], 16  }
  0x19   :  { %8362 = vsyncadd [#allocation4], 4294967280 }
  0x1a   :  { %8363 = dma.done.wait [#allocation6], 16  }
  0x1b   :  { %8364 = vsyncadd [#allocation6], 4294967280 }
  0x1c   :  { %60 = sfence }
  0x1d   :  { %s6180_s2 = sld [smem:[#allocation2 + $0x4]]  ;;  %v65_v0 = vld [vmem:[%s11090_s0 + $0x18] sm:$0xff]  ;;  %s6181_s24 = sld [smem:[#allocation2 + $0x5]]  ;;  %v8447_v1 = vld [vmem:[%s11090_s0 + $0x8] sm:$0xff]  ;;  %v8452_v2 = vld [vmem:[%s11090_s0 + $0x10] sm:$0xff]  ;;  %vm122_vm0 = vcmask 1039360  }
  0x1e   :  { %v8457_v3 = vld [vmem:[%s11090_s0] sm:$0xff]  ;;  %s8371_s11 = smov 127   ;;  %v8476_v13 = vld [vmem:[%s11090_s0 + $0x28] sm:$0xff]  ;;  %s8372_s16 = smov 126   ;;  %v8488_v18 = vld [vmem:[%s11090_s0 + $0x30] sm:$0xff]  ;;  %vm186_vm1 = vcmask 1031168  }
  0x1f   :  { %v8471_v12 = vld [vmem:[%s11090_s0 + $0x20] sm:$0xff]  ;;  %v69_v19 = vld [vmem:[%s11090_s0 + $0x38] sm:$0xff]  ;;  %v7910_v29 = vld [vmem:[%s11093_s3 + $0x270] sm:$0xff]   ;;  %s6179_s27 = sld [smem:[#allocation2 + $0x3]]  ;;  %s8554_s26 = sld [smem:[#allocation5 + $0x1]]  ;;  %vm8374_vm2 = vmmov 0  }
  0x20   :  { %v8503_v24 = vld [vmem:[%s11090_s0 + $0x40] sm:$0xff]  ;;  %v7911_v30 = vld [vmem:[%s11093_s3 + $0x230] sm:$0xff]   ;;  %v7912_v31 = vld [vmem:[%s11093_s3 + $0x278] sm:$0xff]   ;;  %7244 = vmatprep.subr.bf16.mxu0 %v7910_v29  ;;  %s8571_s17 = sld [smem:[#allocation2 + $0x1]]  ;;  %s6178_s14 = sld [smem:[#allocation2 + $0x2]]  ;;  %vm1219_vm3 = vcmask 1046528  }
  0x21   :  { %7245 = vmatpush3.bf16.msra.mxu0 %v7911_v30  ;;  %v7913_v32 = vld [vmem:[%s11093_s3 + $0x238] sm:$0xff]   ;;  %v7914_v33 = vld [vmem:[%s11093_s3 + $0x280] sm:$0xff]   ;;  %v7921_v34 = vld [vmem:[%s11093_s3 + $0x2f0] sm:$0xff]   ;;  %s6466_s29 = sld [smem:[#allocation2 + $0x7]]  ;;  %s71_s15 = sld [smem:[#allocation2]]  ;;  %vm1220_vm4 = vcmask 1047552  }
  0x22   :  { %7246 = vmatprep.subr.bf16.mxu0 %v7912_v31  ;;  %v7915_v35 = vld [vmem:[%s11093_s3 + $0x240] sm:$0xff]   ;;  %7266 = vmatprep.subr.bf16.mxu1 %v7921_v34  ;;  %v7916_v36 = vld [vmem:[%s11093_s3 + $0x288] sm:$0xff]   ;;  %v7918_v38 = vld [vmem:[%s11093_s3 + $0x290] sm:$0xff]   ;;  %s74_s18 = sld [smem:[#allocation5]]  ;;  %vm1215_vm5 = vcmask 777216   ;;  %s6468_s30 = sld [smem:[#allocation5 + $0x2]] }
  0x23   :  { %v448_v4 = vstv %s6180_s2  ;;  %v511_v9 = vstv %s6181_s24  ;;  %v7917_v37 = vld [vmem:[%s11093_s3 + $0x248] sm:$0xff]   ;;  %v7919_v39 = vld [vmem:[%s11093_s3 + $0x250] sm:$0xff]   ;;  %s6681_s12 = sld [smem:[#allocation2 + $0xa]]  ;;  %s9336_s28 = sld [smem:[#allocation2 + $0xb]]  ;;  %vm5024_vm6 = vcmask 254976   ;;  %vm5063_vm7 = vcmask 261120  }
  0x24   :  { %v452_v5 = vmul.f32 %v448_v4, %v65_v0  ;;  %v450_v6 = vmul.f32 %v448_v4, %v8447_v1  ;;  %v451_v7 = vmul.f32 %v448_v4, %v8452_v2  ;;  %v449_v8 = vmul.f32 %v448_v4, %v8457_v3  ;;  %v7920_v40 = vld [vmem:[%s11093_s3 + $0x298] sm:$0xff]   ;;  %v7923_v45 = vld [vmem:[%s11093_s3 + $0x2b0] sm:$0xff]   ;;  %v7924_v49 = vld [vmem:[%s11093_s3 + $0x2a0] sm:$0xff]   ;;  %s6680_s19 = sld [smem:[#allocation2 + $0x9]]  ;;  %s6683_s22 = sld [smem:[#allocation5 + $0x3]] }
  0x25   :  { %v513_v10 = vmul.f32 %v511_v9, %v8447_v1  ;;  %v514_v11 = vmul.f32 %v511_v9, %v8452_v2  ;;  %v515_v14 = vmul.f32 %v511_v9, %v65_v0  ;;  %v512_v15 = vmul.f32 %v511_v9, %v8457_v3  ;;  %7247 = vmatpush3.bf16.msra.mxu0 %v7913_v32  ;;  %v7922_v44 = vld [vmem:[%s11093_s3 + $0x258] sm:$0xff]   ;;  %v7926_v52 = vld [vmem:[%s11093_s3 + $0x260] sm:$0xff]   ;;  %v7928_v62 = vld [vmem:[%s11093_s3 + $0x2a8] sm:$0xff]  }
  0x26   :  { %473 = vrot.lane.b32.xlu1 %v452_v5, %s8371_s11  ;;  %469 = vrot.lane.b32.xlu0 %v450_v6, %s8371_s11  ;;  %v453_v16 = vmul.f32 %v448_v4, %v8471_v12  ;;  %v454_v17 = vmul.f32 %v448_v4, %v8476_v13  ;;  %v516_v20 = vmul.f32 %v511_v9, %v8471_v12  ;;  %v8552_v43 = vstv %s6179_s27  ;;  %v7925_v50 = vld [vmem:[%s11093_s3 + $0x2f8] sm:$0xff]  }
  0x27   :  { %v517_v21 = vmul.f32 %v511_v9, %v8476_v13  ;;  %v455_v22 = vmul.f32 %v448_v4, %v8488_v18  ;;  %v456_v23 = vmul.f32 %v448_v4, %v69_v19  ;;  %v518_v25 = vmul.f32 %v511_v9, %v8488_v18  ;;  %7248 = vmatprep.subr.bf16.mxu0 %v7914_v33  ;;  %v7927_v53 = vld [vmem:[%s11093_s3 + $0x2b8] sm:$0xff]   ;;  %v7929_v63 = vld [vmem:[%s11093_s3 + $0x300] sm:$0xff]   ;;  %v7930_v0 = vld [vmem:[%s11093_s3 + $0x268] sm:$0xff]  }
  0x28   :  { %v519_v26 = vmul.f32 %v511_v9, %v69_v19  ;;  %v457_v27 = vmul.f32 %v448_v4, %v8503_v24  ;;  %v520_v28 = vmul.f32 %v511_v9, %v8503_v24  ;;  %7267 = vmatpush3.bf16.msra.mxu1 %v7923_v45  ;;  %v440_v48 = vmul.f32 %v8552_v43, %v8447_v1  ;;  %v7931_v1 = vld [vmem:[%s11093_s3 + $0x2c0] sm:$0xff]   ;;  %v7934_v19 = vld [vmem:[%s11093_s3 + $0x2c8] sm:$0xff]   ;;  %v7942_v45 = vld [vmem:[%s11093_s3 + $0x2d8] sm:$0xff]  }
  0x29   :  { %7249 = vmatpush3.bf16.msra.mxu0 %v7915_v35  ;;  %v441_v54 = vmul.f32 %v8552_v43, %v8452_v2  ;;  %v439_v55 = vmul.f32 %v8552_v43, %v8457_v3  ;;  %7268 = vmatprep.subr.bf16.mxu1 %v7925_v50  ;;  %v8638_v31 = vld [vmem:[%s11090_s0 + $0x8] sm:$0xff]  ;;  %v443_v33 = vmul.f32 %v8552_v43, %v8471_v12  ;;  %v8651_v34 = vld [vmem:[%s11090_s0] sm:$0xff]  ;;  %v8664_v12 = vld [vmem:[%s11090_s0 + $0x18] sm:$0xff] }
  0x2a   :  { %471 = vrot.lane.b32.xlu0 %v451_v7, %s8371_s11  ;;  %467 = vrot.lane.b32.xlu1 %v449_v8, %s8371_s11 }
  0x2b   :  { %7250 = vmatprep.subr.bf16.mxu0 %v7916_v36 }
  0x2c   :  { %7269 = vmatpush3.bf16.msra.mxu1 %v7927_v53  ;;  %v445_v53 = vmul.f32 %v8552_v43, %v8488_v18 }
  0x2d   :  { %7251 = vmatpush3.bf16.msra.mxu0 %v7917_v37  ;;  %7270 = vmatprep.subr.bf16.mxu1 %v7929_v63  ;;  %v8656_v37 = vstv %s6178_s14  ;;  %s6467_s14 = sld [smem:[#allocation2 + $0x8]] }
  0x2e   :  { %532 = vrot.lane.b32.xlu0 %v513_v10, %s8372_s16  ;;  %534 = vrot.lane.b32.xlu1 %v514_v11, %s8372_s16  ;;  %v8602_v10 = vstv %s8554_s26 }
  0x2f   :  { %7252 = vmatprep.subr.bf16.mxu0 %v7918_v38  ;;  %v7940_v38 = vld [vmem:[%s11093_s3 + $0x318] sm:$0xff]  }
  0x30   :  { %7271 = vmatpush3.bf16.msra.mxu1 %v7931_v1  ;;  %v150_v1 = vmul.f32 %v8651_v34, %v8656_v37 }
  0x31   :  { %7253 = vmatpush3.bf16.msra.mxu0 %v7919_v39  ;;  %v442_v39 = vmul.f32 %v8664_v12, %v8552_v43 }
  0x32   :  { %536 = vrot.lane.b32.xlu0 %v515_v14, %s8372_s16  ;;  %530 = vrot.lane.b32.xlu1 %v512_v15, %s8372_s16  ;;  %v7932_v15 = vld [vmem:[%s11093_s3 + $0x308] sm:$0xff]  }
  0x33   :  { %7254 = vmatprep.subr.bf16.mxu0 %v7920_v40  ;;  %7272 = vmatprep.subr.bf16.mxu1 %v7932_v15 }
  0x34   :  { %7273 = vmatpush3.bf16.msra.mxu1 %v7934_v19  ;;  %v8736_v19 = vld [vmem:[%s11090_s0 + $0x38] sm:$0xff] }
  0x35   :  { %7255 = vmatpush3.bf16.msra.mxu0 %v7922_v44 }
  0x36   :  { %475 = vrot.lane.b32.xlu0 %v453_v16, %s8371_s11  ;;  %477 = vrot.lane.b32.xlu1 %v454_v17, %s8371_s11  ;;  %v7933_v16 = vld [vmem:[%s11093_s3 + $0x370] sm:$0xff]   ;;  %v8611_v17 = vstv %s8571_s17  ;;  %s9786_s17 = sld [smem:[#allocation2 + $0xe]] }
  0x37   :  { %7256 = vmatprep.subr.bf16.mxu0 %v7924_v49  ;;  %v87_v32 = vmul.f32 %v8638_v31, %v8611_v17  ;;  %v86_v35 = vmul.f32 %v8651_v34, %v8611_v17  ;;  %v89_v44 = vmul.f32 %v8664_v12, %v8611_v17 }
  0x39   :  { %7257 = vmatpush3.bf16.msra.mxu0 %v7926_v52 }
  0x3a   :  { %538 = vrot.lane.b32.xlu0 %v516_v20, %s8372_s16  ;;  %540 = vrot.lane.b32.xlu1 %v517_v21, %s8372_s16 }
  0x3b   :  { %7258 = vmatprep.subr.bf16.mxu0 %v7928_v62  ;;  %v7948_v62 = vld [vmem:[%s11093_s3 + $0x328] sm:$0xff]  }
  0x3d   :  { %7259 = vmatpush3.bf16.msra.mxu0 %v7930_v0 }
  0x3e   :  { %479 = vrot.lane.b32.xlu0 %v455_v22, %s8371_s11  ;;  %481 = vrot.lane.b32.xlu1 %v456_v23, %s8371_s11 }
  0x3f   :  { %7288 = vmatprep.subr.bf16.mxu0 %v7933_v16 }
  0x42   :  { %542 = vrot.lane.b32.xlu0 %v518_v25, %s8372_s16  ;;  %544 = vrot.lane.b32.xlu1 %v519_v26, %s8372_s16 }
  0x46   :  { %483 = vrot.lane.b32.xlu0 %v457_v27, %s8371_s11  ;;  %546 = vrot.lane.b32.xlu1 %v520_v28, %s8372_s16  ;;  %v88_v27 = vmul.f32 %v8611_v17, %v8452_v2  ;;  %v7936_v28 = vld [vmem:[%s11093_s3 + $0x310] sm:$0xff]  }
  0x47   :  { %v7938_v2 = vld [vmem:[%s11093_s3 + $0x2d0] sm:$0xff]   ;;  %7274 = vmatprep.subr.bf16.mxu1 %v7936_v28 }
  0x48   :  { %7275 = vmatpush3.bf16.msra.mxu1 %v7938_v2 }
  0x49   :  { %7276 = vmatprep.subr.bf16.mxu1 %v7940_v38 }
  0x4c   :  { %7277 = vmatpush3.bf16.msra.mxu1 %v7942_v45 }
  0x98   :  { %v8550_v41 = vpop.permute.xlu1 %473  ;;  %v470_v42 = vpop.permute.xlu0 %469 }
  0x9c   :  { %v472_v46 = vpop.permute.xlu0 %471  ;;  %v468_v47 = vpop.permute.xlu1 %467 }
  0x9d   :  { %v486_v51 = vsel %vm122_vm0, %v470_v42, %v472_v46  ;;  %v487_v58 = vsel %vm122_vm0, %v472_v46, %v8550_v41  ;;  %v485_v59 = vsel %vm122_vm0, %v468_v47, %v470_v42 }
  0x9e   :  { %v503_v61 = vadd.f32 %v486_v51, %v440_v48  ;;  %v504_v3 = vadd.f32 %v487_v58, %v441_v54  ;;  %v502_v4 = vadd.f32 %v485_v59, %v439_v55  ;;  %v151_v48 = vmul.f32 %v8638_v31, %v8656_v37  ;;  %v7944_v51 = vld [vmem:[%s11093_s3 + $0x320] sm:$0xff]   ;;  %v8692_v54 = vld [vmem:[%s11090_s0 + $0x10] sm:$0xff] }
  0x9f   :  { %v152_v55 = vmul.f32 %v8692_v54, %v8656_v37  ;;  %7278 = vmatprep.subr.bf16.mxu1 %v7944_v51  ;;  %v8800_v51 = vstv %s6466_s29  ;;  %s6465_s29 = sld [smem:[#allocation2 + $0x6]] }
  0xa0   :  { %v533_v56 = vpop.permute.xlu0 %532  ;;  %v535_v57 = vpop.permute.xlu1 %534 }
  0xa1   :  { %v549_v60 = vsel %vm186_vm1, %v533_v56, %v535_v57 }
  0xa2   :  { %v566_v5 = vadd.f32 %v549_v60, %v503_v61  ;;  %v153_v61 = vmul.f32 %v8664_v12, %v8656_v37 }
  0xa4   :  { %v537_v6 = vpop.permute.xlu0 %536  ;;  %v531_v7 = vpop.permute.xlu1 %530  ;;  %v8620_v23 = vadd.f32 %v8602_v10, %v566_v5 }
  0xa5   :  { %v550_v8 = vsel %vm186_vm1, %v535_v57, %v537_v6  ;;  %v548_v9 = vsel %vm186_vm1, %v531_v7, %v533_v56  ;;  %v7946_v56 = vld [vmem:[%s11093_s3 + $0x2e0] sm:$0xff]  }
  0xa6   :  { %v567_v11 = vadd.f32 %v550_v8, %v504_v3  ;;  %v565_v14 = vadd.f32 %v548_v9, %v502_v4  ;;  %7279 = vmatpush3.bf16.msra.mxu1 %v7946_v56  ;;  %v7950_v3 = vld [vmem:[%s11093_s3 + $0x2e8] sm:$0xff]   ;;  %v8817_v56 = vstv %s6467_s14  ;;  %s6895_s14 = sld [smem:[#allocation2 + $0xc]] }
  0xa7   :  { %7280 = vmatprep.subr.bf16.mxu1 %v7948_v62 }
  0xa8   :  { %v476_v20 = vpop.permute.xlu0 %475  ;;  %v478_v21 = vpop.permute.xlu1 %477  ;;  %v8617_v22 = vadd.f32 %v8602_v10, %v565_v14  ;;  %v8623_v25 = vadd.f32 %v8602_v10, %v567_v11  ;;  %v7953_v14 = vld [vmem:[%s11093_s3 + $0x3f0] sm:$0xff]  }
  0xa9   :  { %v489_v36 = vsel %vm122_vm0, %v476_v20, %v478_v21  ;;  %v488_v46 = vsel %vm122_vm0, %v8550_v41, %v476_v20  ;;  %v444_v41 = vmul.f32 %v8552_v43, %v8476_v13  ;;  %v446_v20 = vmul.f32 %v8736_v19, %v8552_v43 }
  0xaa   :  { %593 = vrot.lane.b32.xlu1 %v8617_v22, %s8371_s11  ;;  %v7810_v26 = vpack.i.bf16 %v8623_v25, %v8620_v23  ;;  %v506_v47 = vadd.f32 %v489_v36, %v443_v33  ;;  %v505_v52 = vadd.f32 %v488_v46, %v442_v39  ;;  %7281 = vmatpush3.bf16.msra.mxu1 %v7950_v3  ;;  %v8782_v46 = vld [vmem:[%s11090_s0 + $0x30] sm:$0xff]  ;;  %v8837_v3 = vstv %s71_s15 }
  0xab   :  { %7310 = vmatprep.subr.bf16.mxu1 %v7953_v14 }
  0xac   :  { %v539_v29 = vpop.permute.xlu0 %538  ;;  %7811 = vrot.lane.b32.xlu0 %v7810_v26, %s8371_s11  ;;  %v541_v30 = vpop.permute.xlu1 %540 }
  0xad   :  { %v551_v49 = vsel %vm186_vm1, %v537_v6, %v539_v29  ;;  %v552_v50 = vsel %vm186_vm1, %v539_v29, %v541_v30  ;;  %v8719_v6 = vld [vmem:[%s11090_s0 + $0x20] sm:$0xff] }
  0xae   :  { %108 = vrot.lane.b32.xlu1 %v88_v27, %s8371_s11  ;;  %v568_v18 = vadd.f32 %v551_v49, %v505_v52  ;;  %v569_v58 = vadd.f32 %v552_v50, %v506_v47  ;;  %v90_v7 = vmul.f32 %v8719_v6, %v8611_v17  ;;  %v154_v28 = vmul.f32 %v8719_v6, %v8656_v37  ;;  %v8796_v49 = vld [vmem:[%s11090_s0 + $0x40] sm:$0xff] }
  0xaf   :  { %v92_v47 = vmul.f32 %v8782_v46, %v8611_v17  ;;  %v94_v50 = vmul.f32 %v8796_v49, %v8611_v17  ;;  %v157_v52 = vmul.f32 %v8736_v19, %v8656_v37 }
  0xb0   :  { %106 = vrot.lane.b32.xlu0 %v87_v32, %s8371_s11  ;;  %v480_v40 = vpop.permute.xlu0 %479  ;;  %v482_v42 = vpop.permute.xlu1 %481  ;;  %v8724_v8 = vadd.f32 %v8602_v10, %v568_v18  ;;  %v8727_v9 = vadd.f32 %v8602_v10, %v569_v58 }
  0xb1   :  { %v490_v57 = vsel %vm122_vm0, %v478_v21, %v480_v40  ;;  %v491_v13 = vsel %vm122_vm0, %v480_v40, %v482_v42  ;;  %v447_v21 = vmul.f32 %v8552_v43, %v8503_v24 }
  0xb2   :  { %104 = vrot.lane.b32.xlu1 %v86_v35, %s8371_s11  ;;  %v507_v63 = vadd.f32 %v490_v57, %v444_v41  ;;  %v508_v0 = vadd.f32 %v491_v13, %v445_v53  ;;  %v7815_v27 = vpack.i.bf16 %v8727_v9, %v8724_v8  ;;  %v2067_v41 = vmul.f32 %v8638_v31, %v8800_v51 }
  0xb3   :  { %v158_v53 = vmul.f32 %v8796_v49, %v8656_v37  ;;  %v2066_v57 = vmul.f32 %v8651_v34, %v8800_v51 }
  0xb4   :  { %110 = vrot.lane.b32.xlu0 %v89_v44, %s8371_s11  ;;  %v543_v59 = vpop.permute.xlu0 %542  ;;  %v545_v60 = vpop.permute.xlu1 %544 }
  0xb5   :  { %v553_v4 = vsel %vm186_vm1, %v541_v30, %v543_v59  ;;  %v554_v5 = vsel %vm186_vm1, %v543_v59, %v545_v60  ;;  %v8751_v30 = vld [vmem:[%s11090_s0 + $0x28] sm:$0xff] }
  0xb6   :  { %170 = vrot.lane.b32.xlu1 %v151_v48, %s8372_s16  ;;  %v570_v15 = vadd.f32 %v553_v4, %v507_v63  ;;  %v571_v16 = vadd.f32 %v554_v5, %v508_v0  ;;  %v91_v24 = vmul.f32 %v8751_v30, %v8611_v17  ;;  %v155_v40 = vmul.f32 %v8751_v30, %v8656_v37 }
  0xb7   :  { %v156_v48 = vmul.f32 %v8782_v46, %v8656_v37  ;;  %v2130_v37 = vmul.f32 %v8638_v31, %v8817_v56 }
  0xb8   :  { %172 = vrot.lane.b32.xlu0 %v152_v55, %s8372_s16  ;;  %v484_v11 = vpop.permute.xlu0 %483  ;;  %v547_v29 = vpop.permute.xlu1 %546  ;;  %v8757_v2 = vadd.f32 %v8602_v10, %v570_v15  ;;  %v8760_v33 = vadd.f32 %v8602_v10, %v571_v16  ;;  %v2068_v55 = vmul.f32 %v8692_v54, %v8800_v51 }
  0xb9   :  { %v492_v26 = vsel %vm122_vm0, %v482_v42, %v484_v11  ;;  %v510_v32 = vadd.f32 %v484_v11, %v447_v21  ;;  %v555_v35 = vsel %vm186_vm1, %v545_v60, %v547_v29  ;;  %v93_v42 = vmul.f32 %v8736_v19, %v8611_v17 }
  0xba   :  { %174 = vrot.lane.b32.xlu1 %v153_v61, %s8372_s16  ;;  %v509_v43 = vadd.f32 %v492_v26, %v446_v20  ;;  %v7820_v36 = vpack.i.bf16 %v8760_v33, %v8757_v2  ;;  %v2069_v17 = vmul.f32 %v8664_v12, %v8800_v51  ;;  %v77_v11 = vmul.f32 %v8638_v31, %v8837_v3  ;;  %v7935_v20 = vld [vmem:[%s11093_s3 + $0x330] sm:$0xff]  }
  0xbb   :  { %v573_v39 = vadd.f32 %v547_v29, %v510_v32  ;;  %v78_v21 = vmul.f32 %v8692_v54, %v8837_v3  ;;  %v7939_v29 = vld [vmem:[%s11093_s3 + $0x338] sm:$0xff]  }
  0xbc   :  { %168 = vrot.lane.b32.xlu0 %v150_v1, %s8372_s16  ;;  %v572_v38 = vadd.f32 %v555_v35, %v509_v43  ;;  %v7941_v43 = vld [vmem:[%s11093_s3 + $0x380] sm:$0xff]  }
  0xbd   :  { %v8776_v45 = vadd.f32 %v8602_v10, %v573_v39 }
  0xbe   :  { %112 = vrot.lane.b32.xlu1 %v90_v7, %s8371_s11  ;;  %v8773_v44 = vadd.f32 %v8602_v10, %v572_v38  ;;  %v8858_v38 = vstv %s74_s18 }
  0xc0   :  { %7816 = vrot.lane.b32.xlu0 %v7815_v27, %s8371_s11  ;;  %v7825_v10 = vpack.i.bf16 %v8776_v45, %v8773_v44 }
  0xc2   :  { %176 = vrot.lane.b32.xlu1 %v154_v28, %s8372_s16 }
  0xc4   :  { %114 = vrot.lane.b32.xlu0 %v91_v24, %s8371_s11 }
  0xc6   :  { %7821 = vrot.lane.b32.xlu1 %v7820_v36, %s8371_s11 }
  0xc8   :  { %178 = vrot.lane.b32.xlu0 %v155_v40, %s8372_s16  ;;  %v76_v40 = vmul.f32 %v8651_v34, %v8837_v3  ;;  %v79_v34 = vmul.f32 %v8664_v12, %v8837_v3  ;;  %v7949_v12 = vld [vmem:[%s11093_s3 + $0x390] sm:$0xff]  }
  0xca   :  { %118 = vrot.lane.b32.xlu1 %v93_v42, %s8371_s11 }
  0xcc   :  { %116 = vrot.lane.b32.xlu0 %v92_v47, %s8371_s11 }
  0xce   :  { %180 = vrot.lane.b32.xlu1 %v156_v48, %s8372_s16  ;;  %v7943_v48 = vld [vmem:[%s11093_s3 + $0x340] sm:$0xff]  }
  0xd0   :  { %7826 = vrot.lane.b32.xlu0 %v7825_v10, %s8371_s11 }
  0xd2   :  { %120 = vrot.lane.b32.xlu1 %v94_v50, %s8371_s11  ;;  %v7945_v50 = vld [vmem:[%s11093_s3 + $0x388] sm:$0xff]  }
  0xd4   :  { %182 = vrot.lane.b32.xlu0 %v157_v52, %s8372_s16 }
  0xd6   :  { %2086 = vrot.lane.b32.xlu1 %v2067_v41, %s8371_s11 }
  0xd8   :  { %184 = vrot.lane.b32.xlu0 %v158_v53, %s8372_s16 }
  0xda   :  { %2090 = vrot.lane.b32.xlu1 %v2069_v17, %s8371_s11 }
  0xdc   :  { %2088 = vrot.lane.b32.xlu0 %v2068_v55, %s8371_s11 }
  0xde   :  { %2084 = vrot.lane.b32.xlu1 %v2066_v57, %s8371_s11 }
  0xe0   :  { %2149 = vrot.lane.b32.xlu0 %v2130_v37, %s8372_s16 }
 0x11c   :  { %v594_v13 = vpop.permute.xlu1 %593 }
 0x11e   :  { %v8827_v18 = vpop.permute.xlu0 %7811 }
 0x11f   :  { %v7814_v58 = vunpack.i.h.bf16 %v8827_v18  ;;  %v7813_v59 = vunpack.i.l.bf16 %v8827_v18 }
 0x120   :  { %v109_v60 = vpop.permute.xlu1 %108 }
 0x121   :  { %v612_v61 = vsel %vm122_vm0, %v7813_v59, %v7814_v58  ;;  %v611_v62 = vsel %vm122_vm0, %v594_v13, %v7813_v59  ;;  %v7947_v59 = vld [vmem:[%s11093_s3 + $0x348] sm:$0xff]  }
 0x122   :  { %v107_v63 = vpop.permute.xlu0 %106  ;;  %v629_v0 = vmax.f32 %v8620_v23, %v612_v61  ;;  %v628_v1 = vmax.f32 %v8617_v22, %v611_v62  ;;  %v7937_v22 = vld [vmem:[%s11093_s3 + $0x378] sm:$0xff]  }
 0x123   :  { %v124_v23 = vsel %vm122_vm0, %v107_v63, %v109_v60 }
 0x124   :  { %v105_v4 = vpop.permute.xlu1 %104  ;;  %v638_v5 = vmax.f32 %v629_v0, 0.0  ;;  %v637_v7 = vmax.f32 %v628_v1, 0.0  ;;  %v141_v27 = vadd.f32 %v124_v23, %v77_v11  ;;  %v2131_v1 = vmul.f32 %v8692_v54, %v8817_v56 }
 0x125   :  { %v123_v10 = vsel %vm122_vm0, %v105_v4, %v107_v63 }
 0x126   :  { %v111_v14 = vpop.permute.xlu0 %110  ;;  %v647_v15 = vpack.c.bf16 %v638_v5, %v638_v5  ;;  %v646_v16 = vpack.c.bf16 %v637_v7, %v637_v7  ;;  %v140_v57 = vadd.f32 %v123_v10, %v76_v40 }
 0x127   :  { %v125_v31 = vsel %vm122_vm0, %v109_v60, %v111_v14 }
 0x128   :  { %1258 = vmatprep.mubr.bf16.mxu0 %v647_v15  ;;  %v171_v26 = vpop.permute.xlu1 %170  ;;  %v142_v32 = vadd.f32 %v125_v31, %v78_v21 }
 0x129   :  { %1259 = vmatmul.mubr.bf16.vlgmr.msra.gmra.mrb[0].mxu0 %v646_v16  ;;  %v7951_v16 = vld [vmem:[%s11093_s3 + $0x350] sm:$0xff]  }
 0x12a   :  { %7289 = vmatpush3.bf16.msra.mxu0 %v7935_v20  ;;  %v173_v28 = vpop.permute.xlu0 %172 }
 0x12b   :  { %v188_v24 = vsel %vm186_vm1, %v171_v26, %v173_v28  ;;  %7290 = vmatprep.subr.bf16.mxu0 %v7937_v22 }
 0x12c   :  { %v205_v35 = vadd.f32 %v188_v24, %v141_v27  ;;  %v175_v36 = vpop.permute.xlu1 %174 }
 0x12d   :  { %v189_v39 = vsel %vm186_vm1, %v173_v28, %v175_v36 }
 0x12e   :  { %v206_v42 = vadd.f32 %v189_v39, %v142_v32  ;;  %7291 = vmatpush3.bf16.msra.mxu0 %v7939_v29  ;;  %v169_v47 = vpop.permute.xlu0 %168  ;;  %v8871_v52 = vadd.f32 %v8858_v38, %v205_v35  ;;  %v7954_v35 = vld [vmem:[%s11093_s3 + $0x358] sm:$0xff]  }
 0x12f   :  { %7292 = vmatprep.subr.bf16.mxu0 %v7941_v43  ;;  %v187_v17 = vsel %vm186_vm1, %v169_v47, %v171_v26  ;;  %v7957_v47 = vld [vmem:[%s11093_s3 + $0x3f8] sm:$0xff]  }
 0x130   :  { %v8874_v41 = vadd.f32 %v8858_v38, %v206_v42  ;;  %v113_v53 = vpop.permute.xlu1 %112  ;;  %v204_v62 = vadd.f32 %v187_v17, %v140_v57  ;;  %v7956_v42 = vld [vmem:[%s11093_s3 + $0x3a0] sm:$0xff]  }
 0x131   :  { %v126_v55 = vsel %vm122_vm0, %v111_v14, %v113_v53  ;;  %v80_v14 = vmul.f32 %v8719_v6, %v8837_v3  ;;  %v8913_v6 = vld [vmem:[%s11090_s0] sm:$0xff] }
 0x132   :  { %7293 = vmatpush3.bf16.msra.mxu0 %v7943_v48  ;;  %v7817_v37 = vpop.permute.xlu0 %7816  ;;  %v7830_v13 = vpack.i.bf16 %v8874_v41, %v8871_v52  ;;  %v143_v63 = vadd.f32 %v126_v55, %v79_v34  ;;  %v2129_v23 = vmul.f32 %v8913_v6, %v8817_v56  ;;  %v2071_v34 = vmul.f32 %v8751_v30, %v8800_v51 }
 0x133   :  { %v7819_v60 = vunpack.i.h.bf16 %v7817_v37  ;;  %v7818_v61 = vunpack.i.l.bf16 %v7817_v37  ;;  %7294 = vmatprep.subr.bf16.mxu0 %v7945_v50  ;;  %v7958_v37 = vld [vmem:[%s11093_s3 + $0x360] sm:$0xff]  }
 0x134   :  { %7831 = vrot.lane.b32.xlu1 %v7830_v13, %s8371_s11  ;;  %v177_v0 = vpop.permute.xlu1 %176  ;;  %v7959_v13 = vld [vmem:[%s11093_s3 + $0x3b8] sm:$0xff]  }
 0x135   :  { %v190_v4 = vsel %vm186_vm1, %v175_v36, %v177_v0  ;;  %v614_v5 = vsel %vm122_vm0, %v7818_v61, %v7819_v60  ;;  %v613_v7 = vsel %vm122_vm0, %v7814_v58, %v7818_v61  ;;  %v7952_v58 = vld [vmem:[%s11093_s3 + $0x398] sm:$0xff]   ;;  %v7955_v36 = vld [vmem:[%s11093_s3 + $0x3b0] sm:$0xff]  }
 0x136   :  { %v207_v11 = vadd.f32 %v190_v4, %v143_v63  ;;  %7295 = vmatpush3.bf16.msra.mxu0 %v7947_v59  ;;  %v8898_v15 = vpop.permute.xlu0 %114  ;;  %v631_v54 = vmax.f32 %v8724_v8, %v614_v5  ;;  %v630_v20 = vmax.f32 %v8623_v25, %v613_v7  ;;  %v8918_v8 = vadd.f32 %v8858_v38, %v204_v62 }
 0x137   :  { %v127_v18 = vsel %vm122_vm0, %v113_v53, %v8898_v15  ;;  %7296 = vmatprep.subr.bf16.mxu0 %v7949_v12  ;;  %v82_v59 = vmul.f32 %v8782_v46, %v8837_v3  ;;  %v7961_v12 = vld [vmem:[%s11093_s3 + $0x400] sm:$0xff]   ;;  %v2134_v62 = vmul.f32 %v8751_v30, %v8817_v56  ;;  %v81_v63 = vmul.f32 %v8751_v30, %v8837_v3 }
 0x138   :  { %v8921_v25 = vadd.f32 %v8858_v38, %v207_v11  ;;  %2151 = vrot.lane.b32.xlu1 %v2131_v1, %s8372_s16  ;;  %v8924_v22 = vpop.permute.xlu1 %7821  ;;  %v640_v21 = vmax.f32 %v631_v54, 0.0  ;;  %v639_v26 = vmax.f32 %v630_v20, 0.0  ;;  %v144_v28 = vadd.f32 %v127_v18, %v80_v14  ;;  %v8984_v1 = vld [vmem:[%s11090_s0 + $0x18] sm:$0xff]  ;;  %v7962_v11 = vld [vmem:[%s11093_s3 + $0x368] sm:$0xff]   ;;  %v7963_v14 = vld [vmem:[%s11093_s3 + $0x3c0] sm:$0xff]  }
 0x139   :  { %v7824_v31 = vunpack.i.h.bf16 %v8924_v22  ;;  %v7823_v27 = vunpack.i.l.bf16 %v8924_v22  ;;  %v2132_v4 = vmul.f32 %v8984_v1, %v8817_v56  ;;  %v84_v20 = vmul.f32 %v8796_v49, %v8837_v3  ;;  %v9015_v49 = vld [vmem:[%s11090_s0 + $0x20] sm:$0xff] }
 0x13a   :  { %7297 = vmatpush3.bf16.msra.mxu0 %v7951_v16  ;;  %v8928_v29 = vpop.permute.xlu0 %178  ;;  %v649_v24 = vpack.c.bf16 %v640_v21, %v640_v21  ;;  %v7835_v43 = vpack.i.bf16 %v8921_v25, %v8918_v8  ;;  %v648_v32 = vpack.c.bf16 %v639_v26, %v639_v26  ;;  %v7974_v22 = vld [vmem:[%s11093_s3 + $0x3e0] sm:$0xff]  }
 0x13b   :  { %v615_v39 = vsel %vm122_vm0, %v7819_v60, %v7823_v27  ;;  %v191_v40 = vsel %vm186_vm1, %v177_v0, %v8928_v29  ;;  %7298 = vmatprep.subr.bf16.mxu0 %v7952_v58  ;;  %v616_v48 = vsel %vm122_vm0, %v7823_v27, %v7824_v31  ;;  %v2072_v58 = vmul.f32 %v8782_v46, %v8800_v51 }
 0x13c   :  { %v208_v10 = vadd.f32 %v191_v40, %v144_v28  ;;  %1298 = vmatprep.mubr.bf16.mxu1 %v649_v24  ;;  %2147 = vrot.lane.b32.xlu1 %v2129_v23, %s8372_s16  ;;  %v119_v50 = vpop.permute.xlu1 %118  ;;  %v633_v53 = vmax.f32 %v8757_v2, %v616_v48  ;;  %v632_v17 = vmax.f32 %v8727_v9, %v615_v39  ;;  %v7960_v9 = vld [vmem:[%s11093_s3 + $0x3a8] sm:$0xff]   ;;  %v7967_v39 = vld [vmem:[%s11093_s3 + $0x410] sm:$0xff]  }
 0x13d   :  { %7836 = vrot.lane.b32.xlu0 %v7835_v43, %s8371_s11  ;;  %1299 = vmatmul.mubr.bf16.vlgmr.msra.gmra.mrb[0].mxu1 %v648_v32  ;;  %v83_v23 = vmul.f32 %v8736_v19, %v8837_v3  ;;  %v2070_v28 = vmul.f32 %v9015_v49, %v8800_v51  ;;  %v7965_v24 = vld [vmem:[%s11093_s3 + $0x3c8] sm:$0xff]   ;;  %v7966_v43 = vld [vmem:[%s11093_s3 + $0x430] sm:$0xff]  }
 0x13e   :  { %7299 = vmatpush3.bf16.msra.mxu0 %v7954_v35  ;;  %7311 = vmatpush3.bf16.msra.mxu1 %v7955_v36  ;;  %v117_v55 = vpop.permute.xlu0 %116  ;;  %v8957_v57 = vadd.f32 %v8858_v38, %v208_v10  ;;  %v642_v2 = vmax.f32 %v633_v53, 0.0  ;;  %v641_v5 = vmax.f32 %v632_v17, 0.0  ;;  %v8373_v35 = vmov 0.0   ;;  %v7969_v17 = vld [vmem:[%s11093_s3 + $0x438] sm:$0xff]  }
 0x13f   :  { %7300 = vmatprep.subr.bf16.mxu0 %v7956_v42  ;;  %7312 = vmatprep.subr.bf16.mxu1 %v7957_v47  ;;  %v129_v0 = vsel %vm122_vm0, %v117_v55, %v119_v50  ;;  %v128_v7 = vsel %vm122_vm0, %v8898_v15, %v117_v55  ;;  %v7964_v15 = vld [vmem:[%s11093_s3 + $0x408] sm:$0xff]  }
 0x140   :  { %2094 = vrot.lane.b32.xlu1 %v2071_v34, %s8371_s11  ;;  %v181_v60 = vpop.permute.xlu1 %180  ;;  %v651_v61 = vpack.c.bf16 %v642_v2, %v642_v2  ;;  %v146_v18 = vadd.f32 %v129_v0, %v82_v59  ;;  %v145_v26 = vadd.f32 %v128_v7, %v81_v63  ;;  %v650_v3 = vpack.c.bf16 %v641_v5, %v641_v5  ;;  %v7970_v2 = vld [vmem:[%s11093_s3 + $0x418] sm:$0xff]  }
 0x141   :  { %240 = vrot.lane.b32.xlu0 %v8957_v57, %s8371_s11  ;;  %v192_v46 = vsel %vm186_vm1, %v8928_v29, %v181_v60  ;;  %v9091_v5 = vld [vmem:[%s11090_s0 + $0x38] sm:$0xff] }
 0x142   :  { %7301 = vmatpush3.bf16.msra.mxu0 %v7958_v37  ;;  %7313 = vmatpush3.bf16.msra.mxu1 %v7959_v13  ;;  %v8990_v30 = vpop.permute.xlu0 %7826  ;;  %v209_v48 = vadd.f32 %v192_v46, %v145_v26  ;;  %v2073_v7 = vmul.f32 %v9091_v5, %v8800_v51  ;;  %v9135_v46 = vld [vmem:[%s11090_s0 + $0x40] sm:$0xff] }
 0x143   :  { %v7829_v16 = vunpack.i.h.bf16 %v8990_v30  ;;  %v7828_v54 = vunpack.i.l.bf16 %v8990_v30  ;;  %1338 = vmatprep.mubr.bf16.mxu0 %v651_v61  ;;  %7302 = vmatprep.subr.bf16.mxu0 %v7960_v9  ;;  %v2074_v30 = vmul.f32 %v9135_v46, %v8800_v51  ;;  %v7983_v51 = vld [vmem:[%s11093_s3 + $0x48] sm:$0xff]  }
 0x144   :  { %7314 = vmatprep.subr.bf16.mxu1 %v7961_v12  ;;  %2157 = vrot.lane.b32.xlu1 %v2134_v62, %s8372_s16  ;;  %v121_v21 = vpop.permute.xlu1 %120  ;;  %v9059_v59 = vadd.f32 %v8858_v38, %v209_v48  ;;  %v7971_v12 = vld [vmem:[%s11093_s3 + $0x3d8] sm:$0xff]   ;;  %v7972_v62 = vld [vmem:[%s11093_s3 + $0x440] sm:$0xff]   ;;  %v7990_v48 = vld [vmem:[%s11093_s3 + $0xd0] sm:$0xff]  }
 0x145   :  { %2153 = vrot.lane.b32.xlu0 %v2132_v4, %s8372_s16  ;;  %v130_v27 = vsel %vm122_vm0, %v119_v50, %v121_v21  ;;  %v618_v32 = vsel %vm122_vm0, %v7828_v54, %v7829_v16  ;;  %v148_v36 = vadd.f32 %v121_v21, %v84_v20  ;;  %v2133_v50 = vmul.f32 %v9015_v49, %v8817_v56  ;;  %v7979_v21 = vld [vmem:[%s11093_s3 + $0x458] sm:$0xff]  }
 0x146   :  { %7303 = vmatpush3.bf16.msra.mxu0 %v7962_v11  ;;  %7315 = vmatpush3.bf16.msra.mxu1 %v7963_v14  ;;  %v183_v19 = vpop.permute.xlu0 %182  ;;  %v635_v40 = vmax.f32 %v8773_v44, %v618_v32  ;;  %v147_v47 = vadd.f32 %v130_v27, %v83_v23  ;;  %v7968_v44 = vld [vmem:[%s11093_s3 + $0x3d0] sm:$0xff]   ;;  %v617_v0 = vsel %vm122_vm0, %v7824_v31, %v7828_v54  ;;  %v7975_v31 = vld [vmem:[%s11093_s3 + $0x448] sm:$0xff]   ;;  %v7984_v32 = vld [vmem:[%s11093_s3 + $0x80] sm:$0xff]  }
 0x147   :  { %v193_v29 = vsel %vm186_vm1, %v181_v60, %v183_v19  ;;  %7316 = vmatprep.subr.bf16.mxu1 %v7964_v15  ;;  %7719 = vmatprep.subr.bf16.mxu0 %v8373_v35  ;;  %v634_v11 = vmax.f32 %v8760_v33, %v617_v0  ;;  %v7976_v14 = vld [vmem:[%s11093_s3 + $0x428] sm:$0xff]   ;;  %v2136_v54 = vmul.f32 %v9091_v5, %v8817_v56  ;;  %v8375_v15 = vmov 65535   ;;  %v9113_v33 = vld [vmem:[%s11090_s0 + $0x30] sm:$0xff] }
 0x148   :  { %v210_v42 = vadd.f32 %v193_v29, %v146_v18  ;;  %2096 = vrot.lane.b32.xlu1 %v2072_v58, %s8371_s11  ;;  %v644_v10 = vmax.f32 %v635_v40, 0.0  ;;  %v1221_v20 = vsel %vm1219_vm3, 4294967295, %v8375_v15  ;;  %v2135_v18 = vmul.f32 %v9113_v33, %v8817_v56  ;;  %v7977_v58 = vld [vmem:[%s11093_s3 + $0x3e8] sm:$0xff]   ;;  %v7978_v23 = vld [vmem:[%s11093_s3 + $0x450] sm:$0xff]   ;;  %v8014_v15 = vld [vmem:[%s11093_s3 + $0x1c0] sm:$0xff]  }
 0x149   :  { %1339 = vmatmul.mubr.bf16.vlgmr.msra.gmra.mrb[4].mxu0 %v650_v3  ;;  %2092 = vrot.lane.b32.xlu0 %v2070_v28, %s8371_s11  ;;  %v636_v26 = vmax.f32 %v8776_v45, %v7829_v16  ;;  %v643_v27 = vmax.f32 %v634_v11, 0.0  ;;  %v9130_v28 = vsel %vm1220_vm4, %v1221_v20, 0  ;;  %v7980_v45 = vld [vmem:[%s11093_s3 + $0x40] sm:$0xff]   ;;  %v7985_v29 = vld [vmem:[%s11093_s3 + $0x8] sm:$0xff]   ;;  %v7987_v40 = vld [vmem:[%s11093_s3 + $0x50] sm:$0xff]   ;;  %v2087_v20 = vpop.permute.xlu1 %2086 }
 0x14a   :  { %v9043_v34 = vadd.f32 %v8858_v38, %v210_v42  ;;  %7317 = vmatpush3.bf16.msra.mxu1 %v7965_v24  ;;  %7720 = vmatpush3.bf16.msra.mxu0 %v7966_v43  ;;  %v185_v53 = vpop.permute.xlu0 %184  ;;  %v653_v13 = vpack.c.bf16 %v644_v10, %v644_v10  ;;  %v1224_v16 = vand.u32 %v7979_v21, %v9130_v28  ;;  %v7981_v3 = vld [vmem:[%s11093_s3] sm:$0xff]   ;;  %v7988_v42 = vld [vmem:[%s11093_s3 + $0x88] sm:$0xff]   ;;  %v7991_v10 = vld [vmem:[%s11093_s3 + $0x58] sm:$0xff]  }
 0x14b   :  { %v194_v55 = vsel %vm186_vm1, %v183_v19, %v185_v53  ;;  %v212_v37 = vadd.f32 %v185_v53, %v148_v36  ;;  %7318 = vmatprep.subr.bf16.mxu1 %v7967_v39  ;;  %7721 = vmatprep.subr.bf16.mxu0 %v8373_v35  ;;  %v2137_v19 = vmul.f32 %v9135_v46, %v8817_v56  ;;  %v645_v56 = vmax.f32 %v636_v26, 0.0  ;;  %v7982_v43 = vld [vmem:[%s11093_s3 + $0xc0] sm:$0xff]   ;;  %v7986_v39 = vld [vmem:[%s11093_s3 + $0xc8] sm:$0xff]   ;;  %v7993_v53 = vld [vmem:[%s11093_s3 + $0x18] sm:$0xff]  }
 0x14c   :  { %v211_v9 = vadd.f32 %v194_v55, %v147_v47  ;;  %7731 = vmatprep.mubr.msk.bf16.mxu0 %vm8374_vm2, %v8373_v35  ;;  %1378 = vmatprep.mubr.bf16.mxu1 %v653_v13  ;;  %v7840_v63 = vpack.i.bf16 %v9043_v34, %v9059_v59  ;;  %v652_v24 = vpack.c.bf16 %v643_v27, %v643_v27  ;;  %v7989_v47 = vld [vmem:[%s11093_s3 + $0x10] sm:$0xff]   ;;  %v7996_v55 = vld [vmem:[%s11093_s3 + $0x98] sm:$0xff]   ;;  %v7998_v13 = vld [vmem:[%s11093_s3 + $0xe0] sm:$0xff]   ;;  %v9252_v26 = vstv %s6465_s29 }
 0x14d   :  { %v9062_v60 = vadd.f32 %v8858_v38, %v212_v37  ;;  %2155 = vrot.lane.b32.xlu0 %v2133_v50, %s8372_s16  ;;  %v654_v36 = vpack.c.bf16 %v645_v56, %v645_v56  ;;  %v7992_v50 = vld [vmem:[%s11093_s3 + $0x90] sm:$0xff]   ;;  %v7997_v37 = vld [vmem:[%s11093_s3 + $0x20] sm:$0xff]   ;;  %v8010_v11 = vld [vmem:[%s11093_s3 + $0xf8] sm:$0xff]  }
 0x14e   :  { %v9066_v61 = vadd.f32 %v8858_v38, %v211_v9  ;;  %7319 = vmatpush3.bf16.msra.mxu1 %v7968_v44  ;;  %7722 = vmatpush3.bf16.msra.mxu0 %v7969_v17  ;;  %v7973_v38 = vld [vmem:[%s11093_s3 + $0x420] sm:$0xff]   ;;  %v7994_v44 = vld [vmem:[%s11093_s3 + $0xd8] sm:$0xff]   ;;  %v8005_v0 = vld [vmem:[%s11093_s3 + $0x30] sm:$0xff]  }
 0x14f   :  { %7320 = vmatprep.subr.bf16.mxu1 %v7970_v2  ;;  %7723 = vmatprep.subr.bf16.mxu0 %v8373_v35  ;;  %v7995_v17 = vld [vmem:[%s11093_s3 + $0x60] sm:$0xff]   ;;  %v7999_v2 = vld [vmem:[%s11093_s3 + $0x68] sm:$0xff]  }
 0x150   :  { %v7845_v4 = vpack.i.bf16 %v9062_v60, %v9066_v61  ;;  %v8000_v9 = vld [vmem:[%s11093_s3 + $0xa0] sm:$0xff]  }
 0x151   :  { %7841 = vrot.lane.b32.xlu0 %v7840_v63, %s8371_s11  ;;  %v8003_v63 = vld [vmem:[%s11093_s3 + $0x70] sm:$0xff]  }
 0x152   :  { %7321 = vmatpush3.bf16.msra.mxu1 %v7971_v12  ;;  %7724 = vmatpush3.bf16.msra.mxu0 %v7972_v62  ;;  %v8001_v12 = vld [vmem:[%s11093_s3 + $0x28] sm:$0xff]  }
 0x153   :  { %7846 = vrot.lane.b32.xlu1 %v7845_v4, %s8371_s11  ;;  %7322 = vmatprep.subr.bf16.mxu1 %v7973_v38  ;;  %v8002_v62 = vld [vmem:[%s11093_s3 + $0xe8] sm:$0xff]   ;;  %v8006_v4 = vld [vmem:[%s11093_s3 + $0xf0] sm:$0xff]  }
 0x154   :  { %7725 = vmatprep.subr.bf16.mxu0 %v8373_v35  ;;  %v8004_v38 = vld [vmem:[%s11093_s3 + $0xa8] sm:$0xff]  }
 0x155   :  { %2098 = vrot.lane.b32.xlu0 %v2073_v7, %s8371_s11  ;;  %v8007_v7 = vld [vmem:[%s11093_s3 + $0x78] sm:$0xff]  }
 0x156   :  { %7323 = vmatpush3.bf16.msra.mxu1 %v7974_v22  ;;  %7726 = vmatpush3.bf16.msra.mxu0 %v7975_v31  ;;  %v8008_v22 = vld [vmem:[%s11093_s3 + $0xb0] sm:$0xff]   ;;  %v8009_v31 = vld [vmem:[%s11093_s3 + $0x38] sm:$0xff]  }
 0x157   :  { %7324 = vmatprep.subr.bf16.mxu1 %v7976_v14  ;;  %2161 = vrot.lane.b32.xlu1 %v2136_v54, %s8372_s16  ;;  %v8012_v14 = vld [vmem:[%s11093_s3 + $0x140] sm:$0xff]   ;;  %v8011_v54 = vld [vmem:[%s11093_s3 + $0xb8] sm:$0xff]  }
 0x158   :  { %7727 = vmatprep.subr.bf16.mxu0 %v8373_v35 }
 0x159   :  { %2159 = vrot.lane.b32.xlu0 %v2135_v18, %s8372_s16  ;;  %v9250_v18 = vpop.permute.xlu1 %2090 }
 0x15a   :  { %7325 = vmatpush3.bf16.msra.mxu1 %v7977_v58  ;;  %7728 = vmatpush3.bf16.msra.mxu0 %v7978_v23  ;;  %v2089_v23 = vpop.permute.xlu0 %2088 }
 0x15b   :  { %7729 = vmatprep.subr.bf16.mxu0 %v8373_v35  ;;  %2163 = vrot.lane.b32.xlu1 %v2137_v19, %s8372_s16 }
 0x15c   :  { %7339 = vmatprep.subr.bf16.mxu1 %v7980_v45 }
 0x15d   :  { %1379 = vmatmul.mubr.bf16.vlgmr.msra.gmra.mrb[4].mxu1 %v652_v24  ;;  %2100 = vrot.lane.b32.xlu0 %v2074_v30, %s8371_s11  ;;  %v2085_v58 = vpop.permute.xlu1 %2084 }
 0x15e   :  { %7730 = vmatpush3.bf16.msra.mxu0 %v1224_v16  ;;  %7340 = vmatpush3.bf16.msra.mxu1 %v7981_v3  ;;  %v2150_v45 = vpop.permute.xlu0 %2149  ;;  %v2056_v16 = vmul.f32 %v8913_v6, %v9252_v26  ;;  %v2102_v24 = vsel %vm122_vm0, %v2085_v58, %v2087_v20  ;;  %v8015_v58 = vld [vmem:[%s11093_s3 + $0x148] sm:$0xff]  }
 0x15f   :  { %7361 = vmatprep.subr.bf16.mxu0 %v7982_v43  ;;  %7341 = vmatprep.subr.bf16.mxu1 %v7983_v51 }
 0x160   :  { %v2119_v51 = vadd.f32 %v2102_v24, %v2056_v16  ;;  %v8018_v16 = vld [vmem:[%s11093_s3 + $0x1c8] sm:$0xff]  }
 0x161   :  { %7732 = vmatmul.mubr.msk.bf16.vlgmr.msra.gmra.mrb[8].mxu0 %vm1215_vm5, %v654_v36 }
 0x162   :  { %7362 = vmatpush3.bf16.msra.mxu0 %v7984_v32  ;;  %7342 = vmatpush3.bf16.msra.mxu1 %v7985_v29 }
 0x163   :  { %7363 = vmatprep.subr.bf16.mxu0 %v7986_v39  ;;  %7343 = vmatprep.subr.bf16.mxu1 %v7987_v40 }
 0x166   :  { %7364 = vmatpush3.bf16.msra.mxu0 %v7988_v42  ;;  %7344 = vmatpush3.bf16.msra.mxu1 %v7989_v47 }
 0x167   :  { %7365 = vmatprep.subr.bf16.mxu0 %v7990_v48  ;;  %7345 = vmatprep.subr.bf16.mxu1 %v7991_v10  ;;  %v9263_v48 = vld [vmem:[%s11090_s0 + $0x8] sm:$0xff]  ;;  %v9267_v10 = vstv %s6468_s30 }
 0x16a   :  { %7366 = vmatpush3.bf16.msra.mxu0 %v7992_v50  ;;  %7346 = vmatpush3.bf16.msra.mxu1 %v7993_v53  ;;  %v9269_v50 = vstv %s6681_s12  ;;  %v2103_v53 = vsel %vm122_vm0, %v2087_v20, %v2089_v23 }
 0x16b   :  { %7367 = vmatprep.subr.bf16.mxu0 %v7994_v44  ;;  %7347 = vmatprep.subr.bf16.mxu1 %v7995_v17 }
 0x16e   :  { %7368 = vmatpush3.bf16.msra.mxu0 %v7996_v55  ;;  %7348 = vmatpush3.bf16.msra.mxu1 %v7997_v37  ;;  %v9280_v37 = vld [vmem:[%s11090_s0 + $0x10] sm:$0xff] }
 0x16f   :  { %7369 = vmatprep.subr.bf16.mxu0 %v7998_v13  ;;  %7349 = vmatprep.subr.bf16.mxu1 %v7999_v2  ;;  %v2058_v13 = vmul.f32 %v9280_v37, %v9252_v26 }
 0x172   :  { %7370 = vmatpush3.bf16.msra.mxu0 %v8000_v9  ;;  %7350 = vmatpush3.bf16.msra.mxu1 %v8001_v12 }
 0x173   :  { %7371 = vmatprep.subr.bf16.mxu0 %v8002_v62  ;;  %7351 = vmatprep.subr.bf16.mxu1 %v8003_v63  ;;  %v2104_v62 = vsel %vm122_vm0, %v2089_v23, %v9250_v18 }
 0x176   :  { %7372 = vmatpush3.bf16.msra.mxu0 %v8004_v38  ;;  %7352 = vmatpush3.bf16.msra.mxu1 %v8005_v0  ;;  %v3056_v0 = vmul.f32 %v9280_v37, %v9269_v50 }
 0x177   :  { %7373 = vmatprep.subr.bf16.mxu0 %v8006_v4  ;;  %7353 = vmatprep.subr.bf16.mxu1 %v8007_v7 }
 0x17a   :  { %7374 = vmatpush3.bf16.msra.mxu0 %v8008_v22  ;;  %7354 = vmatpush3.bf16.msra.mxu1 %v8009_v31  ;;  %v8013_v31 = vld [vmem:[%s11093_s3 + $0x100] sm:$0xff]  }
 0x17b   :  { %7375 = vmatprep.subr.bf16.mxu0 %v8010_v11  ;;  %7383 = vmatprep.subr.bf16.mxu1 %v8012_v14  ;;  %v2121_v11 = vadd.f32 %v2104_v62, %v2058_v13 }
 0x17e   :  { %7376 = vmatpush3.bf16.msra.mxu0 %v8011_v54 }
 0x17f   :  { %7405 = vmatprep.subr.bf16.mxu0 %v8014_v15 }
 0x1a6   :  { %v7832_v21 = vpop.permute.xlu1 %7831 }
 0x1a7   :  { %v7834_v27 = vunpack.i.h.bf16 %v7832_v21  ;;  %v7833_v19 = vunpack.i.l.bf16 %v7832_v21 }
 0x1a9   :  { %v251_v30 = vsel %vm122_vm0, %v7833_v19, %v7834_v27 }
 0x1aa   :  { %v2152_v3 = vpop.permute.xlu1 %2151  ;;  %v268_v56 = vmax.f32 %v8871_v52, %v251_v30  ;;  %v2057_v52 = vmul.f32 %v9263_v48, %v9252_v26  ;;  %v8017_v30 = vld [vmem:[%s11093_s3 + $0x108] sm:$0xff]  }
 0x1ab   :  { %v2166_v63 = vsel %vm186_vm1, %v2150_v45, %v2152_v3 }
 0x1ac   :  { %v277_v43 = vmax.f32 %v268_v56, 0.0  ;;  %v2120_v4 = vadd.f32 %v2103_v53, %v2057_v52 }
 0x1ae   :  { %v2148_v32 = vpop.permute.xlu1 %2147  ;;  %v286_v29 = vpack.c.bf16 %v277_v43, %v277_v43  ;;  %v2183_v14 = vadd.f32 %v2166_v63, %v2120_v4  ;;  %v2060_v43 = vmul.f32 %v9015_v49, %v9252_v26  ;;  %v8026_v4 = vld [vmem:[%s11093_s3 + $0x1d8] sm:$0xff]  }
 0x1af   :  { %v2165_v36 = vsel %vm186_vm1, %v2148_v32, %v2150_v45  ;;  %v7837_v39 = vpop.permute.xlu0 %7836  ;;  %v8019_v32 = vld [vmem:[%s11093_s3 + $0x150] sm:$0xff]  }
 0x1b0   :  { %v2182_v40 = vadd.f32 %v2165_v36, %v2119_v51  ;;  %v7839_v42 = vunpack.i.h.bf16 %v7837_v39  ;;  %v7838_v47 = vunpack.i.l.bf16 %v7837_v39  ;;  %1883 = vmatprep.mubr.bf16.mxu1 %v286_v29 }
 0x1b2   :  { %v252_v44 = vsel %vm122_vm0, %v7834_v27, %v7839_v42  ;;  %v250_v17 = vsel %vm122_vm0, %v7838_v47, %v7833_v19  ;;  %v9275_v55 = vadd.f32 %v9267_v10, %v2182_v40  ;;  %v9297_v7 = vpop.permute.xlu1 %2094  ;;  %v8016_v27 = vld [vmem:[%s11093_s3 + $0x180] sm:$0xff]   ;;  %v2059_v19 = vmul.f32 %v8984_v1, %v9252_v26  ;;  %v8020_v40 = vld [vmem:[%s11093_s3 + $0x188] sm:$0xff]  }
 0x1b3   :  { %v269_v2 = vmax.f32 %v8874_v41, %v252_v44  ;;  %v267_v9 = vmax.f32 %v8918_v8, %v250_v17  ;;  %v9286_v12 = vpop.permute.xlu0 %240  ;;  %v3055_v44 = vmul.f32 %v9263_v48, %v9269_v50  ;;  %v8023_v17 = vld [vmem:[%s11093_s3 + $0x158] sm:$0xff]  }
 0x1b4   :  { %v253_v38 = vsel %vm122_vm0, %v7839_v42, %v9286_v12  ;;  %2210 = vrot.lane.b32.xlu1 %v9275_v55, %s8371_s11  ;;  %v8022_v42 = vld [vmem:[%s11093_s3 + $0x1d0] sm:$0xff]  }
 0x1b5   :  { %v276_v41 = vmax.f32 %v267_v9, 0.0  ;;  %v270_v8 = vmax.f32 %v8921_v25, %v253_v38  ;;  %v278_v22 = vmax.f32 %v269_v2, 0.0  ;;  %v8024_v38 = vld [vmem:[%s11093_s3 + $0x190] sm:$0xff]  }
 0x1b6   :  { %v9322_v56 = vpop.permute.xlu1 %2157 }
 0x1b7   :  { %v279_v54 = vmax.f32 %v270_v8, 0.0  ;;  %v2154_v15 = vpop.permute.xlu0 %2153  ;;  %v285_v20 = vpack.c.bf16 %v276_v41, %v276_v41  ;;  %v287_v45 = vpack.c.bf16 %v278_v22, %v278_v22 }
 0x1b8   :  { %v2167_v23 = vsel %vm186_vm1, %v2152_v3, %v2154_v15  ;;  %3076 = vrot.lane.b32.xlu1 %v3056_v0, %s8371_s11  ;;  %v9320_v3 = vadd.f32 %v9267_v10, %v2183_v14  ;;  %v8025_v0 = vld [vmem:[%s11093_s3 + $0x118] sm:$0xff]  }
 0x1b9   :  { %v288_v21 = vpack.c.bf16 %v279_v54, %v279_v54  ;;  %v2184_v25 = vadd.f32 %v2167_v23, %v2121_v11  ;;  %1884 = vmatmul.mubr.bf16.vlgmr.msra.gmra.mrb[8].mxu1 %v285_v20  ;;  %v8027_v54 = vld [vmem:[%s11093_s3 + $0x160] sm:$0xff]   ;;  %v8028_v23 = vld [vmem:[%s11093_s3 + $0x198] sm:$0xff]  }
 0x1ba   :  { %7384 = vmatpush3.bf16.msra.mxu1 %v8013_v31  ;;  %v2097_v9 = vpop.permute.xlu1 %2096  ;;  %v3057_v31 = vmul.f32 %v8984_v1, %v9269_v50 }
 0x1bb   :  { %v9325_v24 = vadd.f32 %v9267_v10, %v2184_v25  ;;  %v2093_v51 = vpop.permute.xlu0 %2092  ;;  %1923 = vmatprep.mubr.bf16.mxu0 %v288_v21  ;;  %7385 = vmatprep.subr.bf16.mxu1 %v8015_v58 }
 0x1bc   :  { %v2105_v29 = vsel %vm122_vm0, %v9250_v18, %v2093_v51  ;;  %v2106_v36 = vsel %vm122_vm0, %v2093_v51, %v9297_v7  ;;  %1924 = vmatmul.mubr.bf16.vlgmr.msra.gmra.mrb[12].mxu0 %v287_v45  ;;  %v8021_v18 = vld [vmem:[%s11093_s3 + $0x110] sm:$0xff]  }
 0x1bd   :  { %7406 = vmatpush3.bf16.msra.mxu0 %v8016_v27  ;;  %v7850_v39 = vpack.i.bf16 %v9325_v24, %v9320_v3  ;;  %v2122_v47 = vadd.f32 %v2105_v29, %v2059_v19  ;;  %v2123_v52 = vadd.f32 %v2106_v36, %v2060_v43  ;;  %v8029_v27 = vld [vmem:[%s11093_s3 + $0x120] sm:$0xff]   ;;  %v9420_v36 = vld [vmem:[%s11090_s0 + $0x28] sm:$0xff] }
 0x1be   :  { %7386 = vmatpush3.bf16.msra.mxu1 %v8017_v30  ;;  %7407 = vmatprep.subr.bf16.mxu0 %v8018_v16  ;;  %v8030_v19 = vld [vmem:[%s11093_s3 + $0x1e0] sm:$0xff]   ;;  %v3054_v16 = vmul.f32 %v8913_v6, %v9269_v50 }
 0x1bf   :  { %7851 = vrot.lane.b32.xlu0 %v7850_v39, %s8371_s11  ;;  %v2156_v53 = vpop.permute.xlu0 %2155  ;;  %7387 = vmatprep.subr.bf16.mxu1 %v8019_v32  ;;  %v8031_v32 = vld [vmem:[%s11093_s3 + $0x168] sm:$0xff]   ;;  %v2061_v39 = vmul.f32 %v9420_v36, %v9252_v26 }
 0x1c0   :  { %v2168_v13 = vsel %vm186_vm1, %v2154_v15, %v2156_v53  ;;  %v2169_v2 = vsel %vm186_vm1, %v2156_v53, %v9322_v56  ;;  %v9384_v15 = vstv %s9336_s28  ;;  %v8034_v53 = vld [vmem:[%s11093_s3 + $0x1e8] sm:$0xff]   ;;  %s9710_s28 = sld [smem:[#allocation2 + $0xd]] }
 0x1c1   :  { %v2185_v62 = vadd.f32 %v2168_v13, %v2122_v47  ;;  %v2186_v63 = vadd.f32 %v2169_v2, %v2123_v52  ;;  %7408 = vmatpush3.bf16.msra.mxu0 %v8020_v40  ;;  %v3118_v43 = vmul.f32 %v9263_v48, %v9384_v15  ;;  %v8032_v40 = vld [vmem:[%s11093_s3 + $0x1a0] sm:$0xff]   ;;  %v8033_v47 = vld [vmem:[%s11093_s3 + $0x128] sm:$0xff]   ;;  %v3119_v52 = vmul.f32 %v9280_v37, %v9384_v15 }
 0x1c2   :  { %7388 = vmatpush3.bf16.msra.mxu1 %v8021_v18  ;;  %7409 = vmatprep.subr.bf16.mxu0 %v8022_v42 }
 0x1c3   :  { %v9368_v41 = vadd.f32 %v9267_v10, %v2185_v62  ;;  %v9371_v8 = vadd.f32 %v9267_v10, %v2186_v63  ;;  %3074 = vrot.lane.b32.xlu0 %v3055_v44, %s8371_s11  ;;  %v9374_v22 = vpop.permute.xlu0 %7841  ;;  %7389 = vmatprep.subr.bf16.mxu1 %v8023_v17  ;;  %v3120_v62 = vmul.f32 %v8984_v1, %v9384_v15 }
 0x1c4   :  { %v7844_v11 = vunpack.i.h.bf16 %v9374_v22  ;;  %v7843_v14 = vunpack.i.l.bf16 %v9374_v22  ;;  %v3117_v63 = vmul.f32 %v8913_v6, %v9384_v15  ;;  %v8036_v6 = vld [vmem:[%s11093_s3 + $0x1a8] sm:$0xff]   ;;  %v2063_v1 = vmul.f32 %v9091_v5, %v9252_v26 }
 0x1c5   :  { %7410 = vmatpush3.bf16.msra.mxu0 %v8024_v38  ;;  %v9386_v20 = vpop.permute.xlu1 %7846  ;;  %v7855_v58 = vpack.i.bf16 %v9371_v8, %v9368_v41  ;;  %v2107_v38 = vsel %vm122_vm0, %v9297_v7, %v2097_v9 }
 0x1c6   :  { %v7849_v21 = vunpack.i.h.bf16 %v9386_v20  ;;  %v7848_v25 = vunpack.i.l.bf16 %v9386_v20  ;;  %7390 = vmatpush3.bf16.msra.mxu1 %v8025_v0  ;;  %7411 = vmatprep.subr.bf16.mxu0 %v8026_v4  ;;  %v255_v45 = vsel %vm122_vm0, %v7843_v14, %v7844_v11  ;;  %v254_v0 = vsel %vm122_vm0, %v9286_v12, %v7843_v14  ;;  %v8035_v4 = vld [vmem:[%s11093_s3 + $0x170] sm:$0xff]  }
 0x1c7   :  { %3078 = vrot.lane.b32.xlu0 %v3057_v31, %s8371_s11  ;;  %7856 = vrot.lane.b32.xlu1 %v7855_v58, %s8371_s11  ;;  %v2099_v30 = vpop.permute.xlu0 %2098  ;;  %v272_v51 = vmax.f32 %v9059_v59, %v255_v45  ;;  %v2062_v59 = vmul.f32 %v9113_v33, %v9252_v26  ;;  %v3058_v31 = vmul.f32 %v9015_v49, %v9269_v50  ;;  %v8037_v58 = vld [vmem:[%s11093_s3 + $0x130] sm:$0xff]   ;;  %v8039_v45 = vld [vmem:[%s11093_s3 + $0x178] sm:$0xff]  }
 0x1c8   :  { %7391 = vmatprep.subr.bf16.mxu1 %v8027_v54  ;;  %v257_v29 = vsel %vm122_vm0, %v7848_v25, %v7849_v21  ;;  %v2108_v42 = vsel %vm122_vm0, %v2097_v9, %v2099_v30  ;;  %v2064_v12 = vmul.f32 %v9135_v46, %v9252_v26  ;;  %v256_v26 = vsel %vm122_vm0, %v7844_v11, %v7848_v25  ;;  %v8041_v25 = vld [vmem:[%s11093_s3 + $0x138] sm:$0xff]  }
 0x1c9   :  { %7412 = vmatpush3.bf16.msra.mxu0 %v8028_v23  ;;  %v281_v18 = vmax.f32 %v272_v51, 0.0  ;;  %v274_v44 = vmax.f32 %v9066_v61, %v257_v29  ;;  %v2162_v17 = vpop.permute.xlu1 %2161  ;;  %v2125_v54 = vadd.f32 %v2108_v42, %v2062_v59  ;;  %v8038_v23 = vld [vmem:[%s11093_s3 + $0x1f0] sm:$0xff]   ;;  %v273_v11 = vmax.f32 %v9043_v34, %v256_v26  ;;  %v8049_v26 = vld [vmem:[%s11093_s3 + $0x228] sm:$0xff]  }
 0x1ca   :  { %7392 = vmatpush3.bf16.msra.mxu1 %v8029_v27  ;;  %7413 = vmatprep.subr.bf16.mxu0 %v8030_v19  ;;  %v2124_v27 = vadd.f32 %v2107_v38, %v2061_v39  ;;  %v271_v19 = vmax.f32 %v8957_v57, %v254_v0  ;;  %v8040_v57 = vld [vmem:[%s11093_s3 + $0x1b0] sm:$0xff]   ;;  %v3121_v34 = vmul.f32 %v9015_v49, %v9384_v15  ;;  %v8044_v49 = vld [vmem:[%s11093_s3 + $0x200] sm:$0xff]   ;;  %v8045_v38 = vld [vmem:[%s11093_s3 + $0x208] sm:$0xff]  }
 0x1cb   :  { %3072 = vrot.lane.b32.xlu0 %v3054_v16, %s8371_s11  ;;  %3137 = vrot.lane.b32.xlu1 %v3118_v43, %s8372_s16  ;;  %v2160_v13 = vpop.permute.xlu0 %2159  ;;  %v290_v2 = vpack.c.bf16 %v281_v18, %v281_v18  ;;  %v283_v61 = vmax.f32 %v274_v44, 0.0  ;;  %v3060_v0 = vmul.f32 %v9113_v33, %v9269_v50 }
 0x1cc   :  { %7393 = vmatprep.subr.bf16.mxu1 %v8031_v32  ;;  %v2170_v7 = vsel %vm186_vm1, %v9322_v56, %v2160_v13  ;;  %v2171_v9 = vsel %vm186_vm1, %v2160_v13, %v2162_v17  ;;  %v3059_v32 = vmul.f32 %v9420_v36, %v9269_v50  ;;  %v280_v29 = vmax.f32 %v271_v19, 0.0  ;;  %v8048_v19 = vld [vmem:[%s11093_s3 + $0x220] sm:$0xff]  }
 0x1cd   :  { %7414 = vmatpush3.bf16.msra.mxu0 %v8032_v40  ;;  %1963 = vmatprep.mubr.bf16.mxu1 %v290_v2  ;;  %v292_v14 = vpack.c.bf16 %v283_v61, %v283_v61  ;;  %v2187_v43 = vadd.f32 %v2170_v7, %v2124_v27  ;;  %v2188_v51 = vadd.f32 %v2171_v9, %v2125_v54  ;;  %v2164_v22 = vpop.permute.xlu1 %2163  ;;  %v8051_v61 = vld [vmem:[%s11093_s3 + $0x460] sm:$0xff]   ;;  %v8054_v9 = vld [vmem:[%s11093_s3 + $0x4b0] sm:$0xff]   ;;  %v8058_v27 = vld [vmem:[%s11093_s3 + $0x4b8] sm:$0xff]  }
 0x1ce   :  { %7394 = vmatpush3.bf16.msra.mxu1 %v8033_v47  ;;  %7415 = vmatprep.subr.bf16.mxu0 %v8034_v53  ;;  %v2172_v40 = vsel %vm186_vm1, %v2162_v17, %v2164_v22  ;;  %v8043_v47 = vld [vmem:[%s11093_s3 + $0x1b8] sm:$0xff]   ;;  %v3122_v53 = vmul.f32 %v9420_v36, %v9384_v15  ;;  %v289_v44 = vpack.c.bf16 %v280_v29, %v280_v29  ;;  %v8065_v29 = vld [vmem:[%s11093_s3 + $0x4f0] sm:$0xff]  }
 0x1cf   :  { %3139 = vrot.lane.b32.xlu0 %v3119_v52, %s8372_s16  ;;  %3141 = vrot.lane.b32.xlu1 %v3120_v62, %s8372_s16  ;;  %v2101_v56 = vpop.permute.xlu0 %2100  ;;  %v9498_v18 = vadd.f32 %v9267_v10, %v2187_v43  ;;  %v9501_v42 = vadd.f32 %v9267_v10, %v2188_v51  ;;  %v282_v52 = vmax.f32 %v273_v11, 0.0  ;;  %v8050_v62 = vld [vmem:[%s11093_s3 + $0x4a0] sm:$0xff]   ;;  %v3061_v54 = vmul.f32 %v9091_v5, %v9269_v50  ;;  %v8068_v43 = vld [vmem:[%s11093_s3 + $0x488] sm:$0xff]  }
 0x1d0   :  { %2003 = vmatprep.mubr.bf16.mxu0 %v292_v14  ;;  %7395 = vmatprep.subr.bf16.mxu1 %v8035_v4  ;;  %v2109_v16 = vsel %vm122_vm0, %v2099_v30, %v2101_v56  ;;  %v8042_v30 = vld [vmem:[%s11093_s3 + $0x1f8] sm:$0xff]   ;;  %v2127_v59 = vadd.f32 %v2101_v56, %v2064_v12  ;;  %v3123_v12 = vmul.f32 %v9113_v33, %v9384_v15  ;;  %v8056_v33 = vld [vmem:[%s11093_s3 + $0x470] sm:$0xff]   ;;  %v8061_v11 = vld [vmem:[%s11093_s3 + $0x4e8] sm:$0xff]  }
 0x1d1   :  { %7416 = vmatpush3.bf16.msra.mxu0 %v8036_v6  ;;  %v2126_v39 = vadd.f32 %v2109_v16, %v2063_v1  ;;  %v7860_v2 = vpack.i.bf16 %v9501_v42, %v9498_v18  ;;  %v8052_v6 = vld [vmem:[%s11093_s3 + $0x4a8] sm:$0xff]   ;;  %v8047_v14 = vld [vmem:[%s11093_s3 + $0x218] sm:$0xff]   ;;  %v3125_v56 = vmul.f32 %v9135_v46, %v9384_v15  ;;  %v1849_v16 = vand.u32 %v8049_v26, %v9130_v28 }
 0x1d2   :  { %7396 = vmatpush3.bf16.msra.mxu1 %v8037_v58  ;;  %7417 = vmatprep.subr.bf16.mxu0 %v8038_v23  ;;  %v2190_v13 = vadd.f32 %v2164_v22, %v2127_v59  ;;  %v8053_v1 = vld [vmem:[%s11093_s3 + $0x468] sm:$0xff]   ;;  %v3124_v58 = vmul.f32 %v9091_v5, %v9384_v15  ;;  %v3062_v23 = vmul.f32 %v9135_v46, %v9269_v50  ;;  %v8060_v5 = vld [vmem:[%s11093_s3 + $0x478] sm:$0xff]   ;;  %v8055_v46 = vld [vmem:[%s11093_s3 + $0x520] sm:$0xff]  }
 0x1d3   :  { %3135 = vrot.lane.b32.xlu0 %v3117_v63, %s8372_s16  ;;  %3080 = vrot.lane.b32.xlu1 %v3058_v31, %s8371_s11  ;;  %v2189_v17 = vadd.f32 %v2172_v40, %v2126_v39  ;;  %v291_v63 = vpack.c.bf16 %v282_v52, %v282_v52  ;;  %v275_v50 = vmax.f32 %v9062_v60, %v7849_v21  ;;  %v8064_v60 = vld [vmem:[%s11093_s3 + $0x480] sm:$0xff]   ;;  %v8066_v15 = vld [vmem:[%s11093_s3 + $0x4c8] sm:$0xff]  }
 0x1d4   :  { %7397 = vmatprep.subr.bf16.mxu1 %v8039_v45  ;;  %v9533_v31 = vadd.f32 %v9267_v10, %v2190_v13  ;;  %v8062_v45 = vld [vmem:[%s11093_s3 + $0x4c0] sm:$0xff]   ;;  %v8070_v22 = vld [vmem:[%s11093_s3 + $0x4d0] sm:$0xff]   ;;  %v8067_v39 = vld [vmem:[%s11093_s3 + $0x538] sm:$0xff]  }
 0x1d5   :  { %7418 = vmatpush3.bf16.msra.mxu0 %v8040_v57  ;;  %v9530_v4 = vadd.f32 %v9267_v10, %v2189_v17  ;;  %v8046_v10 = vld [vmem:[%s11093_s3 + $0x210] sm:$0xff]   ;;  %v284_v20 = vmax.f32 %v275_v50, 0.0  ;;  %v8057_v21 = vld [vmem:[%s11093_s3 + $0x4e0] sm:$0xff]   ;;  %v8059_v57 = vld [vmem:[%s11093_s3 + $0x528] sm:$0xff]  }
 0x1d6   :  { %7398 = vmatpush3.bf16.msra.mxu1 %v8041_v25  ;;  %7419 = vmatprep.subr.bf16.mxu0 %v8042_v30  ;;  %v8072_v25 = vld [vmem:[%s11093_s3 + $0x490] sm:$0xff]   ;;  %v8074_v30 = vld [vmem:[%s11093_s3 + $0x4d8] sm:$0xff]   ;;  %v8079_v59 = vld [vmem:[%s11093_s3 + $0x5a0] sm:$0xff]  }
 0x1d7   :  { %3082 = vrot.lane.b32.xlu0 %v3059_v32, %s8371_s11  ;;  %3143 = vrot.lane.b32.xlu1 %v3121_v34, %s8372_s16  ;;  %v7865_v7 = vpack.i.bf16 %v9533_v31, %v9530_v4  ;;  %v293_v51 = vpack.c.bf16 %v284_v20, %v284_v20  ;;  %v8063_v32 = vld [vmem:[%s11093_s3 + $0x530] sm:$0xff]   ;;  %v8076_v34 = vld [vmem:[%s11093_s3 + $0x498] sm:$0xff]  }
 0x1d8   :  { %7735 = vmatprep.subr.bf16.mxu1 %v8373_v35  ;;  %v8069_v40 = vld [vmem:[%s11093_s3 + $0x4f8] sm:$0xff]   ;;  %v8073_v17 = vld [vmem:[%s11093_s3 + $0x500] sm:$0xff]  }
 0x1d9   :  { %1964 = vmatmul.mubr.bf16.vlgmr.msra.gmra.mrb[12].mxu1 %v289_v44  ;;  %7420 = vmatpush3.bf16.msra.mxu0 %v8043_v47  ;;  %v8071_v47 = vld [vmem:[%s11093_s3 + $0x540] sm:$0xff]  }
 0x1da   :  { %7736 = vmatpush3.bf16.msra.mxu1 %v8044_v49  ;;  %7747 = vmatprep.mubr.msk.bf16.mxu1 %vm8374_vm2, %v8373_v35 }
 0x1db   :  { %3145 = vrot.lane.b32.xlu0 %v3122_v53, %s8372_s16  ;;  %7861 = vrot.lane.b32.xlu1 %v7860_v2, %s8371_s11  ;;  %v8075_v2 = vld [vmem:[%s11093_s3 + $0x548] sm:$0xff]  }
 0x1dc   :  { %2004 = vmatmul.mubr.bf16.vlgmr.msra.gmra.mrb[16].mxu0 %v291_v63  ;;  %7737 = vmatprep.subr.bf16.mxu1 %v8373_v35  ;;  %v8078_v63 = vld [vmem:[%s11093_s3 + $0x550] sm:$0xff]  }
 0x1dd   :  { %7434 = vmatprep.subr.bf16.mxu0 %v8050_v62  ;;  %v8077_v62 = vld [vmem:[%s11093_s3 + $0x508] sm:$0xff]  }
 0x1de   :  { %7738 = vmatpush3.bf16.msra.mxu1 %v8045_v38  ;;  %7435 = vmatpush3.bf16.msra.mxu0 %v8051_v61  ;;  %v8080_v38 = vld [vmem:[%s11093_s3 + $0x510] sm:$0xff]   ;;  %v8084_v61 = vld [vmem:[%s11093_s3 + $0x518] sm:$0xff]  }
 0x1df   :  { %3084 = vrot.lane.b32.xlu0 %v3060_v0, %s8371_s11  ;;  %3086 = vrot.lane.b32.xlu1 %v3061_v54, %s8371_s11  ;;  %v8082_v0 = vld [vmem:[%s11093_s3 + $0x558] sm:$0xff]   ;;  %v8087_v54 = vld [vmem:[%s11093_s3 + $0x620] sm:$0xff]  }
 0x1e0   :  { %7739 = vmatprep.subr.bf16.mxu1 %v8373_v35  ;;  %7436 = vmatprep.subr.bf16.mxu0 %v8052_v6 }
 0x1e2   :  { %7740 = vmatpush3.bf16.msra.mxu1 %v8046_v10  ;;  %7437 = vmatpush3.bf16.msra.mxu0 %v8053_v1 }
 0x1e3   :  { %3147 = vrot.lane.b32.xlu1 %v3123_v12, %s8372_s16  ;;  %7866 = vrot.lane.b32.xlu0 %v7865_v7, %s8371_s11 }
 0x1e4   :  { %7741 = vmatprep.subr.bf16.mxu1 %v8373_v35  ;;  %7438 = vmatprep.subr.bf16.mxu0 %v8054_v9 }
 0x1e6   :  { %7742 = vmatpush3.bf16.msra.mxu1 %v8047_v14  ;;  %7439 = vmatpush3.bf16.msra.mxu0 %v8056_v33 }
 0x1e7   :  { %3149 = vrot.lane.b32.xlu0 %v3124_v58, %s8372_s16  ;;  %7743 = vmatprep.subr.bf16.mxu1 %v8373_v35 }
 0x1e8   :  { %3088 = vrot.lane.b32.xlu1 %v3062_v23, %s8371_s11  ;;  %7440 = vmatprep.subr.bf16.mxu0 %v8058_v27 }
 0x1ea   :  { %7744 = vmatpush3.bf16.msra.mxu1 %v8048_v19  ;;  %7441 = vmatpush3.bf16.msra.mxu0 %v8060_v5 }
 0x1eb   :  { %7745 = vmatprep.subr.bf16.mxu1 %v8373_v35  ;;  %3151 = vrot.lane.b32.xlu0 %v3125_v56, %s8372_s16 }
 0x1ec   :  { %7442 = vmatprep.subr.bf16.mxu0 %v8062_v45 }
 0x1ee   :  { %7746 = vmatpush3.bf16.msra.mxu1 %v1849_v16  ;;  %7443 = vmatpush3.bf16.msra.mxu0 %v8064_v60 }
 0x1ef   :  { %7456 = vmatprep.subr.bf16.mxu1 %v8055_v46  ;;  %7444 = vmatprep.subr.bf16.mxu0 %v8066_v15 }
 0x1f1   :  { %7748 = vmatmul.mubr.msk.bf16.vlgmr.msra.gmra.mrb[16].mxu1 %vm1215_vm5, %v293_v51 }
 0x1f2   :  { %7457 = vmatpush3.bf16.msra.mxu1 %v8057_v21  ;;  %7445 = vmatpush3.bf16.msra.mxu0 %v8068_v43 }
 0x1f3   :  { %7458 = vmatprep.subr.bf16.mxu1 %v8059_v57  ;;  %7446 = vmatprep.subr.bf16.mxu0 %v8070_v22 }
 0x1f6   :  { %7459 = vmatpush3.bf16.msra.mxu1 %v8061_v11  ;;  %7447 = vmatpush3.bf16.msra.mxu0 %v8072_v25 }
 0x1f7   :  { %7460 = vmatprep.subr.bf16.mxu1 %v8063_v32  ;;  %7448 = vmatprep.subr.bf16.mxu0 %v8074_v30 }
 0x1fa   :  { %7461 = vmatpush3.bf16.msra.mxu1 %v8065_v29  ;;  %7449 = vmatpush3.bf16.msra.mxu0 %v8076_v34 }
 0x1fb   :  { %7462 = vmatprep.subr.bf16.mxu1 %v8067_v39  ;;  %7478 = vmatprep.subr.bf16.mxu0 %v8079_v59 }
 0x1fc   :  { %v7260_v52 = vpop.f32.mrb[0].mxu0 }
 0x1fd   :  { %v7261_v49 = vpop.f32.mrb[1].mxu0 }
 0x1fe   :  { %v7262_v53 = vadd.f32 %v7261_v49, %v7260_v52  ;;  %v7263_v44 = vpop.f32.mrb[2].mxu0  ;;  %7463 = vmatpush3.bf16.msra.mxu1 %v8069_v40 }
 0x1ff   :  { %v7264_v13 = vpop.f32.mrb[3].mxu0  ;;  %7464 = vmatprep.subr.bf16.mxu1 %v8071_v47 }
 0x202   :  { %7465 = vmatpush3.bf16.msra.mxu1 %v8073_v17  ;;  %v8083_v17 = vld [vmem:[%s11093_s3 + $0x5a8] sm:$0xff]  }
 0x203   :  { %7466 = vmatprep.subr.bf16.mxu1 %v8075_v2 }
 0x206   :  { %7467 = vmatpush3.bf16.msra.mxu1 %v8077_v62 }
 0x207   :  { %7468 = vmatprep.subr.bf16.mxu1 %v8078_v63 }
 0x20a   :  { %7469 = vmatpush3.bf16.msra.mxu1 %v8080_v38 }
 0x20b   :  { %7470 = vmatprep.subr.bf16.mxu1 %v8082_v0 }
 0x20e   :  { %7471 = vmatpush3.bf16.msra.mxu1 %v8084_v61 }
 0x20f   :  { %7500 = vmatprep.subr.bf16.mxu1 %v8087_v54  ;;  %v8085_v54 = vld [vmem:[%s11093_s3 + $0x568] sm:$0xff]  }
 0x210   :  { %v7282_v6 = vpop.f32.mrb[0].mxu1 }
 0x211   :  { %v7283_v10 = vpop.f32.mrb[1].mxu1 }
 0x212   :  { %v7284_v1 = vadd.f32 %v7283_v10, %v7282_v6  ;;  %v7285_v12 = vpop.f32.mrb[2].mxu1 }
 0x213   :  { %v7286_v7 = vpop.f32.mrb[3].mxu1 }
 0x214   :  { %v1301_v9 = vadd.f32 %v7284_v1, %v7262_v53  ;;  %v8081_v53 = vld [vmem:[%s11093_s3 + $0x560] sm:$0xff]  }
 0x21c   :  { %v7304_v14 = vpop.f32.mrb[4].mxu0 }
 0x21d   :  { %v7305_v33 = vpop.f32.mrb[5].mxu0 }
 0x21e   :  { %v7306_v58 = vadd.f32 %v7305_v33, %v7304_v14  ;;  %v7307_v23 = vpop.f32.mrb[6].mxu0 }
 0x21f   :  { %v7308_v27 = vpop.f32.mrb[7].mxu0 }
 0x220   :  { %v1341_v19 = vadd.f32 %v7306_v58, %v1301_v9  ;;  %v8088_v27 = vld [vmem:[%s11093_s3 + $0x570] sm:$0xff]  }
 0x226   :  { %v2211_v26 = vpop.permute.xlu1 %2210 }
 0x22a   :  { %v3077_v15 = vpop.permute.xlu1 %3076 }
 0x230   :  { %v7326_v5 = vpop.f32.mrb[4].mxu1 }
 0x231   :  { %v7327_v50 = vpop.f32.mrb[5].mxu1  ;;  %v7852_v56 = vpop.permute.xlu0 %7851 }
 0x232   :  { %v7328_v45 = vadd.f32 %v7327_v50, %v7326_v5  ;;  %v7854_v16 = vunpack.i.h.bf16 %v7852_v56  ;;  %v7853_v60 = vunpack.i.l.bf16 %v7852_v56  ;;  %v7329_v20 = vpop.f32.mrb[6].mxu1  ;;  %v8090_v56 = vld [vmem:[%s11093_s3 + $0x5b8] sm:$0xff]  }
 0x233   :  { %v7330_v46 = vpop.f32.mrb[7].mxu1 }
 0x234   :  { %v2228_v21 = vsel %vm122_vm0, %v2211_v26, %v7853_v60  ;;  %v1381_v43 = vadd.f32 %v7328_v45, %v1341_v19  ;;  %v1420_v51 = vpop.f32.mrb[8].mxu0  ;;  %v2229_v57 = vsel %vm122_vm0, %v7853_v60, %v7854_v16  ;;  %v8089_v19 = vld [vmem:[%s11093_s3 + $0x5e0] sm:$0xff]   ;;  %v9718_v26 = vstv %s6683_s22  ;;  %v8091_v45 = vld [vmem:[%s11093_s3 + $0x628] sm:$0xff]  }
 0x235   :  { %v2245_v22 = vmax.f32 %v9275_v55, %v2228_v21  ;;  %v7733_v11 = vpop.f32.mrb[9].mxu0  ;;  %v3075_v25 = vpop.permute.xlu0 %3074  ;;  %v2246_v32 = vmax.f32 %v9320_v3, %v2229_v57  ;;  %v9685_v55 = vstv %s6680_s19 }
 0x236   :  { %v9678_v30 = vadd.f32 %v1420_v51, %v1381_v43  ;;  %v1423_v29 = vpop.f32.mrb[10].mxu0  ;;  %v3045_v62 = vmul.f32 %v9263_v48, %v9685_v55  ;;  %v3046_v38 = vmul.f32 %v9280_v37, %v9685_v55  ;;  %v3091_v10 = vsel %vm122_vm0, %v3075_v25, %v3077_v15  ;;  %v9745_v51 = vld [vmem:[%s11090_s0 + $0x18] sm:$0xff] }
 0x237   :  { %v2254_v34 = vmax.f32 %v2245_v22, 0.0  ;;  %v7734_v39 = vpop.f32.mrb[11].mxu0  ;;  %v2255_v59 = vmax.f32 %v2246_v32, 0.0  ;;  %v3047_v57 = vmul.f32 %v9745_v51, %v9685_v55  ;;  %v8093_v32 = vld [vmem:[%s11093_s3 + $0x5e8] sm:$0xff]  }
 0x238   :  { %v3108_v9 = vadd.f32 %v3091_v10, %v3045_v62  ;;  %v8094_v39 = vld [vmem:[%s11093_s3 + $0x5c0] sm:$0xff]   ;;  %v8097_v62 = vld [vmem:[%s11093_s3 + $0x5f0] sm:$0xff]  }
 0x239   :  { %v9680_v40 = vpop.permute.xlu1 %7856  ;;  %v3079_v47 = vpop.permute.xlu0 %3078  ;;  %v2264_v52 = vpack.c.bf16 %v2255_v59, %v2255_v59  ;;  %v2263_v49 = vpack.c.bf16 %v2254_v34, %v2254_v34 }
 0x23a   :  { %v7859_v44 = vunpack.i.h.bf16 %v9680_v40  ;;  %v7858_v3 = vunpack.i.l.bf16 %v9680_v40  ;;  %v3092_v1 = vsel %vm122_vm0, %v3077_v15, %v3079_v47  ;;  %v8105_v40 = vld [vmem:[%s11093_s3 + $0x600] sm:$0xff]  }
 0x23b   :  { %2870 = vmatprep.mubr.bf16.mxu0 %v2264_v52  ;;  %v3109_v14 = vadd.f32 %v3092_v1, %v3046_v38 }
 0x23c   :  { %v2230_v13 = vsel %vm122_vm0, %v7854_v16, %v7858_v3  ;;  %2871 = vmatmul.mubr.bf16.vlgmr.msra.gmra.mrb[20].mxu0 %v2263_v49  ;;  %v2231_v2 = vsel %vm122_vm0, %v7858_v3, %v7859_v44  ;;  %v9731_v16 = vld [vmem:[%s11090_s0] sm:$0xff]  ;;  %v8095_v49 = vld [vmem:[%s11093_s3 + $0x630] sm:$0xff]  }
 0x23d   :  { %v2247_v63 = vmax.f32 %v9325_v24, %v2230_v13  ;;  %7479 = vmatpush3.bf16.msra.mxu0 %v8081_v53  ;;  %v3138_v0 = vpop.permute.xlu1 %3137  ;;  %v3073_v61 = vpop.permute.xlu0 %3072  ;;  %v2248_v6 = vmax.f32 %v9368_v41, %v2231_v2  ;;  %v8086_v24 = vld [vmem:[%s11093_s3 + $0x5b0] sm:$0xff]   ;;  %v3044_v60 = vmul.f32 %v9731_v16, %v9685_v55  ;;  %v9766_v53 = vstv %s9710_s28  ;;  %v8096_v2 = vld [vmem:[%s11093_s3 + $0x580] sm:$0xff]   ;;  %s6898_s28 = sld [smem:[#allocation5 + $0x4]] }
 0x23e   :  { %7480 = vmatprep.subr.bf16.mxu0 %v8083_v17  ;;  %v3090_v15 = vsel %vm122_vm0, %v3073_v61, %v3075_v25  ;;  %v8092_v25 = vld [vmem:[%s11093_s3 + $0x578] sm:$0xff]   ;;  %v4043_v38 = vmul.f32 %v9263_v48, %v9766_v53 }
 0x23f   :  { %v2256_v12 = vmax.f32 %v2247_v63, 0.0  ;;  %v2257_v7 = vmax.f32 %v2248_v6, 0.0  ;;  %v3107_v59 = vadd.f32 %v3090_v15, %v3044_v60 }
 0x241   :  { %7481 = vmatpush3.bf16.msra.mxu0 %v8085_v54  ;;  %v3142_v33 = vpop.permute.xlu1 %3141  ;;  %v3140_v58 = vpop.permute.xlu0 %3139  ;;  %v2266_v23 = vpack.c.bf16 %v2257_v7, %v2257_v7  ;;  %v2265_v41 = vpack.c.bf16 %v2256_v12, %v2256_v12  ;;  %v8099_v54 = vld [vmem:[%s11093_s3 + $0x638] sm:$0xff]   ;;  %v8100_v12 = vld [vmem:[%s11093_s3 + $0x588] sm:$0xff]  }
 0x242   :  { %v3154_v5 = vsel %vm186_vm1, %v3138_v0, %v3140_v58  ;;  %v3155_v50 = vsel %vm186_vm1, %v3140_v58, %v3142_v33  ;;  %7482 = vmatprep.subr.bf16.mxu0 %v8086_v24  ;;  %v8101_v7 = vld [vmem:[%s11093_s3 + $0x5f8] sm:$0xff]  }
 0x243   :  { %v3171_v20 = vadd.f32 %v3154_v5, %v3108_v9  ;;  %v3172_v46 = vadd.f32 %v3155_v50, %v3109_v14  ;;  %2910 = vmatprep.mubr.bf16.mxu1 %v2266_v23  ;;  %v9805_v9 = vld [vmem:[%s11090_s0 + $0x20] sm:$0xff]  ;;  %v4045_v23 = vmul.f32 %v9745_v51, %v9766_v53 }
 0x244   :  { %2911 = vmatmul.mubr.bf16.vlgmr.msra.gmra.mrb[20].mxu1 %v2265_v41  ;;  %v3048_v14 = vmul.f32 %v9805_v9, %v9685_v55  ;;  %v8103_v5 = vld [vmem:[%s11093_s3 + $0x640] sm:$0xff]  }
 0x245   :  { %v9737_v21 = vadd.f32 %v9718_v26, %v3171_v20  ;;  %v9740_v43 = vadd.f32 %v9718_v26, %v3172_v46  ;;  %7483 = vmatpush3.bf16.msra.mxu0 %v8088_v27  ;;  %7501 = vmatpush3.bf16.msra.mxu1 %v8089_v19  ;;  %v3081_v22 = vpop.permute.xlu1 %3080  ;;  %v3136_v11 = vpop.permute.xlu0 %3135  ;;  %v8102_v19 = vld [vmem:[%s11093_s3 + $0x5d0] sm:$0xff]  }
 0x246   :  { %v3093_v29 = vsel %vm122_vm0, %v3079_v47, %v3081_v22  ;;  %v3153_v34 = vsel %vm186_vm1, %v3136_v11, %v3138_v0  ;;  %7484 = vmatprep.subr.bf16.mxu0 %v8090_v56  ;;  %7502 = vmatprep.subr.bf16.mxu1 %v8091_v45  ;;  %v8098_v0 = vld [vmem:[%s11093_s3 + $0x5c8] sm:$0xff]   ;;  %v8104_v46 = vld [vmem:[%s11093_s3 + $0x590] sm:$0xff]   ;;  %v4044_v11 = vmul.f32 %v9280_v37, %v9766_v53 }
 0x247   :  { %v7870_v52 = vpack.i.bf16 %v9740_v43, %v9737_v21  ;;  %v3110_v3 = vadd.f32 %v3093_v29, %v3047_v57  ;;  %v3170_v47 = vadd.f32 %v3153_v34, %v3107_v59  ;;  %v9850_v29 = vstv %s9786_s17  ;;  %v8108_v59 = vld [vmem:[%s11093_s3 + $0x598] sm:$0xff]  }
 0x249   :  { %7485 = vmatpush3.bf16.msra.mxu0 %v8092_v25  ;;  %7503 = vmatpush3.bf16.msra.mxu1 %v8093_v32  ;;  %v3144_v17 = vpop.permute.xlu1 %3143  ;;  %v9768_v13 = vpop.permute.xlu0 %3082  ;;  %v9789_v6 = vadd.f32 %v9718_v26, %v3170_v47  ;;  %v8106_v25 = vld [vmem:[%s11093_s3 + $0x5d8] sm:$0xff]  }
 0x24a   :  { %v3156_v63 = vsel %vm186_vm1, %v3142_v33, %v3144_v17  ;;  %7871 = vrot.lane.b32.xlu1 %v7870_v52, %s8371_s11  ;;  %7486 = vmatprep.subr.bf16.mxu0 %v8094_v39  ;;  %v3094_v41 = vsel %vm122_vm0, %v3081_v22, %v9768_v13  ;;  %v8109_v52 = vld [vmem:[%s11093_s3 + $0x608] sm:$0xff]  }
 0x24b   :  { %v3173_v61 = vadd.f32 %v3156_v63, %v3110_v3  ;;  %7504 = vmatprep.subr.bf16.mxu1 %v8095_v49  ;;  %v3111_v57 = vadd.f32 %v3094_v41, %v3048_v14  ;;  %v9895_v14 = vld [vmem:[%s11090_s0 + $0x38] sm:$0xff] }
 0x24d   :  { %v9792_v10 = vadd.f32 %v9718_v26, %v3173_v61  ;;  %7487 = vmatpush3.bf16.msra.mxu0 %v8096_v2  ;;  %7505 = vmatpush3.bf16.msra.mxu1 %v8097_v62  ;;  %v7862_v1 = vpop.permute.xlu1 %7861  ;;  %v9794_v24 = vpop.permute.xlu0 %3145  ;;  %v4107_v2 = vmul.f32 %v9280_v37, %v9850_v29  ;;  %v8110_v62 = vld [vmem:[%s11093_s3 + $0x650] sm:$0xff]  }
 0x24e   :  { %v7864_v33 = vunpack.i.h.bf16 %v7862_v1  ;;  %v7863_v58 = vunpack.i.l.bf16 %v7862_v1  ;;  %4062 = vrot.lane.b32.xlu1 %v4043_v38, %s8371_s11  ;;  %7488 = vmatprep.subr.bf16.mxu0 %v8098_v0  ;;  %v3157_v45 = vsel %vm186_vm1, %v3144_v17, %v9794_v24  ;;  %v4105_v0 = vmul.f32 %v9731_v16, %v9850_v29  ;;  %v8112_v1 = vld [vmem:[%s11093_s3 + $0x660] sm:$0xff]  }
 0x24f   :  { %7506 = vmatprep.subr.bf16.mxu1 %v8099_v54  ;;  %v7875_v27 = vpack.i.bf16 %v9792_v10, %v9789_v6  ;;  %v8111_v54 = vld [vmem:[%s11093_s3 + $0x610] sm:$0xff]  }
 0x250   :  { %v2232_v50 = vsel %vm122_vm0, %v7859_v44, %v7863_v58  ;;  %v2233_v56 = vsel %vm122_vm0, %v7863_v58, %v7864_v33  ;;  %v4042_v44 = vmul.f32 %v9731_v16, %v9766_v53 }
 0x251   :  { %7489 = vmatpush3.bf16.msra.mxu0 %v8100_v12  ;;  %7507 = vmatpush3.bf16.msra.mxu1 %v8101_v7  ;;  %v9828_v60 = vpop.permute.xlu1 %3086  ;;  %v9830_v20 = vpop.permute.xlu0 %3084  ;;  %v2250_v15 = vmax.f32 %v9498_v18, %v2233_v56  ;;  %v2249_v22 = vmax.f32 %v9371_v8, %v2232_v50  ;;  %v3174_v18 = vadd.f32 %v3157_v45, %v3111_v57  ;;  %v8107_v8 = vld [vmem:[%s11093_s3 + $0x648] sm:$0xff]  }
 0x252   :  { %4066 = vrot.lane.b32.xlu1 %v4045_v23, %s8371_s11  ;;  %7876 = vrot.lane.b32.xlu0 %v7875_v27, %s8371_s11  ;;  %v4106_v12 = vmul.f32 %v9263_v48, %v9850_v29  ;;  %v9906_v48 = vld [vmem:[%s11090_s0 + $0x40] sm:$0xff]  ;;  %v3096_v56 = vsel %vm122_vm0, %v9830_v20, %v9828_v60 }
 0x253   :  { %7490 = vmatprep.subr.bf16.mxu0 %v8102_v19  ;;  %7508 = vmatprep.subr.bf16.mxu1 %v8103_v5  ;;  %v2259_v32 = vmax.f32 %v2250_v15, 0.0  ;;  %v2258_v49 = vmax.f32 %v2249_v22, 0.0  ;;  %v9876_v38 = vadd.f32 %v9718_v26, %v3174_v18  ;;  %v9919_v5 = vld [vmem:[%s11090_s0 + $0x30] sm:$0xff]  ;;  %v3049_v18 = vmul.f32 %v9420_v36, %v9685_v55 }
 0x254   :  { %v3050_v50 = vmul.f32 %v9919_v5, %v9685_v55 }
 0x255   :  { %7491 = vmatpush3.bf16.msra.mxu0 %v8104_v46  ;;  %7509 = vmatpush3.bf16.msra.mxu1 %v8105_v40  ;;  %v9855_v34 = vpop.permute.xlu0 %7866  ;;  %v2268_v39 = vpack.c.bf16 %v2259_v32, %v2259_v32  ;;  %v9863_v3 = vpop.permute.xlu1 %3147  ;;  %v2267_v23 = vpack.c.bf16 %v2258_v49, %v2258_v49  ;;  %v8114_v46 = vld [vmem:[%s11093_s3 + $0x618] sm:$0xff]   ;;  %v8115_v40 = vld [vmem:[%s11093_s3 + $0x668] sm:$0xff]   ;;  %v8120_v32 = vld [vmem:[%s11093_s3 + $0x6d0] sm:$0xff]   ;;  %v4046_v49 = vmul.f32 %v9805_v9, %v9766_v53 }
 0x256   :  { %4060 = vrot.lane.b32.xlu1 %v4042_v44, %s8371_s11  ;;  %4064 = vrot.lane.b32.xlu0 %v4044_v11, %s8371_s11  ;;  %v7869_v47 = vunpack.i.h.bf16 %v9855_v34  ;;  %v7868_v17 = vunpack.i.l.bf16 %v9855_v34  ;;  %v4047_v44 = vmul.f32 %v9420_v36, %v9766_v53  ;;  %v8131_v34 = vld [vmem:[%s11093_s3 + $0x6a8] sm:$0xff]  }
 0x257   :  { %7492 = vmatprep.subr.bf16.mxu0 %v8106_v25  ;;  %2950 = vmatprep.mubr.bf16.mxu0 %v2268_v39  ;;  %v4110_v39 = vmul.f32 %v9420_v36, %v9850_v29  ;;  %v8121_v36 = vld [vmem:[%s11093_s3 + $0x690] sm:$0xff]  }
 0x258   :  { %v2234_v63 = vsel %vm122_vm0, %v7864_v33, %v7868_v17  ;;  %7510 = vmatprep.subr.bf16.mxu1 %v8107_v8  ;;  %v2235_v61 = vsel %vm122_vm0, %v7868_v17, %v7869_v47  ;;  %v3051_v33 = vmul.f32 %v9895_v14, %v9685_v55  ;;  %v3113_v8 = vadd.f32 %v3096_v56, %v3050_v50 }
 0x259   :  { %7493 = vmatpush3.bf16.msra.mxu0 %v8108_v59  ;;  %7511 = vmatpush3.bf16.msra.mxu1 %v8109_v52  ;;  %v3150_v37 = vpop.permute.xlu0 %3149  ;;  %v2252_v7 = vmax.f32 %v9530_v4, %v2235_v61  ;;  %v2251_v58 = vmax.f32 %v9501_v42, %v2234_v63  ;;  %v3052_v4 = vmul.f32 %v9906_v48, %v9685_v55  ;;  %v8113_v42 = vld [vmem:[%s11093_s3 + $0x658] sm:$0xff]   ;;  %v8116_v55 = vld [vmem:[%s11093_s3 + $0x670] sm:$0xff]  }
 0x25a   :  { %4127 = vrot.lane.b32.xlu1 %v4107_v2, %s8372_s16  ;;  %3206 = vrot.lane.b32.xlu0 %v9876_v38, %s8371_s11  ;;  %v3089_v41 = vpop.permute.xlu1 %3088  ;;  %v3095_v59 = vsel %vm122_vm0, %v9768_v13, %v9830_v20  ;;  %v3159_v52 = vsel %vm186_vm1, %v9863_v3, %v3150_v37  ;;  %v3158_v2 = vsel %vm186_vm1, %v9794_v24, %v9863_v3  ;;  %v8117_v61 = vld [vmem:[%s11093_s3 + $0x678] sm:$0xff]  }
 0x25b   :  { %7512 = vmatprep.subr.bf16.mxu1 %v8110_v62  ;;  %7751 = vmatprep.subr.bf16.mxu0 %v8373_v35  ;;  %v2261_v27 = vmax.f32 %v2252_v7, 0.0  ;;  %v3097_v19 = vsel %vm122_vm0, %v9828_v60, %v3089_v41  ;;  %v2260_v57 = vmax.f32 %v2251_v58, 0.0  ;;  %v4108_v60 = vmul.f32 %v9745_v51, %v9850_v29  ;;  %v8122_v62 = vld [vmem:[%s11093_s3 + $0x6d8] sm:$0xff]   ;;  %v8125_v7 = vld [vmem:[%s11093_s3 + $0x6e0] sm:$0xff]  }
 0x25c   :  { %2951 = vmatmul.mubr.bf16.vlgmr.msra.gmra.mrb[24].mxu0 %v2267_v23  ;;  %v3114_v22 = vadd.f32 %v3097_v19, %v3051_v33  ;;  %v3115_v11 = vadd.f32 %v3089_v41, %v3052_v4  ;;  %v3112_v63 = vadd.f32 %v3095_v59, %v3049_v18  ;;  %v4109_v24 = vmul.f32 %v9805_v9, %v9850_v29  ;;  %v8123_v3 = vld [vmem:[%s11093_s3 + $0x698] sm:$0xff]   ;;  %v8118_v58 = vld [vmem:[%s11093_s3 + $0x680] sm:$0xff]   ;;  %v8119_v23 = vld [vmem:[%s11093_s3 + $0x688] sm:$0xff]  }
 0x25d   :  { %7513 = vmatpush3.bf16.msra.mxu1 %v8111_v54  ;;  %7752 = vmatpush3.bf16.msra.mxu0 %v8112_v1  ;;  %v2270_v45 = vpack.c.bf16 %v2261_v27, %v2261_v27  ;;  %v3152_v15 = vpop.permute.xlu0 %3151  ;;  %v2269_v13 = vpack.c.bf16 %v2260_v57, %v2260_v57  ;;  %v8127_v4 = vld [vmem:[%s11093_s3 + $0x6a0] sm:$0xff]   ;;  %v8129_v19 = vld [vmem:[%s11093_s3 + $0x6e8] sm:$0xff]   ;;  %v4049_v50 = vmul.f32 %v9895_v14, %v9766_v53 }
 0x25e   :  { %4123 = vrot.lane.b32.xlu1 %v4105_v0, %s8372_s16  ;;  %4125 = vrot.lane.b32.xlu0 %v4106_v12, %s8372_s16  ;;  %v3160_v25 = vsel %vm186_vm1, %v3150_v37, %v3152_v15  ;;  %v3178_v17 = vadd.f32 %v3152_v15, %v3115_v11  ;;  %v3176_v0 = vadd.f32 %v3159_v52, %v3113_v8  ;;  %v8137_v11 = vld [vmem:[%s11093_s3 + $0x6f8] sm:$0xff]   ;;  %v8132_v18 = vld [vmem:[%s11093_s3 + $0x760] sm:$0xff]  }
 0x25f   :  { %7514 = vmatprep.subr.bf16.mxu1 %v8113_v42  ;;  %2990 = vmatprep.mubr.bf16.mxu1 %v2270_v45  ;;  %v3177_v20 = vadd.f32 %v3160_v25, %v3114_v22  ;;  %v4048_v37 = vmul.f32 %v9919_v5, %v9766_v53  ;;  %v3175_v54 = vadd.f32 %v3158_v2, %v3112_v63  ;;  %v8124_v45 = vld [vmem:[%s11093_s3 + $0x750] sm:$0xff]   ;;  %v8128_v22 = vld [vmem:[%s11093_s3 + $0x758] sm:$0xff]   ;;  %v8141_v8 = vld [vmem:[%s11093_s3 + $0x700] sm:$0xff]  }
 0x260   :  { %7753 = vmatprep.subr.bf16.mxu0 %v8373_v35  ;;  %7763 = vmatprep.mubr.msk.bf16.mxu0 %vm8374_vm2, %v8373_v35  ;;  %v9987_v12 = vadd.f32 %v9718_v26, %v3178_v17  ;;  %v9994_v33 = vadd.f32 %v9718_v26, %v3176_v0  ;;  %v2253_v42 = vmax.f32 %v9533_v31, %v7869_v47  ;;  %v8130_v25 = vld [vmem:[%s11093_s3 + $0x718] sm:$0xff]   ;;  %v8136_v59 = vld [vmem:[%s11093_s3 + $0x768] sm:$0xff]   ;;  %v8149_v63 = vld [vmem:[%s11093_s3 + $0x740] sm:$0xff]  }
 0x261   :  { %7515 = vmatpush3.bf16.msra.mxu1 %v8114_v46  ;;  %7754 = vmatpush3.bf16.msra.mxu0 %v8115_v40  ;;  %v9984_v1 = vadd.f32 %v9718_v26, %v3177_v20  ;;  %v10006_v41 = vadd.f32 %v9718_v26, %v3175_v54  ;;  %v2836_v31 = vand.u32 %v8119_v23, %v9130_v28  ;;  %v8133_v46 = vld [vmem:[%s11093_s3 + $0x6f0] sm:$0xff]   ;;  %v8145_v52 = vld [vmem:[%s11093_s3 + $0x708] sm:$0xff]   ;;  %v8144_v17 = vld [vmem:[%s11093_s3 + $0x778] sm:$0xff]  }
 0x262   :  { %4070 = vrot.lane.b32.xlu1 %v4047_v44, %s8371_s11  ;;  %4129 = vrot.lane.b32.xlu0 %v4108_v60, %s8372_s16  ;;  %v2262_v47 = vmax.f32 %v2253_v42, 0.0  ;;  %v4112_v56 = vmul.f32 %v9895_v14, %v9850_v29  ;;  %v8126_v40 = vld [vmem:[%s11093_s3 + $0x710] sm:$0xff]   ;;  %v4111_v57 = vmul.f32 %v9919_v5, %v9850_v29  ;;  %v4113_v60 = vmul.f32 %v9906_v48, %v9850_v29  ;;  %v8139_v29 = vld [vmem:[%s11093_s3 + $0x6b8] sm:$0xff]  }
 0x263   :  { %7755 = vmatprep.subr.bf16.mxu0 %v8373_v35  ;;  %7529 = vmatprep.subr.bf16.mxu1 %v8120_v32  ;;  %v7885_v27 = vpack.i.bf16 %v9987_v12, %v9984_v1  ;;  %v7880_v26 = vpack.i.bf16 %v9994_v33, %v10006_v41  ;;  %v8135_v44 = vld [vmem:[%s11093_s3 + $0x6b0] sm:$0xff]   ;;  %v4050_v32 = vmul.f32 %v9906_v48, %v9766_v53  ;;  %v8143_v53 = vld [vmem:[%s11093_s3 + $0x6c0] sm:$0xff]   ;;  %v8146_v2 = vld [vmem:[%s11093_s3 + $0x738] sm:$0xff]  }
 0x264   :  { %2991 = vmatmul.mubr.bf16.vlgmr.msra.gmra.mrb[24].mxu1 %v2269_v13  ;;  %v2271_v15 = vpack.c.bf16 %v2262_v47, %v2262_v47  ;;  %v8150_v13 = vld [vmem:[%s11093_s3 + $0x7d0] sm:$0xff]   ;;  %v8152_v0 = vld [vmem:[%s11093_s3 + $0x788] sm:$0xff]  }
 0x265   :  { %7756 = vmatpush3.bf16.msra.mxu0 %v8116_v55  ;;  %7530 = vmatpush3.bf16.msra.mxu1 %v8121_v36  ;;  %v8138_v55 = vld [vmem:[%s11093_s3 + $0x728] sm:$0xff]   ;;  %v8140_v36 = vld [vmem:[%s11093_s3 + $0x770] sm:$0xff]  }
 0x266   :  { %4133 = vrot.lane.b32.xlu1 %v4110_v39, %s8372_s16  ;;  %4068 = vrot.lane.b32.xlu0 %v4046_v49, %s8371_s11  ;;  %v8134_v39 = vld [vmem:[%s11093_s3 + $0x720] sm:$0xff]   ;;  %v8147_v49 = vld [vmem:[%s11093_s3 + $0x6c8] sm:$0xff]  }
 0x267   :  { %7757 = vmatprep.subr.bf16.mxu0 %v8373_v35  ;;  %7531 = vmatprep.subr.bf16.mxu1 %v8122_v62  ;;  %v8142_v20 = vld [vmem:[%s11093_s3 + $0x730] sm:$0xff]   ;;  %v8148_v62 = vld [vmem:[%s11093_s3 + $0x780] sm:$0xff]  }
 0x269   :  { %7758 = vmatpush3.bf16.msra.mxu0 %v8117_v61  ;;  %7532 = vmatpush3.bf16.msra.mxu1 %v8123_v3 }
 0x26a   :  { %4072 = vrot.lane.b32.xlu1 %v4048_v37, %s8371_s11  ;;  %4131 = vrot.lane.b32.xlu0 %v4109_v24, %s8372_s16  ;;  %v8153_v24 = vld [vmem:[%s11093_s3 + $0x748] sm:$0xff]  }
 0x26b   :  { %7759 = vmatprep.subr.bf16.mxu0 %v8373_v35  ;;  %7533 = vmatprep.subr.bf16.mxu1 %v8125_v7  ;;  %v8156_v7 = vld [vmem:[%s11093_s3 + $0x850] sm:$0xff]  }
 0x26d   :  { %7760 = vmatpush3.bf16.msra.mxu0 %v8118_v58  ;;  %7534 = vmatpush3.bf16.msra.mxu1 %v8127_v4 }
 0x26e   :  { %7881 = vrot.lane.b32.xlu0 %v7880_v26, %s8371_s11  ;;  %7886 = vrot.lane.b32.xlu1 %v7885_v27, %s8371_s11 }
 0x26f   :  { %7761 = vmatprep.subr.bf16.mxu0 %v8373_v35  ;;  %7535 = vmatprep.subr.bf16.mxu1 %v8129_v19 }
 0x271   :  { %7762 = vmatpush3.bf16.msra.mxu0 %v2836_v31  ;;  %7536 = vmatpush3.bf16.msra.mxu1 %v8131_v34 }
 0x272   :  { %4074 = vrot.lane.b32.xlu0 %v4049_v50, %s8371_s11  ;;  %4137 = vrot.lane.b32.xlu1 %v4112_v56, %s8372_s16 }
 0x273   :  { %7551 = vmatprep.subr.bf16.mxu0 %v8124_v45  ;;  %7537 = vmatprep.subr.bf16.mxu1 %v8133_v46 }
 0x274   :  { %7764 = vmatmul.mubr.msk.bf16.vlgmr.msra.gmra.mrb[28].mxu0 %vm1215_vm5, %v2271_v15 }
 0x275   :  { %7552 = vmatpush3.bf16.msra.mxu0 %v8126_v40  ;;  %7538 = vmatpush3.bf16.msra.mxu1 %v8135_v44 }
 0x276   :  { %4135 = vrot.lane.b32.xlu0 %v4111_v57, %s8372_s16  ;;  %4139 = vrot.lane.b32.xlu1 %v4113_v60, %s8372_s16 }
 0x277   :  { %7553 = vmatprep.subr.bf16.mxu0 %v8128_v22  ;;  %7539 = vmatprep.subr.bf16.mxu1 %v8137_v11 }
 0x279   :  { %7554 = vmatpush3.bf16.msra.mxu0 %v8130_v25  ;;  %7540 = vmatpush3.bf16.msra.mxu1 %v8139_v29 }
 0x27a   :  { %4076 = vrot.lane.b32.xlu0 %v4050_v32, %s8371_s11  ;;  %7555 = vmatprep.subr.bf16.mxu0 %v8132_v18 }
 0x27b   :  { %7541 = vmatprep.subr.bf16.mxu1 %v8141_v8 }
 0x27d   :  { %7556 = vmatpush3.bf16.msra.mxu0 %v8134_v39  ;;  %7542 = vmatpush3.bf16.msra.mxu1 %v8143_v53 }
 0x27e   :  { %7557 = vmatprep.subr.bf16.mxu0 %v8136_v59  ;;  %7543 = vmatprep.subr.bf16.mxu1 %v8145_v52 }
 0x281   :  { %7558 = vmatpush3.bf16.msra.mxu0 %v8138_v55  ;;  %7544 = vmatpush3.bf16.msra.mxu1 %v8147_v49 }
 0x282   :  { %7559 = vmatprep.subr.bf16.mxu0 %v8140_v36  ;;  %7573 = vmatprep.subr.bf16.mxu1 %v8150_v13 }
 0x285   :  { %7560 = vmatpush3.bf16.msra.mxu0 %v8142_v20 }
 0x286   :  { %7561 = vmatprep.subr.bf16.mxu0 %v8144_v17 }
 0x289   :  { %7562 = vmatpush3.bf16.msra.mxu0 %v8146_v2 }
 0x28a   :  { %7563 = vmatprep.subr.bf16.mxu0 %v8148_v62 }
 0x28c   :  { %v7355_v61 = vpop.f32.mrb[8].mxu1 }
 0x28d   :  { %v7356_v37 = vpop.f32.mrb[9].mxu1  ;;  %7564 = vmatpush3.bf16.msra.mxu0 %v8149_v63 }
 0x28e   :  { %v7357_v3 = vadd.f32 %v7356_v37, %v7355_v61  ;;  %v7358_v54 = vpop.f32.mrb[10].mxu1  ;;  %7565 = vmatprep.subr.bf16.mxu0 %v8152_v0  ;;  %v10132_v37 = vstv %s6895_s14 }
 0x28f   :  { %v7359_v58 = vpop.f32.mrb[11].mxu1  ;;  %v7377_v23 = vpop.f32.mrb[12].mxu0 }
 0x290   :  { %v1886_v4 = vadd.f32 %v7357_v3, %v9678_v30  ;;  %v7378_v42 = vpop.f32.mrb[13].mxu0  ;;  %v4032_v58 = vmul.f32 %v9731_v16, %v10132_v37  ;;  %v8155_v16 = vld [vmem:[%s11093_s3 + $0x798] sm:$0xff]  }
 0x291   :  { %v7379_v27 = vadd.f32 %v7378_v42, %v7377_v23  ;;  %v7380_v19 = vpop.f32.mrb[14].mxu0  ;;  %7566 = vmatpush3.bf16.msra.mxu0 %v8153_v24  ;;  %v8151_v24 = vld [vmem:[%s11093_s3 + $0x790] sm:$0xff]  }
 0x292   :  { %v7381_v26 = vpop.f32.mrb[15].mxu0  ;;  %7595 = vmatprep.subr.bf16.mxu0 %v8156_v7 }
 0x293   :  { %v1926_v31 = vadd.f32 %v7379_v27, %v1886_v4 }
 0x2ac   :  { %v7399_v34 = vpop.f32.mrb[12].mxu1 }
 0x2ad   :  { %v7400_v47 = vpop.f32.mrb[13].mxu1 }
 0x2ae   :  { %v7401_v50 = vadd.f32 %v7400_v47, %v7399_v34  ;;  %v7402_v56 = vpop.f32.mrb[14].mxu1  ;;  %v8157_v47 = vld [vmem:[%s11093_s3 + $0x7e0] sm:$0xff]  }
 0x2af   :  { %v7403_v45 = vpop.f32.mrb[15].mxu1  ;;  %v7421_v46 = vpop.f32.mrb[16].mxu0  ;;  %v8291_v56 = vld [vmem:[%s11090_s0 + $0x10] sm:$0xff] }
 0x2b0   :  { %v1966_v40 = vadd.f32 %v7401_v50, %v1926_v31  ;;  %v7422_v44 = vpop.f32.mrb[17].mxu0 }
 0x2b1   :  { %v7423_v15 = vadd.f32 %v7422_v44, %v7421_v46  ;;  %v7424_v57 = vpop.f32.mrb[18].mxu0  ;;  %v10166_v44 = vstv %s6898_s28 }
 0x2b2   :  { %v7425_v60 = vpop.f32.mrb[19].mxu0 }
 0x2b3   :  { %v2006_v22 = vadd.f32 %v7423_v15, %v1966_v40 }
 0x2bc   :  { %v7872_v30 = vpop.permute.xlu1 %7871 }
 0x2bd   :  { %v7874_v11 = vunpack.i.h.bf16 %v7872_v30  ;;  %v7873_v25 = vunpack.i.l.bf16 %v7872_v30 }
 0x2bf   :  { %v3217_v29 = vsel %vm122_vm0, %v7873_v25, %v7874_v11 }
 0x2c0   :  { %v4063_v32 = vpop.permute.xlu1 %4062  ;;  %v3234_v18 = vmax.f32 %v9737_v21, %v3217_v29 }
 0x2c2   :  { %v3243_v8 = vmax.f32 %v3234_v18, 0.0  ;;  %v8160_v18 = vld [vmem:[%s11093_s3 + $0x858] sm:$0xff]  }
 0x2c4   :  { %v10125_v39 = vpop.permute.xlu1 %4066  ;;  %v7877_v53 = vpop.permute.xlu0 %7876  ;;  %v3252_v59 = vpack.c.bf16 %v3243_v8, %v3243_v8 }
 0x2c5   :  { %v7879_v52 = vunpack.i.h.bf16 %v7877_v53  ;;  %v7878_v55 = vunpack.i.l.bf16 %v7877_v53  ;;  %v2045_v49 = vpop.f32.mrb[16].mxu1 }
 0x2c6   :  { %v10127_v36 = vadd.f32 %v2045_v49, %v2006_v22  ;;  %v7749_v13 = vpop.f32.mrb[17].mxu1  ;;  %3858 = vmatprep.mubr.bf16.mxu1 %v3252_v59 }
 0x2c7   :  { %v3216_v20 = vsel %vm122_vm0, %v7878_v55, %v7873_v25  ;;  %v2048_v17 = vpop.f32.mrb[18].mxu1  ;;  %v3218_v63 = vsel %vm122_vm0, %v7874_v11, %v7879_v52  ;;  %v8158_v11 = vld [vmem:[%s11093_s3 + $0x810] sm:$0xff]   ;;  %v8161_v55 = vld [vmem:[%s11093_s3 + $0x7e8] sm:$0xff]  }
 0x2c8   :  { %v3233_v2 = vmax.f32 %v9789_v6, %v3216_v20  ;;  %v7750_v62 = vpop.f32.mrb[19].mxu1  ;;  %v4061_v21 = vpop.permute.xlu1 %4060  ;;  %v3235_v3 = vmax.f32 %v9740_v43, %v3218_v63  ;;  %v8154_v6 = vld [vmem:[%s11093_s3 + $0x7d8] sm:$0xff]   ;;  %v8290_v43 = vld [vmem:[%s11090_s0 + $0x8] sm:$0xff]  ;;  %v4036_v20 = vmul.f32 %v9805_v9, %v10132_v37 }
 0x2c9   :  { %v4065_v0 = vpop.permute.xlu0 %4064  ;;  %v4078_v4 = vsel %vm122_vm0, %v4061_v21, %v4063_v32  ;;  %v4033_v27 = vmul.f32 %v8290_v43, %v10132_v37  ;;  %v8162_v17 = vld [vmem:[%s11093_s3 + $0x818] sm:$0xff]   ;;  %v8163_v62 = vld [vmem:[%s11093_s3 + $0x7a8] sm:$0xff]   ;;  %v8164_v21 = vld [vmem:[%s11093_s3 + $0x860] sm:$0xff]  }
 0x2ca   :  { %v3242_v61 = vmax.f32 %v3233_v2, 0.0  ;;  %v3244_v26 = vmax.f32 %v3235_v3, 0.0  ;;  %v4079_v31 = vsel %vm122_vm0, %v4063_v32, %v4065_v0  ;;  %v4095_v50 = vadd.f32 %v4078_v4, %v4032_v58  ;;  %v8159_v32 = vld [vmem:[%s11093_s3 + $0x7a0] sm:$0xff]   ;;  %v8167_v4 = vld [vmem:[%s11093_s3 + $0x7b0] sm:$0xff]  }
 0x2cb   :  { %v4080_v40 = vsel %vm122_vm0, %v4065_v0, %v10125_v39  ;;  %v4096_v60 = vadd.f32 %v4079_v31, %v4033_v27  ;;  %v4035_v0 = vmul.f32 %v9745_v51, %v10132_v37  ;;  %v8166_v51 = vld [vmem:[%s11093_s3 + $0x820] sm:$0xff]   ;;  %v8169_v27 = vld [vmem:[%s11093_s3 + $0x7f8] sm:$0xff]  }
 0x2cc   :  { %v4128_v54 = vpop.permute.xlu1 %4127  ;;  %v3251_v7 = vpack.c.bf16 %v3242_v61, %v3242_v61  ;;  %v3253_v29 = vpack.c.bf16 %v3244_v26, %v3244_v26 }
 0x2cd   :  { %v10143_v23 = vpop.permute.xlu0 %3206 }
 0x2ce   :  { %v3219_v42 = vsel %vm122_vm0, %v7879_v52, %v10143_v23  ;;  %3859 = vmatmul.mubr.bf16.vlgmr.msra.gmra.mrb[28].mxu1 %v3251_v7 }
 0x2cf   :  { %v3236_v19 = vmax.f32 %v9792_v10, %v3219_v42  ;;  %7574 = vmatpush3.bf16.msra.mxu1 %v8151_v24  ;;  %v4034_v10 = vmul.f32 %v8291_v56, %v10132_v37  ;;  %v8165_v24 = vld [vmem:[%s11093_s3 + $0x7f0] sm:$0xff]  }
 0x2d0   :  { %v4124_v34 = vpop.permute.xlu1 %4123  ;;  %7575 = vmatprep.subr.bf16.mxu1 %v8154_v6  ;;  %v8172_v56 = vld [vmem:[%s11093_s3 + $0x870] sm:$0xff]  }
 0x2d1   :  { %v3245_v45 = vmax.f32 %v3236_v19, 0.0  ;;  %v4126_v46 = vpop.permute.xlu0 %4125  ;;  %v4097_v8 = vadd.f32 %v4080_v40, %v4034_v10 }
 0x2d2   :  { %v4141_v15 = vsel %vm186_vm1, %v4124_v34, %v4126_v46  ;;  %v4142_v57 = vsel %vm186_vm1, %v4126_v46, %v4128_v54  ;;  %v8170_v34 = vld [vmem:[%s11093_s3 + $0x828] sm:$0xff]  }
 0x2d3   :  { %v3254_v22 = vpack.c.bf16 %v3245_v45, %v3245_v45  ;;  %v4158_v30 = vadd.f32 %v4141_v15, %v4095_v50  ;;  %7576 = vmatpush3.bf16.msra.mxu1 %v8155_v16  ;;  %v4159_v53 = vadd.f32 %v4142_v57, %v4096_v60  ;;  %v8171_v50 = vld [vmem:[%s11093_s3 + $0x7b8] sm:$0xff]   ;;  %v8173_v57 = vld [vmem:[%s11093_s3 + $0x800] sm:$0xff]  }
 0x2d4   :  { %v10173_v25 = vpop.permute.xlu1 %4070  ;;  %7577 = vmatprep.subr.bf16.mxu1 %v8157_v47 }
 0x2d5   :  { %v10182_v59 = vadd.f32 %v10166_v44, %v4158_v30  ;;  %v4130_v52 = vpop.permute.xlu0 %4129  ;;  %3898 = vmatprep.mubr.bf16.mxu0 %v3254_v22  ;;  %v10204_v63 = vadd.f32 %v10166_v44, %v4159_v53 }
 0x2d6   :  { %v4143_v49 = vsel %vm186_vm1, %v4128_v54, %v4130_v52  ;;  %3899 = vmatmul.mubr.bf16.vlgmr.msra.gmra.mrb[32].mxu0 %v3253_v29  ;;  %v8174_v29 = vld [vmem:[%s11093_s3 + $0x830] sm:$0xff]  }
 0x2d7   :  { %v4160_v13 = vadd.f32 %v4143_v49, %v4097_v8  ;;  %7596 = vmatpush3.bf16.msra.mxu0 %v8158_v11  ;;  %4186 = vrot.lane.b32.xlu1 %v10182_v59, %s8371_s11  ;;  %v4038_v11 = vmul.f32 %v9919_v5, %v10132_v37  ;;  %v8175_v8 = vld [vmem:[%s11093_s3 + $0x7c0] sm:$0xff]   ;;  %v8176_v5 = vld [vmem:[%s11093_s3 + $0x878] sm:$0xff]  }
 0x2d8   :  { %7578 = vmatpush3.bf16.msra.mxu1 %v8159_v32  ;;  %v10195_v2 = vpop.permute.xlu1 %4133  ;;  %7597 = vmatprep.subr.bf16.mxu0 %v8160_v18 }
 0x2d9   :  { %v10207_v9 = vadd.f32 %v10166_v44, %v4160_v13  ;;  %v4069_v61 = vpop.permute.xlu0 %4068  ;;  %7579 = vmatprep.subr.bf16.mxu1 %v8161_v55  ;;  %v8177_v13 = vld [vmem:[%s11093_s3 + $0x808] sm:$0xff]  }
 0x2da   :  { %v4081_v3 = vsel %vm122_vm0, %v10125_v39, %v4069_v61  ;;  %v4082_v54 = vsel %vm122_vm0, %v4069_v61, %v10173_v25  ;;  %v8168_v39 = vld [vmem:[%s11093_s3 + $0x868] sm:$0xff]   ;;  %v8178_v61 = vld [vmem:[%s11093_s3 + $0x838] sm:$0xff]  }
 0x2db   :  { %v7890_v7 = vpack.i.bf16 %v10207_v9, %v10204_v63  ;;  %v4099_v6 = vadd.f32 %v4082_v54, %v4036_v20  ;;  %7598 = vmatpush3.bf16.msra.mxu0 %v8162_v17  ;;  %v4098_v42 = vadd.f32 %v4081_v3, %v4035_v0 }
 0x2dc   :  { %7580 = vmatpush3.bf16.msra.mxu1 %v8163_v62  ;;  %v4073_v58 = vpop.permute.xlu1 %4072  ;;  %7599 = vmatprep.subr.bf16.mxu0 %v8164_v21 }
 0x2dd   :  { %7891 = vrot.lane.b32.xlu0 %v7890_v7, %s8371_s11  ;;  %v4132_v43 = vpop.permute.xlu0 %4131  ;;  %7581 = vmatprep.subr.bf16.mxu1 %v8165_v24  ;;  %v4083_v17 = vsel %vm122_vm0, %v10173_v25, %v4073_v58 }
 0x2de   :  { %v4144_v19 = vsel %vm186_vm1, %v4130_v52, %v4132_v43  ;;  %v4145_v16 = vsel %vm186_vm1, %v4132_v43, %v10195_v2  ;;  %v8292_v52 = vld [vmem:[%s11090_s0 + $0x28] sm:$0xff] }
 0x2df   :  { %v4161_v26 = vadd.f32 %v4144_v19, %v4098_v42  ;;  %v4162_v31 = vadd.f32 %v4145_v16, %v4099_v6  ;;  %7600 = vmatpush3.bf16.msra.mxu0 %v8166_v51  ;;  %v4037_v55 = vmul.f32 %v8292_v52, %v10132_v37  ;;  %v4040_v6 = vmul.f32 %v9906_v48, %v10132_v37  ;;  %v8180_v51 = vld [vmem:[%s11093_s3 + $0x880] sm:$0xff]  }
 0x2e0   :  { %7582 = vmatpush3.bf16.msra.mxu1 %v8167_v4  ;;  %v10239_v47 = vpop.permute.xlu1 %7886  ;;  %7601 = vmatprep.subr.bf16.mxu0 %v8168_v39  ;;  %v4039_v19 = vmul.f32 %v9895_v14, %v10132_v37  ;;  %v8181_v48 = vld [vmem:[%s11093_s3 + $0x840] sm:$0xff]  }
 0x2e1   :  { %v10248_v10 = vadd.f32 %v10166_v44, %v4161_v26  ;;  %v10251_v45 = vadd.f32 %v10166_v44, %v4162_v31  ;;  %v7889_v46 = vunpack.i.h.bf16 %v10239_v47  ;;  %v7888_v40 = vunpack.i.l.bf16 %v10239_v47  ;;  %v7882_v15 = vpop.permute.xlu0 %7881  ;;  %7583 = vmatprep.subr.bf16.mxu1 %v8169_v27  ;;  %v8183_v31 = vld [vmem:[%s11093_s3 + $0x888] sm:$0xff]   ;;  %v8186_v52 = vld [vmem:[%s11093_s3 + $0x8a0] sm:$0xff]  }
 0x2e2   :  { %v7884_v60 = vunpack.i.h.bf16 %v7882_v15  ;;  %v7883_v22 = vunpack.i.l.bf16 %v7882_v15  ;;  %v4100_v25 = vadd.f32 %v4083_v17, %v4037_v55  ;;  %v8192_v55 = vld [vmem:[%s11093_s3 + $0x908] sm:$0xff]   ;;  %v8188_v17 = vld [vmem:[%s11093_s3 + $0x8b0] sm:$0xff]   ;;  %v8204_v47 = vld [vmem:[%s11093_s3 + $0x8e0] sm:$0xff]  }
 0x2e3   :  { %v7895_v30 = vpack.i.bf16 %v10251_v45, %v10248_v10  ;;  %7602 = vmatpush3.bf16.msra.mxu0 %v8170_v34  ;;  %v3223_v32 = vsel %vm122_vm0, %v7888_v40, %v7889_v46 }
 0x2e4   :  { %v3220_v18 = vsel %vm122_vm0, %v10143_v23, %v7883_v22  ;;  %7584 = vmatpush3.bf16.msra.mxu1 %v8171_v50  ;;  %7603 = vmatprep.subr.bf16.mxu0 %v8172_v56  ;;  %v3221_v53 = vsel %vm122_vm0, %v7883_v22, %v7884_v60  ;;  %v3240_v21 = vmax.f32 %v9984_v1, %v3223_v32 }
 0x2e5   :  { %v3237_v23 = vmax.f32 %v9876_v38, %v3220_v18  ;;  %7896 = vrot.lane.b32.xlu0 %v7895_v30, %s8371_s11  ;;  %v4075_v49 = vpop.permute.xlu0 %4074  ;;  %7585 = vmatprep.subr.bf16.mxu1 %v8173_v57  ;;  %v3238_v20 = vmax.f32 %v10006_v41, %v3221_v53  ;;  %v4138_v38 = vpop.permute.xlu1 %4137  ;;  %v8179_v41 = vld [vmem:[%s11093_s3 + $0x7c8] sm:$0xff]   ;;  %v3222_v54 = vsel %vm122_vm0, %v7884_v60, %v7888_v40 }
 0x2e6   :  { %v4084_v62 = vsel %vm122_vm0, %v4073_v58, %v4075_v49  ;;  %v3249_v3 = vmax.f32 %v3240_v21, 0.0  ;;  %v3239_v26 = vmax.f32 %v9994_v33, %v3222_v54  ;;  %v8184_v60 = vld [vmem:[%s11093_s3 + $0x848] sm:$0xff]   ;;  %v8198_v21 = vld [vmem:[%s11093_s3 + $0x918] sm:$0xff]  }
 0x2e7   :  { %v4101_v0 = vadd.f32 %v4084_v62, %v4038_v11  ;;  %7604 = vmatpush3.bf16.msra.mxu0 %v8174_v29  ;;  %v3247_v24 = vmax.f32 %v3238_v20, 0.0  ;;  %v3246_v7 = vmax.f32 %v3237_v23, 0.0  ;;  %v8185_v11 = vld [vmem:[%s11093_s3 + $0x898] sm:$0xff]   ;;  %v8190_v29 = vld [vmem:[%s11093_s3 + $0x900] sm:$0xff]   ;;  %v8193_v23 = vld [vmem:[%s11093_s3 + $0x8c8] sm:$0xff]  }
 0x2e8   :  { %7586 = vmatpush3.bf16.msra.mxu1 %v8175_v8  ;;  %7605 = vmatprep.subr.bf16.mxu0 %v8176_v5  ;;  %v3258_v42 = vpack.c.bf16 %v3249_v3, %v3249_v3  ;;  %v3248_v22 = vmax.f32 %v3239_v26, 0.0  ;;  %v8191_v5 = vld [vmem:[%s11093_s3 + $0x8c0] sm:$0xff]   ;;  %v8196_v20 = vld [vmem:[%s11093_s3 + $0x8d0] sm:$0xff]   ;;  %v8189_v62 = vld [vmem:[%s11093_s3 + $0x8b8] sm:$0xff]  }
 0x2e9   :  { %v4136_v1 = vpop.permute.xlu0 %4135  ;;  %7587 = vmatprep.subr.bf16.mxu1 %v8177_v13  ;;  %v3256_v39 = vpack.c.bf16 %v3247_v24, %v3247_v24  ;;  %v4140_v16 = vpop.permute.xlu1 %4139  ;;  %v3255_v33 = vpack.c.bf16 %v3246_v7, %v3246_v7  ;;  %v8194_v13 = vld [vmem:[%s11093_s3 + $0x910] sm:$0xff]   ;;  %v8206_v3 = vld [vmem:[%s11093_s3 + $0x928] sm:$0xff]  }
 0x2ea   :  { %v4146_v58 = vsel %vm186_vm1, %v10195_v2, %v4136_v1  ;;  %v4147_v4 = vsel %vm186_vm1, %v4136_v1, %v4138_v38  ;;  %v8182_v2 = vld [vmem:[%s11093_s3 + $0x890] sm:$0xff]   ;;  %3978 = vmatprep.mubr.bf16.mxu0 %v3258_v42  ;;  %v4148_v40 = vsel %vm186_vm1, %v4138_v38, %v4140_v16  ;;  %v3257_v53 = vpack.c.bf16 %v3248_v22, %v3248_v22  ;;  %v8200_v38 = vld [vmem:[%s11093_s3 + $0x8d8] sm:$0xff]   ;;  %v8199_v54 = vld [vmem:[%s11093_s3 + $0x988] sm:$0xff]  }
 0x2eb   :  { %v4163_v43 = vadd.f32 %v4146_v58, %v4100_v25  ;;  %v4164_v27 = vadd.f32 %v4147_v4, %v4101_v0  ;;  %7606 = vmatpush3.bf16.msra.mxu0 %v8178_v61  ;;  %3938 = vmatprep.mubr.bf16.mxu1 %v3256_v39  ;;  %v3241_v0 = vmax.f32 %v9987_v12, %v7889_v46  ;;  %v8195_v12 = vld [vmem:[%s11093_s3 + $0x980] sm:$0xff]   ;;  %v8208_v7 = vld [vmem:[%s11093_s3 + $0x8e8] sm:$0xff]   ;;  %v8212_v58 = vld [vmem:[%s11093_s3 + $0x8f0] sm:$0xff]  }
 0x2ec   :  { %7588 = vmatpush3.bf16.msra.mxu1 %v8179_v41  ;;  %7607 = vmatprep.subr.bf16.mxu0 %v8180_v51  ;;  %v3824_v61 = vand.u32 %v8189_v62, %v9130_v28  ;;  %v8202_v41 = vld [vmem:[%s11093_s3 + $0x920] sm:$0xff]   ;;  %v8201_v1 = vld [vmem:[%s11093_s3 + $0x948] sm:$0xff]   ;;  %v8203_v51 = vld [vmem:[%s11093_s3 + $0x990] sm:$0xff]  }
 0x2ed   :  { %v10319_v34 = vadd.f32 %v10166_v44, %v4163_v43  ;;  %v10322_v14 = vadd.f32 %v10166_v44, %v4164_v27  ;;  %v4077_v37 = vpop.permute.xlu0 %4076  ;;  %7767 = vmatprep.subr.bf16.mxu1 %v8373_v35  ;;  %v3250_v24 = vmax.f32 %v3241_v0, 0.0  ;;  %v8197_v46 = vld [vmem:[%s11093_s3 + $0x940] sm:$0xff]   ;;  %v8205_v4 = vld [vmem:[%s11093_s3 + $0x950] sm:$0xff]   ;;  %v8214_v39 = vld [vmem:[%s11093_s3 + $0x938] sm:$0xff]  }
 0x2ee   :  { %v4085_v50 = vsel %vm122_vm0, %v4075_v49, %v4077_v37  ;;  %v4103_v56 = vadd.f32 %v4077_v37, %v4040_v6  ;;  %v8187_v49 = vld [vmem:[%s11093_s3 + $0x8a8] sm:$0xff]   ;;  %v8210_v6 = vld [vmem:[%s11093_s3 + $0x930] sm:$0xff]   ;;  %v8207_v42 = vld [vmem:[%s11093_s3 + $0x998] sm:$0xff]  }
 0x2ef   :  { %v7900_v15 = vpack.i.bf16 %v10322_v14, %v10319_v34  ;;  %v4102_v57 = vadd.f32 %v4085_v50, %v4039_v19  ;;  %3939 = vmatmul.mubr.bf16.vlgmr.msra.gmra.mrb[32].mxu1 %v3255_v33  ;;  %7608 = vmatpush3.bf16.msra.mxu0 %v8181_v48  ;;  %v3259_v25 = vpack.c.bf16 %v3250_v24, %v3250_v24  ;;  %v8216_v27 = vld [vmem:[%s11093_s3 + $0x8f8] sm:$0xff]   ;;  %v8213_v33 = vld [vmem:[%s11093_s3 + $0x960] sm:$0xff]   ;;  %v8215_v50 = vld [vmem:[%s11093_s3 + $0x9a8] sm:$0xff]  }
 0x2f0   :  { %v4166_v30 = vadd.f32 %v4140_v16, %v4103_v56  ;;  %7768 = vmatpush3.bf16.msra.mxu1 %v8182_v2  ;;  %7609 = vmatprep.subr.bf16.mxu0 %v8183_v31  ;;  %v8209_v48 = vld [vmem:[%s11093_s3 + $0x958] sm:$0xff]   ;;  %v8219_v16 = vld [vmem:[%s11093_s3 + $0xa00] sm:$0xff]   ;;  %v8218_v22 = vld [vmem:[%s11093_s3 + $0x9b0] sm:$0xff]  }
 0x2f1   :  { %v4165_v32 = vadd.f32 %v4148_v40, %v4102_v57  ;;  %7901 = vrot.lane.b32.xlu1 %v7900_v15, %s8371_s11  ;;  %7769 = vmatprep.subr.bf16.mxu1 %v8373_v35  ;;  %v8211_v31 = vld [vmem:[%s11093_s3 + $0x9a0] sm:$0xff]   ;;  %v8217_v15 = vld [vmem:[%s11093_s3 + $0x968] sm:$0xff]  }
 0x2f2   :  { %v10341_v18 = vadd.f32 %v10166_v44, %v4166_v30  ;;  %7779 = vmatprep.mubr.msk.bf16.mxu1 %vm8374_vm2, %v8373_v35 }
 0x2f3   :  { %v10346_v8 = vadd.f32 %v10166_v44, %v4165_v32  ;;  %7610 = vmatpush3.bf16.msra.mxu0 %v8184_v60  ;;  %v8222_v32 = vld [vmem:[%s11093_s3 + $0x9b8] sm:$0xff]  }
 0x2f4   :  { %7770 = vmatpush3.bf16.msra.mxu1 %v8185_v11  ;;  %7624 = vmatprep.subr.bf16.mxu0 %v8190_v29  ;;  %v8220_v29 = vld [vmem:[%s11093_s3 + $0x970] sm:$0xff]  }
 0x2f5   :  { %v7905_v44 = vpack.i.bf16 %v10341_v18, %v10346_v8  ;;  %7771 = vmatprep.subr.bf16.mxu1 %v8373_v35 }
 0x2f6   :  { %3979 = vmatmul.mubr.bf16.vlgmr.msra.gmra.mrb[36].mxu0 %v3257_v53  ;;  %v8227_v53 = vld [vmem:[%s11093_s3 + $0xa80] sm:$0xff]  }
 0x2f7   :  { %7906 = vrot.lane.b32.xlu0 %v7905_v44, %s8371_s11  ;;  %7625 = vmatpush3.bf16.msra.mxu0 %v8191_v5  ;;  %v8224_v5 = vld [vmem:[%s11093_s3 + $0x978] sm:$0xff]  }
 0x2f8   :  { %7772 = vmatpush3.bf16.msra.mxu1 %v8186_v52  ;;  %7626 = vmatprep.subr.bf16.mxu0 %v8192_v55 }
 0x2f9   :  { %7773 = vmatprep.subr.bf16.mxu1 %v8373_v35 }
 0x2fb   :  { %7627 = vmatpush3.bf16.msra.mxu0 %v8193_v23 }
 0x2fc   :  { %7774 = vmatpush3.bf16.msra.mxu1 %v8187_v49  ;;  %7628 = vmatprep.subr.bf16.mxu0 %v8194_v13 }
 0x2fd   :  { %7775 = vmatprep.subr.bf16.mxu1 %v8373_v35 }
 0x2ff   :  { %7629 = vmatpush3.bf16.msra.mxu0 %v8196_v20 }
 0x300   :  { %7776 = vmatpush3.bf16.msra.mxu1 %v8188_v17  ;;  %7630 = vmatprep.subr.bf16.mxu0 %v8198_v21 }
 0x301   :  { %7777 = vmatprep.subr.bf16.mxu1 %v8373_v35 }
 0x303   :  { %7631 = vmatpush3.bf16.msra.mxu0 %v8200_v38 }
 0x304   :  { %7778 = vmatpush3.bf16.msra.mxu1 %v3824_v61  ;;  %7632 = vmatprep.subr.bf16.mxu0 %v8202_v41 }
 0x305   :  { %7646 = vmatprep.subr.bf16.mxu1 %v8195_v12 }
 0x307   :  { %7780 = vmatmul.mubr.msk.bf16.vlgmr.msra.gmra.mrb[36].mxu1 %vm1215_vm5, %v3259_v25  ;;  %7633 = vmatpush3.bf16.msra.mxu0 %v8204_v47 }
 0x308   :  { %7647 = vmatpush3.bf16.msra.mxu1 %v8197_v46  ;;  %7634 = vmatprep.subr.bf16.mxu0 %v8206_v3 }
 0x309   :  { %7648 = vmatprep.subr.bf16.mxu1 %v8199_v54 }
 0x30b   :  { %7635 = vmatpush3.bf16.msra.mxu0 %v8208_v7 }
 0x30c   :  { %7649 = vmatpush3.bf16.msra.mxu1 %v8201_v1  ;;  %7636 = vmatprep.subr.bf16.mxu0 %v8210_v6 }
 0x30d   :  { %7650 = vmatprep.subr.bf16.mxu1 %v8203_v51 }
 0x30f   :  { %v7450_v43 = vpop.f32.mrb[20].mxu0  ;;  %7637 = vmatpush3.bf16.msra.mxu0 %v8212_v58 }
 0x310   :  { %v7451_v19 = vpop.f32.mrb[21].mxu0  ;;  %7651 = vmatpush3.bf16.msra.mxu1 %v8205_v4  ;;  %7638 = vmatprep.subr.bf16.mxu0 %v8214_v39 }
 0x311   :  { %v7452_v26 = vadd.f32 %v7451_v19, %v7450_v43  ;;  %v7453_v2 = vpop.f32.mrb[22].mxu0  ;;  %7652 = vmatprep.subr.bf16.mxu1 %v8207_v42 }
 0x312   :  { %v7454_v37 = vpop.f32.mrb[23].mxu0  ;;  %v8225_v2 = vld [vmem:[%s11093_s3 + $0x9c8] sm:$0xff]  }
 0x313   :  { %7639 = vmatpush3.bf16.msra.mxu0 %v8216_v27  ;;  %v8221_v27 = vld [vmem:[%s11093_s3 + $0x9c0] sm:$0xff]   ;;  %v8226_v37 = vld [vmem:[%s11093_s3 + $0xa10] sm:$0xff]  }
 0x314   :  { %7653 = vmatpush3.bf16.msra.mxu1 %v8209_v48  ;;  %7668 = vmatprep.subr.bf16.mxu0 %v8219_v16 }
 0x315   :  { %7654 = vmatprep.subr.bf16.mxu1 %v8211_v31 }
 0x317   :  { %v7472_v56 = vpop.f32.mrb[20].mxu1 }
 0x318   :  { %v7473_v40 = vpop.f32.mrb[21].mxu1  ;;  %7655 = vmatpush3.bf16.msra.mxu1 %v8213_v33 }
 0x319   :  { %v7474_v57 = vadd.f32 %v7473_v40, %v7472_v56  ;;  %v7475_v60 = vpop.f32.mrb[22].mxu1  ;;  %7656 = vmatprep.subr.bf16.mxu1 %v8215_v50 }
 0x31a   :  { %v7476_v30 = vpop.f32.mrb[23].mxu1 }
 0x31b   :  { %v2913_v11 = vadd.f32 %v7474_v57, %v7452_v26  ;;  %v8231_v57 = vld [vmem:[%s11093_s3 + $0xa88] sm:$0xff]  }
 0x31c   :  { %7657 = vmatpush3.bf16.msra.mxu1 %v8217_v15  ;;  %v8229_v15 = vld [vmem:[%s11093_s3 + $0xa40] sm:$0xff]   ;;  %v8233_v30 = vld [vmem:[%s11093_s3 + $0xa48] sm:$0xff]  }
 0x31d   :  { %7658 = vmatprep.subr.bf16.mxu1 %v8218_v22  ;;  %v8232_v22 = vld [vmem:[%s11093_s3 + $0x9d8] sm:$0xff]  }
 0x320   :  { %7659 = vmatpush3.bf16.msra.mxu1 %v8220_v29 }
 0x321   :  { %7660 = vmatprep.subr.bf16.mxu1 %v8222_v32  ;;  %v8234_v32 = vld [vmem:[%s11093_s3 + $0xa20] sm:$0xff]  }
 0x324   :  { %7661 = vmatpush3.bf16.msra.mxu1 %v8224_v5  ;;  %v8235_v5 = vld [vmem:[%s11093_s3 + $0xa90] sm:$0xff]  }
 0x325   :  { %7690 = vmatprep.subr.bf16.mxu1 %v8227_v53 }
 0x32f   :  { %v7494_v52 = vpop.f32.mrb[24].mxu0 }
 0x330   :  { %v7495_v55 = vpop.f32.mrb[25].mxu0 }
 0x331   :  { %v7496_v44 = vadd.f32 %v7495_v55, %v7494_v52  ;;  %v7497_v23 = vpop.f32.mrb[26].mxu0  ;;  %v8236_v52 = vld [vmem:[%s11093_s3 + $0x9e0] sm:$0xff]   ;;  %v8237_v55 = vld [vmem:[%s11093_s3 + $0xa50] sm:$0xff]  }
 0x332   :  { %v7498_v49 = vpop.f32.mrb[27].mxu0  ;;  %v8238_v23 = vld [vmem:[%s11093_s3 + $0xa28] sm:$0xff]  }
 0x333   :  { %v2953_v13 = vadd.f32 %v7496_v44, %v2913_v11  ;;  %v8239_v49 = vld [vmem:[%s11093_s3 + $0xa98] sm:$0xff]  }
 0x337   :  { %v7516_v20 = vpop.f32.mrb[24].mxu1 }
 0x338   :  { %v7517_v17 = vpop.f32.mrb[25].mxu1 }
 0x339   :  { %v7518_v62 = vadd.f32 %v7517_v17, %v7516_v20  ;;  %v7519_v21 = vpop.f32.mrb[26].mxu1 }
 0x33a   :  { %v7520_v0 = vpop.f32.mrb[27].mxu1  ;;  %v8240_v21 = vld [vmem:[%s11093_s3 + $0x9e8] sm:$0xff]  }
 0x33b   :  { %v2993_v38 = vadd.f32 %v7518_v62, %v2953_v13  ;;  %v8241_v0 = vld [vmem:[%s11093_s3 + $0xa58] sm:$0xff]  }
 0x347   :  { %v3032_v61 = vpop.f32.mrb[28].mxu0 }
 0x348   :  { %v3033_v41 = vadd.f32 %v3032_v61, %v2993_v38  ;;  %v7765_v24 = vpop.f32.mrb[29].mxu0  ;;  %v8242_v61 = vld [vmem:[%s11093_s3 + $0xa30] sm:$0xff]  }
 0x349   :  { %v3035_v12 = vpop.f32.mrb[30].mxu0  ;;  %v4187_v7 = vpop.permute.xlu1 %4186 }
 0x34a   :  { %v10472_v47 = vadd.f32 %v3033_v41, %v10127_v36  ;;  %v7766_v46 = vpop.f32.mrb[31].mxu0  ;;  %v8243_v41 = vld [vmem:[%s11093_s3 + $0xaa0] sm:$0xff]  }
 0x34b   :  { %v8244_v46 = vld [vmem:[%s11093_s3 + $0x9f0] sm:$0xff]  }
 0x34f   :  { %v7892_v3 = vpop.permute.xlu0 %7891 }
 0x350   :  { %v7894_v25 = vunpack.i.h.bf16 %v7892_v3  ;;  %v7893_v54 = vunpack.i.l.bf16 %v7892_v3  ;;  %v8245_v3 = vld [vmem:[%s11093_s3 + $0xa60] sm:$0xff]  }
 0x352   :  { %v4204_v1 = vsel %vm122_vm0, %v4187_v7, %v7893_v54  ;;  %v4205_v6 = vsel %vm122_vm0, %v7893_v54, %v7894_v25  ;;  %v8246_v7 = vld [vmem:[%s11093_s3 + $0xa38] sm:$0xff]  }
 0x353   :  { %v4221_v51 = vmax.f32 %v10182_v59, %v4204_v1  ;;  %v4222_v58 = vmax.f32 %v10204_v63, %v4205_v6  ;;  %v8223_v59 = vld [vmem:[%s11093_s3 + $0xa08] sm:$0xff]   ;;  %v8248_v6 = vld [vmem:[%s11093_s3 + $0x9f8] sm:$0xff]  }
 0x354   :  { %v8247_v1 = vld [vmem:[%s11093_s3 + $0xaa8] sm:$0xff]  }
 0x355   :  { %v4230_v4 = vmax.f32 %v4221_v51, 0.0  ;;  %v4231_v39 = vmax.f32 %v4222_v58, 0.0  ;;  %v8250_v58 = vld [vmem:[%s11093_s3 + $0xab0] sm:$0xff]  }
 0x357   :  { %v10478_v42 = vpop.permute.xlu0 %7896  ;;  %v4240_v43 = vpack.c.bf16 %v4231_v39, %v4231_v39  ;;  %v4239_v36 = vpack.c.bf16 %v4230_v4, %v4230_v4  ;;  %v8251_v39 = vld [vmem:[%s11093_s3 + $0xa70] sm:$0xff]  }
 0x358   :  { %v7899_v19 = vunpack.i.h.bf16 %v10478_v42  ;;  %v7898_v48 = vunpack.i.l.bf16 %v10478_v42  ;;  %v8252_v42 = vld [vmem:[%s11093_s3 + $0xac0] sm:$0xff]  }
 0x359   :  { %4846 = vmatprep.mubr.bf16.mxu0 %v4240_v43 }
 0x35a   :  { %v4206_v63 = vsel %vm122_vm0, %v7894_v25, %v7898_v48  ;;  %4847 = vmatmul.mubr.bf16.vlgmr.msra.gmra.mrb[40].mxu0 %v4239_v36  ;;  %v4207_v16 = vsel %vm122_vm0, %v7898_v48, %v7899_v19  ;;  %v8255_v48 = vld [vmem:[%s11093_s3 + $0xac8] sm:$0xff]  }
 0x35b   :  { %v4223_v26 = vmax.f32 %v10207_v9, %v4206_v63  ;;  %7669 = vmatpush3.bf16.msra.mxu0 %v8221_v27  ;;  %v4224_v31 = vmax.f32 %v10248_v10, %v4207_v16  ;;  %v8228_v9 = vld [vmem:[%s11093_s3 + $0x9d0] sm:$0xff]   ;;  %v8230_v10 = vld [vmem:[%s11093_s3 + $0xa18] sm:$0xff]  }
 0x35c   :  { %7670 = vmatprep.subr.bf16.mxu0 %v8223_v59  ;;  %v8253_v27 = vld [vmem:[%s11093_s3 + $0xab8] sm:$0xff]  }
 0x35d   :  { %v4232_v33 = vmax.f32 %v4223_v26, 0.0  ;;  %v4233_v50 = vmax.f32 %v4224_v31, 0.0  ;;  %v8257_v16 = vld [vmem:[%s11093_s3 + $0xad8] sm:$0xff]   ;;  %v8258_v26 = vld [vmem:[%s11093_s3 + $0xae0] sm:$0xff]  }
 0x35f   :  { %7671 = vmatpush3.bf16.msra.mxu0 %v8225_v2  ;;  %v4242_v56 = vpack.c.bf16 %v4233_v50, %v4233_v50  ;;  %v4241_v40 = vpack.c.bf16 %v4232_v33, %v4232_v33  ;;  %v8259_v2 = vld [vmem:[%s11093_s3 + $0xae8] sm:$0xff]  }
 0x360   :  { %7672 = vmatprep.subr.bf16.mxu0 %v8226_v37  ;;  %v4812_v37 = vand.u32 %v8259_v2, %v9130_v28  ;;  %v5157_v2 = vld [vmem:[%s11097_s7 + $0x168] sm:$0xff] }
 0x361   :  { %4886 = vmatprep.mubr.bf16.mxu1 %v4242_v56 }
 0x362   :  { %4887 = vmatmul.mubr.bf16.vlgmr.msra.gmra.mrb[40].mxu1 %v4241_v40 }
 0x363   :  { %7673 = vmatpush3.bf16.msra.mxu0 %v8228_v9  ;;  %7691 = vmatpush3.bf16.msra.mxu1 %v8229_v15  ;;  %v7902_v60 = vpop.permute.xlu1 %7901 }
 0x364   :  { %v7904_v11 = vunpack.i.h.bf16 %v7902_v60  ;;  %v7903_v29 = vunpack.i.l.bf16 %v7902_v60  ;;  %7674 = vmatprep.subr.bf16.mxu0 %v8230_v10  ;;  %7692 = vmatprep.subr.bf16.mxu1 %v8231_v57 }
 0x366   :  { %v4209_v53 = vsel %vm122_vm0, %v7903_v29, %v7904_v11  ;;  %v4208_v24 = vsel %vm122_vm0, %v7899_v19, %v7903_v29  ;;  %v8254_v19 = vld [vmem:[%s11093_s3 + $0xa78] sm:$0xff]  }
 0x367   :  { %7675 = vmatpush3.bf16.msra.mxu0 %v8232_v22  ;;  %7693 = vmatpush3.bf16.msra.mxu1 %v8233_v30  ;;  %v4226_v44 = vmax.f32 %v10319_v34, %v4209_v53  ;;  %v4225_v54 = vmax.f32 %v10251_v45, %v4208_v24  ;;  %v8249_v45 = vld [vmem:[%s11093_s3 + $0xa68] sm:$0xff]   ;;  %v8376_v24 = vmov 0  }
 0x368   :  { %7676 = vmatprep.subr.bf16.mxu0 %v8234_v32  ;;  %7694 = vmatprep.subr.bf16.mxu1 %v8235_v5 }
 0x369   :  { %v10536_v13 = vpop.permute.xlu0 %7906  ;;  %v4235_v20 = vmax.f32 %v4226_v44, 0.0  ;;  %v4234_v51 = vmax.f32 %v4225_v54, 0.0 }
 0x36a   :  { %v7909_v17 = vunpack.i.h.bf16 %v10536_v13  ;;  %v7908_v62 = vunpack.i.l.bf16 %v10536_v13 }
 0x36b   :  { %7677 = vmatpush3.bf16.msra.mxu0 %v8236_v52  ;;  %7695 = vmatpush3.bf16.msra.mxu1 %v8237_v55  ;;  %v4244_v34 = vpack.c.bf16 %v4235_v20, %v4235_v20  ;;  %v4243_v43 = vpack.c.bf16 %v4234_v51, %v4234_v51 }
 0x36c   :  { %v4211_v38 = vsel %vm122_vm0, %v7908_v62, %v7909_v17  ;;  %7678 = vmatprep.subr.bf16.mxu0 %v8238_v23  ;;  %7696 = vmatprep.subr.bf16.mxu1 %v8239_v49  ;;  %v4210_v4 = vsel %vm122_vm0, %v7904_v11, %v7908_v62  ;;  %v4229_v31 = vmax.f32 %v10341_v18, %v7909_v17 }
 0x36d   :  { %4926 = vmatprep.mubr.bf16.mxu0 %v4244_v34  ;;  %v4228_v12 = vmax.f32 %v10346_v8, %v4211_v38  ;;  %v4227_v36 = vmax.f32 %v10322_v14, %v4210_v4  ;;  %v8256_v14 = vld [vmem:[%s11093_s3 + $0xad0] sm:$0xff]   ;;  %v8262_v38 = vld [vmem:[%s11095_s5 + $0x4] ss:$8 sps:$4 sm:$0xff]  }
 0x36e   :  { %v4238_v33 = vmax.f32 %v4229_v31, 0.0  ;;  %v5129_v4 = vld [vmem:[%s11097_s7 + $0x88] sm:$0xff] }
 0x36f   :  { %7679 = vmatpush3.bf16.msra.mxu0 %v8240_v21  ;;  %7697 = vmatpush3.bf16.msra.mxu1 %v8241_v0  ;;  %v4237_v25 = vmax.f32 %v4228_v12, 0.0  ;;  %v4236_v59 = vmax.f32 %v4227_v36, 0.0  ;;  %v10639_v12 = vld [vmem:[%s11097_s7] sm:$0xff]  ;;  %v5137_v36 = vld [vmem:[%s11097_s7 + $0xc8] sm:$0xff] }
 0x370   :  { %7680 = vmatprep.subr.bf16.mxu0 %v8242_v61  ;;  %7698 = vmatprep.subr.bf16.mxu1 %v8243_v41  ;;  %v4247_v50 = vpack.c.bf16 %v4238_v33, %v4238_v33  ;;  %v8260_v61 = vld [vmem:[%s11095_s5] ss:$8 sps:$4 sm:$0xff]   ;;  %v8265_v41 = vld [vmem:[%s11095_s5 + $0x14] ss:$8 sps:$4 sm:$0xff]  }
 0x371   :  { %v4246_v8 = vpack.c.bf16 %v4237_v25, %v4237_v25  ;;  %v4245_v63 = vpack.c.bf16 %v4236_v59, %v4236_v59  ;;  %v5145_v59 = vld [vmem:[%s11097_s7 + $0x108] sm:$0xff] }
 0x372   :  { %v5161_v33 = vld [vmem:[%s11097_s7 + $0x188] sm:$0xff] }
 0x373   :  { %7681 = vmatpush3.bf16.msra.mxu0 %v8244_v46  ;;  %7699 = vmatpush3.bf16.msra.mxu1 %v8245_v3  ;;  %v10644_v46 = vld [vmem:[%s11097_s7 + $0x20] sm:$0xff]  ;;  %v5113_v3 = vld [vmem:[%s11097_s7 + $0x8] sm:$0xff] }
 0x374   :  { %4966 = vmatprep.mubr.bf16.mxu1 %v4246_v8  ;;  %7682 = vmatprep.subr.bf16.mxu0 %v8246_v7  ;;  %v7116_v25 = vcombine.low %v10639_v12, %v10644_v46  ;;  %v7117_v54 = vcombine.high %v10639_v12, %v10644_v46  ;;  %v5117_v7 = vld [vmem:[%s11097_s7 + $0x28] sm:$0xff]  ;;  %v5144_v12 = vld [vmem:[%s11097_s7 + $0x100] sm:$0xff] }
 0x375   :  { %7700 = vmatprep.subr.bf16.mxu1 %v8247_v1  ;;  %v7118_v8 = vcombine.low %v5113_v3, %v5117_v7  ;;  %v7119_v1 = vcombine.high %v5113_v3, %v5117_v7  ;;  %v5148_v46 = vld [vmem:[%s11097_s7 + $0x120] sm:$0xff] }
 0x377   :  { %7683 = vmatpush3.bf16.msra.mxu0 %v8248_v6  ;;  %7701 = vmatpush3.bf16.msra.mxu1 %v8249_v45  ;;  %v5121_v6 = vld [vmem:[%s11097_s7 + $0x48] sm:$0xff] }
 0x378   :  { %7702 = vmatprep.subr.bf16.mxu1 %v8250_v58  ;;  %7783 = vmatprep.subr.bf16.mxu0 %v8373_v35  ;;  %v5125_v45 = vld [vmem:[%s11097_s7 + $0x68] sm:$0xff] }
 0x379   :  { %v7127_v51 = vcombine.high %v5121_v6, %v5125_v45  ;;  %v7126_v58 = vcombine.low %v5121_v6, %v5125_v45 }
 0x37a   :  { %4927 = vmatmul.mubr.bf16.vlgmr.msra.gmra.mrb[44].mxu0 %v4243_v43 }
 0x37b   :  { %7703 = vmatpush3.bf16.msra.mxu1 %v8251_v39  ;;  %7784 = vmatpush3.bf16.msra.mxu0 %v8252_v42  ;;  %v5133_v39 = vld [vmem:[%s11097_s7 + $0xa8] sm:$0xff] }
 0x37c   :  { %7704 = vmatprep.subr.bf16.mxu1 %v8253_v27  ;;  %7785 = vmatprep.subr.bf16.mxu0 %v8373_v35  ;;  %v7135_v42 = vcombine.high %v5129_v4, %v5133_v39  ;;  %v7134_v43 = vcombine.low %v5129_v4, %v5133_v39  ;;  %v5141_v27 = vld [vmem:[%s11097_s7 + $0xe8] sm:$0xff] }
 0x37d   :  { %7795 = vmatprep.mubr.msk.bf16.mxu0 %vm8374_vm2, %v8373_v35 }
 0x37f   :  { %7705 = vmatpush3.bf16.msra.mxu1 %v8254_v19  ;;  %7786 = vmatpush3.bf16.msra.mxu0 %v8255_v48  ;;  %v7143_v19 = vcombine.high %v5137_v36, %v5141_v27  ;;  %v7142_v48 = vcombine.low %v5137_v36, %v5141_v27 }
 0x380   :  { %7787 = vmatprep.subr.bf16.mxu0 %v8373_v35  ;;  %5067 = vmatprep.subr.bf16.mxu1 %v8262_v38 }
 0x382   :  { %4967 = vmatmul.mubr.bf16.vlgmr.msra.gmra.mrb[44].mxu1 %v4245_v63 }
 0x383   :  { %7788 = vmatpush3.bf16.msra.mxu0 %v8256_v14  ;;  %5068 = vmatpush1.bf16.msra.mxu1 %v8260_v61  ;;  %v5149_v14 = vld [vmem:[%s11097_s7 + $0x128] sm:$0xff] }
 0x384   :  { %7789 = vmatprep.subr.bf16.mxu0 %v8373_v35  ;;  %5069 = vmatprep.subr.bf16.mxu1 %v8265_v41  ;;  %v7151_v63 = vcombine.high %v5145_v59, %v5149_v14 }
 0x385   :  { %5099 = vmatprep.mubr.bf16.mxu1 %v8376_v24 }
 0x387   :  { %7790 = vmatpush3.bf16.msra.mxu0 %v8257_v16  ;;  %v7150_v16 = vcombine.low %v5145_v59, %v5149_v14 }
 0x388   :  { %7791 = vmatprep.subr.bf16.mxu0 %v8373_v35 }
 0x38b   :  { %7792 = vmatpush3.bf16.msra.mxu0 %v8258_v26  ;;  %v5153_v26 = vld [vmem:[%s11097_s7 + $0x148] sm:$0xff] }
 0x38c   :  { %7793 = vmatprep.subr.bf16.mxu0 %v8373_v35  ;;  %v7159_v31 = vcombine.high %v5153_v26, %v5157_v2 }
 0x38f   :  { %7794 = vmatpush3.bf16.msra.mxu0 %v4812_v37  ;;  %v7158_v37 = vcombine.low %v5153_v26, %v5157_v2 }
 0x390   :  { %5963 = vmatprep.subr.bf16.mxu0 %v7119_v1 }
 0x392   :  { %7796 = vmatmul.mubr.msk.bf16.vlgmr.msra.gmra.mrb[48].mxu0 %vm1215_vm5, %v4247_v50  ;;  %v5165_v50 = vld [vmem:[%s11097_s7 + $0x1a8] sm:$0xff] }
 0x393   :  { %5964 = vmatpush1.bf16.msra.mxu0 %v7118_v8 }
 0x394   :  { %5965 = vmatprep.subr.bf16.mxu0 %v7127_v51 }
 0x397   :  { %5966 = vmatpush1.bf16.msra.mxu0 %v7126_v58 }
 0x398   :  { %5967 = vmatprep.subr.bf16.mxu0 %v7135_v42 }
 0x39b   :  { %5968 = vmatpush1.bf16.msra.mxu0 %v7134_v43 }
 0x39c   :  { %5969 = vmatprep.subr.bf16.mxu0 %v7143_v19 }
 0x39f   :  { %5970 = vmatpush1.bf16.msra.mxu0 %v7142_v48 }
 0x3a0   :  { %5971 = vmatprep.subr.bf16.mxu0 %v7151_v63 }
 0x3a1   :  { %v7545_v56 = vpop.f32.mrb[28].mxu1 }
 0x3a2   :  { %v7546_v40 = vpop.f32.mrb[29].mxu1 }
 0x3a3   :  { %v7547_v9 = vadd.f32 %v7546_v40, %v7545_v56  ;;  %v7548_v15 = vpop.f32.mrb[30].mxu1  ;;  %5972 = vmatpush1.bf16.msra.mxu0 %v7150_v16  ;;  %v7167_v56 = vcombine.high %v5161_v33, %v5165_v50  ;;  %v7166_v40 = vcombine.low %v5161_v33, %v5165_v50 }
 0x3a4   :  { %v7549_v10 = vpop.f32.mrb[31].mxu1  ;;  %5973 = vmatprep.subr.bf16.mxu0 %v7159_v31  ;;  %v5173_v15 = vld [vmem:[%s11097_s7 + $0x1e8] sm:$0xff]  ;;  %v7110_v31 = vld [vmem:[%s11094_s4] ss:$0 sm:$0xff] }
 0x3a7   :  { %5974 = vmatpush1.bf16.msra.mxu0 %v7158_v37 }
 0x3a8   :  { %5975 = vmatprep.subr.bf16.mxu0 %v7167_v56 }
 0x3a9   :  { %v7567_v57 = vpop.f32.mrb[32].mxu0 }
 0x3aa   :  { %v7568_v60 = vpop.f32.mrb[33].mxu0 }
 0x3ab   :  { %v7569_v18 = vadd.f32 %v7568_v60, %v7567_v57  ;;  %v7570_v22 = vpop.f32.mrb[34].mxu0  ;;  %5976 = vmatpush1.bf16.msra.mxu0 %v7166_v40  ;;  %v5177_v60 = vld [vmem:[%s11097_s7 + $0x208] sm:$0xff]  ;;  %v5120_v40 = vld [vmem:[%s11097_s7 + $0x40] sm:$0xff] }
 0x3ac   :  { %v7571_v30 = vpop.f32.mrb[35].mxu0 }
 0x3ad   :  { %v3901_v11 = vadd.f32 %v7569_v18, %v7547_v9  ;;  %v5169_v9 = vld [vmem:[%s11097_s7 + $0x1c8] sm:$0xff] }
 0x3ae   :  { %v7175_v10 = vcombine.high %v5169_v9, %v5173_v15  ;;  %v7174_v57 = vcombine.low %v5169_v9, %v5173_v15  ;;  %v5181_v18 = vld [vmem:[%s11097_s7 + $0x228] sm:$0xff]  ;;  %v5124_v9 = vld [vmem:[%s11097_s7 + $0x60] sm:$0xff] }
 0x3af   :  { %v7183_v22 = vcombine.high %v5177_v60, %v5181_v18  ;;  %v7182_v30 = vcombine.low %v5177_v60, %v5181_v18  ;;  %v5132_v60 = vld [vmem:[%s11097_s7 + $0xa0] sm:$0xff]  ;;  %v7124_v18 = vcombine.low %v5120_v40, %v5124_v9 }
 0x3b0   :  { %5977 = vmatprep.subr.bf16.mxu0 %v7175_v10 }
 0x3b1   :  { %5978 = vmatpush1.bf16.msra.mxu0 %v7174_v57  ;;  %v7125_v57 = vcombine.high %v5120_v40, %v5124_v9  ;;  %v5233_v40 = vld [vmem:[%s11097_s7 + $0x3c8] sm:$0xff] }
 0x3b2   :  { %5979 = vmatprep.subr.bf16.mxu0 %v7183_v22 }
 0x3b5   :  { %5980 = vmatpush1.bf16.msra.mxu0 %v7182_v30  ;;  %v5136_v30 = vld [vmem:[%s11097_s7 + $0xc0] sm:$0xff] }
 0x3c2   :  { %v7589_v29 = vpop.f32.mrb[32].mxu1 }
 0x3c3   :  { %v7590_v28 = vpop.f32.mrb[33].mxu1 }
 0x3c4   :  { %v7591_v32 = vadd.f32 %v7590_v28, %v7589_v29  ;;  %v7592_v5 = vpop.f32.mrb[34].mxu1  ;;  %v5189_v29 = vld [vmem:[%s11097_s7 + $0x268] sm:$0xff] }
 0x3c5   :  { %v7593_v35 = vpop.f32.mrb[35].mxu1  ;;  %v5193_v5 = vld [vmem:[%s11097_s7 + $0x288] sm:$0xff] }
 0x3c6   :  { %v3941_v53 = vadd.f32 %v7591_v32, %v3901_v11  ;;  %v5185_v11 = vld [vmem:[%s11097_s7 + $0x248] sm:$0xff] }
 0x3c7   :  { %v7191_v28 = vcombine.high %v5185_v11, %v5189_v29  ;;  %v7190_v32 = vcombine.low %v5185_v11, %v5189_v29  ;;  %v5197_v35 = vld [vmem:[%s11097_s7 + $0x2a8] sm:$0xff]  ;;  %v5140_v11 = vld [vmem:[%s11097_s7 + $0xe0] sm:$0xff] }
 0x3c9   :  { %v7611_v52 = vpop.f32.mrb[36].mxu0  ;;  %5981 = vmatprep.subr.bf16.mxu0 %v7191_v28  ;;  %v7141_v28 = vcombine.high %v5136_v30, %v5140_v11 }
 0x3ca   :  { %v7612_v55 = vpop.f32.mrb[37].mxu0  ;;  %5982 = vmatpush1.bf16.msra.mxu0 %v7190_v32  ;;  %v7149_v32 = vcombine.high %v5144_v12, %v5148_v46 }
 0x3cb   :  { %v7613_v44 = vadd.f32 %v7612_v55, %v7611_v52  ;;  %v7614_v23 = vpop.f32.mrb[38].mxu0  ;;  %v7198_v52 = vcombine.low %v5193_v5, %v5197_v35  ;;  %v5201_v55 = vld [vmem:[%s11097_s7 + $0x2c8] sm:$0xff] }
 0x3cc   :  { %v7615_v49 = vpop.f32.mrb[39].mxu0 }
 0x3cd   :  { %v3981_v13 = vadd.f32 %v7613_v44, %v3941_v53  ;;  %v7199_v53 = vcombine.high %v5193_v5, %v5197_v35  ;;  %v5205_v44 = vld [vmem:[%s11097_s7 + $0x2e8] sm:$0xff]  ;;  %v5152_v5 = vld [vmem:[%s11097_s7 + $0x140] sm:$0xff] }
 0x3ce   :  { %v7207_v23 = vcombine.high %v5201_v55, %v5205_v44  ;;  %v7206_v49 = vcombine.low %v5201_v55, %v5205_v44  ;;  %v5156_v35 = vld [vmem:[%s11097_s7 + $0x160] sm:$0xff] }
 0x3cf   :  { %5983 = vmatprep.subr.bf16.mxu0 %v7199_v53  ;;  %v7148_v53 = vcombine.low %v5144_v12, %v5148_v46  ;;  %v5160_v55 = vld [vmem:[%s11097_s7 + $0x180] sm:$0xff]  ;;  %v5033_v46 = vlaneseq }
 0x3d0   :  { %5984 = vmatpush1.bf16.msra.mxu0 %v7198_v52  ;;  %v7157_v52 = vcombine.high %v5152_v5, %v5156_v35  ;;  %v5164_v44 = vld [vmem:[%s11097_s7 + $0x1a0] sm:$0xff] }
 0x3d1   :  { %5985 = vmatprep.subr.bf16.mxu0 %v7207_v23  ;;  %v7156_v23 = vcombine.low %v5152_v5, %v5156_v35  ;;  %v5031_v5 = vld [vmem:[%s11096_s6] sm:$0x3] }
 0x3d4   :  { %5986 = vmatpush1.bf16.msra.mxu0 %v7206_v49  ;;  %v7165_v49 = vcombine.high %v5160_v55, %v5164_v44 }
 0x3da   :  { %v4020_v20 = vpop.f32.mrb[36].mxu1 }
 0x3db   :  { %v4021_v17 = vadd.f32 %v4020_v20, %v3981_v13  ;;  %v7781_v62 = vpop.f32.mrb[37].mxu1  ;;  %v5209_v13 = vld [vmem:[%s11097_s7 + $0x308] sm:$0xff] }
 0x3dc   :  { %v4023_v34 = vpop.f32.mrb[38].mxu1  ;;  %v5213_v20 = vld [vmem:[%s11097_s7 + $0x328] sm:$0xff] }
 0x3dd   :  { %v10622_v21 = vadd.f32 %v4021_v17, %v10472_v47  ;;  %v7782_v0 = vpop.f32.mrb[39].mxu1  ;;  %v8263_v47 = vld [vmem:[%s11095_s5 + $0x10] ss:$8 sps:$4 sm:$0xff]   ;;  %v7215_v17 = vcombine.high %v5209_v13, %v5213_v20  ;;  %v7214_v62 = vcombine.low %v5209_v13, %v5213_v20  ;;  %v5217_v34 = vld [vmem:[%s11097_s7 + $0x348] sm:$0xff]  ;;  %v5168_v13 = vld [vmem:[%s11097_s7 + $0x1c0] sm:$0xff] }
 0x3de   :  { %5070 = vmatpush1.bf16.msra.mxu1 %v8263_v47  ;;  %v5221_v0 = vld [vmem:[%s11097_s7 + $0x368] sm:$0xff]  ;;  %v5172_v20 = vld [vmem:[%s11097_s7 + $0x1e0] sm:$0xff] }
 0x3df   :  { %5922 = vmatprep.subr.bf16.mxu1 %v7117_v54  ;;  %5987 = vmatprep.subr.bf16.mxu0 %v7215_v17  ;;  %v7223_v38 = vcombine.high %v5217_v34, %v5221_v0  ;;  %v7222_v61 = vcombine.low %v5217_v34, %v5221_v0  ;;  %v7164_v17 = vcombine.low %v5160_v55, %v5164_v44  ;;  %v5176_v34 = vld [vmem:[%s11097_s7 + $0x200] sm:$0xff] }
 0x3e0   :  { %5988 = vmatpush1.bf16.msra.mxu0 %v7214_v62  ;;  %v7173_v62 = vcombine.high %v5168_v13, %v5172_v20  ;;  %v5180_v0 = vld [vmem:[%s11097_s7 + $0x220] sm:$0xff] }
 0x3e1   :  { %5989 = vmatprep.subr.bf16.mxu0 %v7223_v38  ;;  %v7172_v38 = vcombine.low %v5168_v13, %v5172_v20 }
 0x3e4   :  { %5990 = vmatpush1.bf16.msra.mxu0 %v7222_v61  ;;  %v7181_v61 = vcombine.high %v5176_v34, %v5180_v0 }
 0x42d   :  { %v7640_v41 = vpop.f32.mrb[40].mxu0 }
 0x42e   :  { %v7641_v47 = vpop.f32.mrb[41].mxu0 }
 0x42f   :  { %v7642_v24 = vadd.f32 %v7641_v47, %v7640_v41  ;;  %v7643_v3 = vpop.f32.mrb[42].mxu0  ;;  %v5184_v41 = vld [vmem:[%s11097_s7 + $0x240] sm:$0xff] }
 0x430   :  { %v7644_v54 = vpop.f32.mrb[43].mxu0  ;;  %v5188_v47 = vld [vmem:[%s11097_s7 + $0x260] sm:$0xff] }
 0x431   :  { %v7189_v3 = vcombine.high %v5184_v41, %v5188_v47  ;;  %v5192_v54 = vld [vmem:[%s11097_s7 + $0x280] sm:$0xff] }
 0x435   :  { %v7662_v7 = vpop.f32.mrb[40].mxu1 }
 0x436   :  { %v7663_v8 = vpop.f32.mrb[41].mxu1 }
 0x437   :  { %v7664_v1 = vadd.f32 %v7663_v8, %v7662_v7  ;;  %v7665_v6 = vpop.f32.mrb[42].mxu1  ;;  %v5196_v7 = vld [vmem:[%s11097_s7 + $0x2a0] sm:$0xff]  ;;  %v7188_v8 = vcombine.low %v5184_v41, %v5188_v47 }
 0x438   :  { %v7666_v45 = vpop.f32.mrb[43].mxu1  ;;  %v5200_v6 = vld [vmem:[%s11097_s7 + $0x2c0] sm:$0xff] }
 0x439   :  { %v4889_v51 = vadd.f32 %v7664_v1, %v7642_v24  ;;  %v7180_v24 = vcombine.low %v5176_v34, %v5180_v0  ;;  %v7197_v1 = vcombine.high %v5192_v54, %v5196_v7  ;;  %v5204_v45 = vld [vmem:[%s11097_s7 + $0x2e0] sm:$0xff]  ;;  %v5122_v34 = vld [vmem:[%s11097_s7 + $0x50] sm:$0xff] }
 0x43a   :  { %v5126_v0 = vld [vmem:[%s11097_s7 + $0x70] sm:$0xff] }
 0x44d   :  { %v7684_v58 = vpop.f32.mrb[44].mxu0 }
 0x44e   :  { %v7685_v4 = vpop.f32.mrb[45].mxu0 }
 0x44f   :  { %v7686_v39 = vadd.f32 %v7685_v4, %v7684_v58  ;;  %v7687_v42 = vpop.f32.mrb[46].mxu0  ;;  %v7205_v58 = vcombine.high %v5200_v6, %v5204_v45  ;;  %v5208_v4 = vld [vmem:[%s11097_s7 + $0x300] sm:$0xff] }
 0x450   :  { %v7688_v43 = vpop.f32.mrb[47].mxu0  ;;  %v7204_v42 = vcombine.low %v5200_v6, %v5204_v45  ;;  %v7128_v6 = vcombine.low %v5122_v34, %v5126_v0 }
 0x451   :  { %v4929_v36 = vadd.f32 %v7686_v39, %v4889_v51  ;;  %v7196_v51 = vcombine.low %v5192_v54, %v5196_v7  ;;  %v5212_v39 = vld [vmem:[%s11097_s7 + $0x320] sm:$0xff]  ;;  %v5134_v7 = vld [vmem:[%s11097_s7 + $0xb0] sm:$0xff] }
 0x452   :  { %v7213_v43 = vcombine.high %v5208_v4, %v5212_v39 }
 0x455   :  { %v7706_v27 = vpop.f32.mrb[44].mxu1 }
 0x456   :  { %v7707_v19 = vpop.f32.mrb[45].mxu1 }
 0x457   :  { %v7708_v48 = vadd.f32 %v7707_v19, %v7706_v27  ;;  %v7709_v59 = vpop.f32.mrb[46].mxu1  ;;  %v5220_v27 = vld [vmem:[%s11097_s7 + $0x360] sm:$0xff]  ;;  %v7212_v19 = vcombine.low %v5208_v4, %v5212_v39  ;;  %v5138_v4 = vld [vmem:[%s11097_s7 + $0xd0] sm:$0xff] }
 0x458   :  { %v7710_v14 = vpop.f32.mrb[47].mxu1  ;;  %v5142_v39 = vld [vmem:[%s11097_s7 + $0xf0] sm:$0xff] }
 0x459   :  { %v4969_v63 = vadd.f32 %v7708_v48, %v4929_v36  ;;  %v5216_v36 = vld [vmem:[%s11097_s7 + $0x340] sm:$0xff] }
 0x45a   :  { %v7221_v48 = vcombine.high %v5216_v36, %v5220_v27  ;;  %v7220_v59 = vcombine.low %v5216_v36, %v5220_v27  ;;  %v5224_v14 = vld [vmem:[%s11097_s7 + $0x380] sm:$0xff] }
 0x465   :  { %v5008_v16 = vpop.f32.mrb[48].mxu0 }
 0x466   :  { %v5009_v26 = vadd.f32 %v5008_v16, %v4969_v63  ;;  %v7797_v2 = vpop.f32.mrb[49].mxu0  ;;  %v5228_v63 = vld [vmem:[%s11097_s7 + $0x3a0] sm:$0xff]  ;;  %v5225_v16 = vld [vmem:[%s11097_s7 + $0x388] sm:$0xff] }
 0x467   :  { %v5011_v37 = vpop.f32.mrb[50].mxu0  ;;  %v5229_v2 = vld [vmem:[%s11097_s7 + $0x3a8] sm:$0xff] }
 0x468   :  { %v5014_v33 = vadd.f32 %v5009_v26, %v10622_v21  ;;  %v7798_v50 = vpop.f32.mrb[51].mxu0  ;;  %v5128_v21 = vld [vmem:[%s11097_s7 + $0x80] sm:$0xff]  ;;  %v7229_v26 = vcombine.high %v5224_v14, %v5228_v63  ;;  %v7230_v37 = vcombine.low %v5225_v16, %v5229_v2 }
 0x469   :  { %v7133_v22 = vcombine.high %v5128_v21, %v5132_v60  ;;  %v7132_v29 = vcombine.low %v5128_v21, %v5132_v60  ;;  %v5232_v50 = vld [vmem:[%s11097_s7 + $0x3c0] sm:$0xff]  ;;  %v5114_v60 = vld [vmem:[%s11097_s7 + $0x10] sm:$0xff] }
 0x46a   :  { %v5022_v56 = vadd.f32 %v7110_v31, %v5014_v33  ;;  %v7228_v31 = vcombine.low %v5224_v14, %v5228_v63  ;;  %v7231_v33 = vcombine.high %v5225_v16, %v5229_v2  ;;  %v5150_v14 = vld [vmem:[%s11097_s7 + $0x130] sm:$0xff]  ;;  %v5147_v63 = vld [vmem:[%s11097_s7 + $0x118] sm:$0xff] }
 0x46b   :  { %v5151_v16 = vld [vmem:[%s11097_s7 + $0x138] sm:$0xff] }
 0x46c   :  { %v5023_v15 = vmax.f32 %v5022_v56, 0.0  ;;  %5991 = vmatprep.subr.bf16.mxu0 %v7231_v33  ;;  %v5236_v56 = vld [vmem:[%s11097_s7 + $0x3e0] sm:$0xff]  ;;  %v5154_v33 = vld [vmem:[%s11097_s7 + $0x150] sm:$0xff] }
 0x46d   :  { %5992 = vmatpush1.bf16.msra.mxu0 %v7230_v37  ;;  %v7237_v9 = vcombine.high %v5232_v50, %v5236_v56  ;;  %v7155_v37 = vcombine.high %v5147_v63, %v5151_v16 }
 0x46e   :  { %v5026_v10 = vpack.c.bf16 %v5023_v15, %v5023_v15  ;;  %5025 = vst.msk [vmem:[#allocation7] sm:$0x3] %vm5024_vm6, %v5023_v15  ;;  %v5237_v15 = vld [vmem:[%s11097_s7 + $0x3e8] sm:$0xff] }
 0x46f   :  { %v7239_v21 = vcombine.high %v5233_v40, %v5237_v15 }
 0x470   :  { %7115 = vmatmul.mubr.msk.bf16.vlgmr.msra.gmra.mrb[48].mxu1 %vm5063_vm7, %v5026_v10  ;;  %v7236_v10 = vcombine.low %v5232_v50, %v5236_v56  ;;  %v5158_v50 = vld [vmem:[%s11097_s7 + $0x170] sm:$0xff]  ;;  %v5155_v56 = vld [vmem:[%s11097_s7 + $0x158] sm:$0xff] }
 0x471   :  { %5923 = vmatpush1.bf16.msra.mxu1 %v7116_v25  ;;  %v7140_v25 = vcombine.low %v5136_v30, %v5140_v11  ;;  %5993 = vmatprep.subr.bf16.mxu0 %v7239_v21  ;;  %v5119_v11 = vld [vmem:[%s11097_s7 + $0x38] sm:$0xff]  ;;  %v5162_v21 = vld [vmem:[%s11097_s7 + $0x190] sm:$0xff] }
 0x472   :  { %5924 = vmatprep.subr.bf16.mxu1 %v7125_v57  ;;  %v7238_v57 = vcombine.low %v5233_v40, %v5237_v15  ;;  %v5159_v40 = vld [vmem:[%s11097_s7 + $0x178] sm:$0xff]  ;;  %v7154_v15 = vcombine.low %v5147_v63, %v5151_v16 }
 0x474   :  { %5994 = vmatpush1.bf16.msra.mxu0 %v7238_v57  ;;  %v7163_v57 = vcombine.high %v5155_v56, %v5159_v40 }
 0x475   :  { %5925 = vmatpush1.bf16.msra.mxu1 %v7124_v18  ;;  %v5118_v18 = vld [vmem:[%s11097_s7 + $0x30] sm:$0xff] }
 0x476   :  { %5926 = vmatprep.subr.bf16.mxu1 %v7133_v22  ;;  %v5115_v22 = vld [vmem:[%s11097_s7 + $0x18] sm:$0xff]  ;;  %v7121_v30 = vcombine.high %v5114_v60, %v5118_v18 }
 0x477   :  { %v7123_v12 = vcombine.high %v5115_v22, %v5119_v11 }
 0x479   :  { %5927 = vmatpush1.bf16.msra.mxu1 %v7132_v29  ;;  %v7120_v29 = vcombine.low %v5114_v60, %v5118_v18  ;;  %6045 = vmatprep.subr.bf16.mxu0 %v7123_v12  ;;  %v5166_v60 = vld [vmem:[%s11097_s7 + $0x1b0] sm:$0xff]  ;;  %v5163_v18 = vld [vmem:[%s11097_s7 + $0x198] sm:$0xff] }
 0x47a   :  { %5928 = vmatprep.subr.bf16.mxu1 %v7141_v28  ;;  %v7122_v28 = vcombine.low %v5115_v22, %v5119_v11  ;;  %v5167_v22 = vld [vmem:[%s11097_s7 + $0x1b8] sm:$0xff]  ;;  %v7162_v11 = vcombine.low %v5155_v56, %v5159_v40  ;;  %v5170_v12 = vld [vmem:[%s11097_s7 + $0x1d0] sm:$0xff] }
 0x47d   :  { %5929 = vmatpush1.bf16.msra.mxu1 %v7140_v25  ;;  %v10855_v25 = vshrl.u32 %v5033_v46, 7  ;;  %v5174_v46 = vld [vmem:[%s11097_s7 + $0x1f0] sm:$0xff] }
 0x47e   :  { %5930 = vmatprep.subr.bf16.mxu1 %v7149_v32 }
 0x47f   :  { %v5035_v32 = vsub.s32 0, %v10855_v25  ;;  %v5039_v35 = vsub.s32 1, %v10855_v25 }
 0x481   :  { %5931 = vmatpush1.bf16.msra.mxu1 %v7148_v53  ;;  %v5036_v53 = vrot.slane %v5031_v5, %v5035_v32 }
 0x482   :  { %5932 = vmatprep.subr.bf16.mxu1 %v7157_v52  ;;  %v5040_v52 = vrot.slane %v5031_v5, %v5039_v35  ;;  %v5171_v5 = vld [vmem:[%s11097_s7 + $0x1d8] sm:$0xff] }
 0x485   :  { %5933 = vmatpush1.bf16.msra.mxu1 %v7156_v23 }
 0x486   :  { %5934 = vmatprep.subr.bf16.mxu1 %v7165_v49 }
 0x489   :  { %5935 = vmatpush1.bf16.msra.mxu1 %v7164_v17 }
 0x48a   :  { %5936 = vmatprep.subr.bf16.mxu1 %v7173_v62 }
 0x48d   :  { %5937 = vmatpush1.bf16.msra.mxu1 %v7172_v38  ;;  %v5123_v38 = vld [vmem:[%s11097_s7 + $0x58] sm:$0xff] }
 0x48e   :  { %5938 = vmatprep.subr.bf16.mxu1 %v7181_v61  ;;  %v5127_v61 = vld [vmem:[%s11097_s7 + $0x78] sm:$0xff] }
 0x48f   :  { %v7131_v54 = vcombine.high %v5123_v38, %v5127_v61  ;;  %v7130_v45 = vcombine.low %v5123_v38, %v5127_v61  ;;  %v5186_v61 = vld [vmem:[%s11097_s7 + $0x250] sm:$0xff] }
 0x491   :  { %5939 = vmatpush1.bf16.msra.mxu1 %v7180_v24  ;;  %v5130_v24 = vld [vmem:[%s11097_s7 + $0x90] sm:$0xff] }
 0x492   :  { %5940 = vmatprep.subr.bf16.mxu1 %v7189_v3  ;;  %v7129_v3 = vcombine.high %v5122_v34, %v5126_v0  ;;  %v7136_v36 = vcombine.low %v5130_v24, %v5134_v7 }
 0x495   :  { %5941 = vmatpush1.bf16.msra.mxu1 %v7188_v8  ;;  %v5131_v8 = vld [vmem:[%s11097_s7 + $0x98] sm:$0xff] }
 0x496   :  { %5942 = vmatprep.subr.bf16.mxu1 %v7197_v1  ;;  %v5135_v1 = vld [vmem:[%s11097_s7 + $0xb8] sm:$0xff] }
 0x497   :  { %v7138_v27 = vcombine.low %v5131_v8, %v5135_v1 }
 0x499   :  { %5943 = vmatpush1.bf16.msra.mxu1 %v7196_v51  ;;  %v7137_v51 = vcombine.high %v5130_v24, %v5134_v7  ;;  %v5187_v24 = vld [vmem:[%s11097_s7 + $0x258] sm:$0xff] }
 0x49a   :  { %5944 = vmatprep.subr.bf16.mxu1 %v7205_v58  ;;  %v7139_v58 = vcombine.high %v5131_v8, %v5135_v1 }
 0x49d   :  { %5945 = vmatpush1.bf16.msra.mxu1 %v7204_v42  ;;  %v5139_v42 = vld [vmem:[%s11097_s7 + $0xd8] sm:$0xff] }
 0x49e   :  { %5946 = vmatprep.subr.bf16.mxu1 %v7213_v43  ;;  %v5143_v43 = vld [vmem:[%s11097_s7 + $0xf8] sm:$0xff] }
 0x49f   :  { %v7146_v2 = vcombine.low %v5139_v42, %v5143_v43 }
 0x4a1   :  { %5947 = vmatpush1.bf16.msra.mxu1 %v7212_v19  ;;  %v7145_v19 = vcombine.high %v5138_v4, %v5142_v39 }
 0x4a2   :  { %5948 = vmatprep.subr.bf16.mxu1 %v7221_v48  ;;  %v7147_v48 = vcombine.high %v5139_v42, %v5143_v43 }
 0x4a5   :  { %5949 = vmatpush1.bf16.msra.mxu1 %v7220_v59  ;;  %v5146_v59 = vld [vmem:[%s11097_s7 + $0x110] sm:$0xff] }
 0x4a6   :  { %5950 = vmatprep.subr.bf16.mxu1 %v7229_v26  ;;  %v7144_v26 = vcombine.low %v5138_v4, %v5142_v39 }
 0x4a9   :  { %5951 = vmatpush1.bf16.msra.mxu1 %v7228_v31  ;;  %v7153_v31 = vcombine.high %v5146_v59, %v5150_v14 }
 0x4aa   :  { %5952 = vmatprep.subr.bf16.mxu1 %v7237_v9  ;;  %v7152_v9 = vcombine.low %v5146_v59, %v5150_v14 }
 0x4ad   :  { %5953 = vmatpush1.bf16.msra.mxu1 %v7236_v10  ;;  %v7161_v10 = vcombine.high %v5154_v33, %v5158_v50 }
 0x4ae   :  { %6004 = vmatprep.subr.bf16.mxu1 %v7121_v30  ;;  %v7160_v30 = vcombine.low %v5154_v33, %v5158_v50 }
 0x543   :  { %v5101_v55 = vpop.f32.mrb[48].mxu1 }
 0x544   :  { %v5102_v44 = vadd.f32 %v5101_v55, %v5036_v53  ;;  %v5103_v23 = vpop.f32.mrb[49].mxu1  ;;  %v5175_v53 = vld [vmem:[%s11097_s7 + $0x1f8] sm:$0xff]  ;;  %v7170_v55 = vcombine.low %v5163_v18, %v5167_v22 }
 0x545   :  { %v5104_v49 = vadd.f32 %v5103_v23, %v5040_v52  ;;  %v5105_v13 = vpop.f32.mrb[50].mxu1  ;;  %v7168_v52 = vcombine.low %v5162_v21, %v5166_v60  ;;  %v7179_v23 = vcombine.high %v5171_v5, %v5175_v53  ;;  %v7178_v34 = vcombine.low %v5171_v5, %v5175_v53 }
 0x546   :  { %v5108_v20 = vmax.f32 %v5102_v44, 0.0  ;;  %v5106_v17 = vpop.f32.mrb[51].mxu1  ;;  %v7177_v44 = vcombine.high %v5170_v12, %v5174_v46  ;;  %v5182_v13 = vld [vmem:[%s11097_s7 + $0x230] sm:$0xff] }
 0x547   :  { %v5109_v62 = vmax.f32 %v5104_v49, 0.0  ;;  %v5178_v49 = vld [vmem:[%s11097_s7 + $0x210] sm:$0xff]  ;;  %v5183_v17 = vld [vmem:[%s11097_s7 + $0x238] sm:$0xff] }
 0x548   :  { %v10878_v47 = vpack.c.bf16 %v5108_v20, %v5108_v20  ;;  %v5179_v20 = vld [vmem:[%s11097_s7 + $0x218] sm:$0xff]  ;;  %v7185_v0 = vcombine.high %v5178_v49, %v5182_v13 }
 0x549   :  { %v5111_v41 = vpack.c.bf16 %v5109_v62, %v5109_v62  ;;  %v7176_v62 = vcombine.low %v5170_v12, %v5174_v46  ;;  %v7187_v38 = vcombine.high %v5179_v20, %v5183_v17  ;;  %v7186_v7 = vcombine.low %v5179_v20, %v5183_v17 }
 0x54b   :  { %5954 = vmatprep.mubr.bf16.mxu1 %v5111_v41  ;;  %5995 = vmatprep.mubr.bf16.mxu0 %v5111_v41 }
 0x54c   :  { %5955 = vmatmul.mubr.bf16.vlgmr.msra.gmra.mrb[52].mxu1 %v10878_v47  ;;  %5996 = vmatmul.mubr.bf16.vlgmr.msra.gmra.mrb[52].mxu0 %v10878_v47 }
 0x54d   :  { %6005 = vmatpush1.bf16.msra.mxu1 %v7120_v29  ;;  %6046 = vmatpush1.bf16.msra.mxu0 %v7122_v28  ;;  %v7169_v29 = vcombine.high %v5162_v21, %v5166_v60  ;;  %v7171_v28 = vcombine.high %v5163_v18, %v5167_v22 }
 0x54e   :  { %6036 = vmatprep.mubr.bf16.mxu1 %v5111_v41  ;;  %6077 = vmatprep.mubr.bf16.mxu0 %v5111_v41  ;;  %v5190_v41 = vld [vmem:[%s11097_s7 + $0x270] sm:$0xff] }
 0x54f   :  { %6006 = vmatprep.subr.bf16.mxu1 %v7129_v3  ;;  %6047 = vmatprep.subr.bf16.mxu0 %v7131_v54  ;;  %v5191_v3 = vld [vmem:[%s11097_s7 + $0x278] sm:$0xff]  ;;  %v7184_v54 = vcombine.low %v5178_v49, %v5182_v13  ;;  %v7193_v8 = vcombine.high %v5186_v61, %v5190_v41  ;;  %v7192_v4 = vcombine.low %v5186_v61, %v5190_v41 }
 0x550   :  { %v7195_v1 = vcombine.high %v5187_v24, %v5191_v3  ;;  %v7194_v39 = vcombine.low %v5187_v24, %v5191_v3 }
 0x551   :  { %6007 = vmatpush1.bf16.msra.mxu1 %v7128_v6  ;;  %6048 = vmatpush1.bf16.msra.mxu0 %v7130_v45  ;;  %v5194_v6 = vld [vmem:[%s11097_s7 + $0x290] sm:$0xff] }
 0x552   :  { %6008 = vmatprep.subr.bf16.mxu1 %v7137_v51  ;;  %6049 = vmatprep.subr.bf16.mxu0 %v7139_v58  ;;  %v5198_v45 = vld [vmem:[%s11097_s7 + $0x2b0] sm:$0xff]  ;;  %v5195_v51 = vld [vmem:[%s11097_s7 + $0x298] sm:$0xff] }
 0x553   :  { %v5199_v58 = vld [vmem:[%s11097_s7 + $0x2b8] sm:$0xff]  ;;  %v7201_v42 = vcombine.high %v5194_v6, %v5198_v45  ;;  %v7200_v59 = vcombine.low %v5194_v6, %v5198_v45 }
 0x554   :  { %v7203_v43 = vcombine.high %v5195_v51, %v5199_v58  ;;  %v7202_v14 = vcombine.low %v5195_v51, %v5199_v58 }
 0x555   :  { %6009 = vmatpush1.bf16.msra.mxu1 %v7136_v36  ;;  %6050 = vmatpush1.bf16.msra.mxu0 %v7138_v27  ;;  %v5202_v36 = vld [vmem:[%s11097_s7 + $0x2d0] sm:$0xff] }
 0x556   :  { %6010 = vmatprep.subr.bf16.mxu1 %v7145_v19  ;;  %6051 = vmatprep.subr.bf16.mxu0 %v7147_v48  ;;  %v5206_v27 = vld [vmem:[%s11097_s7 + $0x2f0] sm:$0xff]  ;;  %v5203_v19 = vld [vmem:[%s11097_s7 + $0x2d8] sm:$0xff] }
 0x557   :  { %v5207_v48 = vld [vmem:[%s11097_s7 + $0x2f8] sm:$0xff]  ;;  %v7209_v63 = vcombine.high %v5202_v36, %v5206_v27  ;;  %v7208_v33 = vcombine.low %v5202_v36, %v5206_v27 }
 0x558   :  { %v7211_v16 = vcombine.high %v5203_v19, %v5207_v48  ;;  %v7210_v50 = vcombine.low %v5203_v19, %v5207_v48 }
 0x559   :  { %6011 = vmatpush1.bf16.msra.mxu1 %v7144_v26  ;;  %6052 = vmatpush1.bf16.msra.mxu0 %v7146_v2  ;;  %v5210_v26 = vld [vmem:[%s11097_s7 + $0x310] sm:$0xff] }
 0x55a   :  { %6012 = vmatprep.subr.bf16.mxu1 %v7153_v31  ;;  %6053 = vmatprep.subr.bf16.mxu0 %v7155_v37  ;;  %v5214_v2 = vld [vmem:[%s11097_s7 + $0x330] sm:$0xff]  ;;  %v5211_v31 = vld [vmem:[%s11097_s7 + $0x318] sm:$0xff] }
 0x55b   :  { %v5215_v37 = vld [vmem:[%s11097_s7 + $0x338] sm:$0xff]  ;;  %v7217_v56 = vcombine.high %v5210_v26, %v5214_v2  ;;  %v7216_v21 = vcombine.low %v5210_v26, %v5214_v2 }
 0x55c   :  { %v7219_v40 = vcombine.high %v5211_v31, %v5215_v37  ;;  %v7218_v60 = vcombine.low %v5211_v31, %v5215_v37 }
 0x55d   :  { %6013 = vmatpush1.bf16.msra.mxu1 %v7152_v9  ;;  %6054 = vmatpush1.bf16.msra.mxu0 %v7154_v15  ;;  %v5218_v9 = vld [vmem:[%s11097_s7 + $0x350] sm:$0xff] }
 0x55e   :  { %6014 = vmatprep.subr.bf16.mxu1 %v7161_v10  ;;  %6055 = vmatprep.subr.bf16.mxu0 %v7163_v57  ;;  %v5222_v15 = vld [vmem:[%s11097_s7 + $0x370] sm:$0xff]  ;;  %v5219_v10 = vld [vmem:[%s11097_s7 + $0x358] sm:$0xff] }
 0x55f   :  { %v5223_v57 = vld [vmem:[%s11097_s7 + $0x378] sm:$0xff]  ;;  %v7225_v18 = vcombine.high %v5218_v9, %v5222_v15  ;;  %v7224_v12 = vcombine.low %v5218_v9, %v5222_v15 }
 0x560   :  { %v7227_v22 = vcombine.high %v5219_v10, %v5223_v57  ;;  %v7226_v46 = vcombine.low %v5219_v10, %v5223_v57 }
 0x561   :  { %6015 = vmatpush1.bf16.msra.mxu1 %v7160_v30  ;;  %6056 = vmatpush1.bf16.msra.mxu0 %v7162_v11  ;;  %v5226_v30 = vld [vmem:[%s11097_s7 + $0x390] sm:$0xff] }
 0x562   :  { %6016 = vmatprep.subr.bf16.mxu1 %v7169_v29  ;;  %6057 = vmatprep.subr.bf16.mxu0 %v7171_v28  ;;  %v5230_v11 = vld [vmem:[%s11097_s7 + $0x3b0] sm:$0xff]  ;;  %v5227_v29 = vld [vmem:[%s11097_s7 + $0x398] sm:$0xff] }
 0x563   :  { %v5231_v28 = vld [vmem:[%s11097_s7 + $0x3b8] sm:$0xff]  ;;  %v7233_v5 = vcombine.high %v5226_v30, %v5230_v11  ;;  %v7232_v49 = vcombine.low %v5226_v30, %v5230_v11 }
 0x564   :  { %v7235_v53 = vcombine.high %v5227_v29, %v5231_v28  ;;  %v7234_v13 = vcombine.low %v5227_v29, %v5231_v28 }
 0x565   :  { %6017 = vmatpush1.bf16.msra.mxu1 %v7168_v52  ;;  %6058 = vmatpush1.bf16.msra.mxu0 %v7170_v55  ;;  %v5234_v52 = vld [vmem:[%s11097_s7 + $0x3d0] sm:$0xff] }
 0x566   :  { %6018 = vmatprep.subr.bf16.mxu1 %v7177_v44  ;;  %6059 = vmatprep.subr.bf16.mxu0 %v7179_v23  ;;  %v5238_v55 = vld [vmem:[%s11097_s7 + $0x3f0] sm:$0xff]  ;;  %v5235_v44 = vld [vmem:[%s11097_s7 + $0x3d8] sm:$0xff] }
 0x567   :  { %v5239_v23 = vld [vmem:[%s11097_s7 + $0x3f8] sm:$0xff]  ;;  %v7241_v20 = vcombine.high %v5234_v52, %v5238_v55  ;;  %s8377_s7 = smov [#allocation7]  }
 0x568   :  { %v7243_v17 = vcombine.high %v5235_v44, %v5239_v23  ;;  %s6153_s14 = sshll.u32 %s8377_s7, 4  ;;  %s6154_s14 = int_to_ptr.vmem [resolvable:$true] %s6153_s14 }
 0x569   :  { %6019 = vmatpush1.bf16.msra.mxu1 %v7176_v62  ;;  %6060 = vmatpush1.bf16.msra.mxu0 %v7178_v34  ;;  %v7240_v62 = vcombine.low %v5234_v52, %v5238_v55  ;;  %v7242_v34 = vcombine.low %v5235_v44, %v5239_v23  ;;  %s8317_s11 = scalar_lea.vmem %s6154_s14, 32  ;;  %p8322_p11 = scmp.lt.s32.totalorder %s6154_s14, %s6154_s14 }
 0x56a   :  { %6020 = vmatprep.subr.bf16.mxu1 %v7185_v0  ;;  %6061 = vmatprep.subr.bf16.mxu0 %v7187_v38  ;;  %p8318_p10 = scmp.ne.s32.totalorder %s6154_s14, %s8317_s11  ;;  %p8323_p12 = scmp.lt.s32.totalorder %s8317_s11, %s8317_s11 }
 0x56c   :  { %p8324_p13 = por %p8323_p12, %p8322_p11 }
 0x56d   :  { %6021 = vmatpush1.bf16.msra.mxu1 %v7184_v54  ;;  %6062 = vmatpush1.bf16.msra.mxu0 %v7186_v7 }
 0x56e   :  { %6022 = vmatprep.subr.bf16.mxu1 %v7193_v8  ;;  %6063 = vmatprep.subr.bf16.mxu0 %v7195_v1  ;;  %p8325_p0 = pnand %p8324_p13, %p8318_p10 }
 0x571   :  { %6023 = vmatpush1.bf16.msra.mxu1 %v7192_v4  ;;  %6064 = vmatpush1.bf16.msra.mxu0 %v7194_v39 }
 0x572   :  { %6024 = vmatprep.subr.bf16.mxu1 %v7201_v42  ;;  %6065 = vmatprep.subr.bf16.mxu0 %v7203_v43 }
 0x575   :  { %6025 = vmatpush1.bf16.msra.mxu1 %v7200_v59  ;;  %6066 = vmatpush1.bf16.msra.mxu0 %v7202_v14 }
 0x576   :  { %6026 = vmatprep.subr.bf16.mxu1 %v7209_v63  ;;  %6067 = vmatprep.subr.bf16.mxu0 %v7211_v16 }
 0x579   :  { %6027 = vmatpush1.bf16.msra.mxu1 %v7208_v33  ;;  %6068 = vmatpush1.bf16.msra.mxu0 %v7210_v50 }
 0x57a   :  { %6028 = vmatprep.subr.bf16.mxu1 %v7217_v56  ;;  %6069 = vmatprep.subr.bf16.mxu0 %v7219_v40 }
 0x57d   :  { %6029 = vmatpush1.bf16.msra.mxu1 %v7216_v21  ;;  %6070 = vmatpush1.bf16.msra.mxu0 %v7218_v60 }
 0x57e   :  { %6030 = vmatprep.subr.bf16.mxu1 %v7225_v18  ;;  %6071 = vmatprep.subr.bf16.mxu0 %v7227_v22 }
 0x581   :  { %6031 = vmatpush1.bf16.msra.mxu1 %v7224_v12  ;;  %6072 = vmatpush1.bf16.msra.mxu0 %v7226_v46 }
 0x582   :  { %6032 = vmatprep.subr.bf16.mxu1 %v7233_v5  ;;  %6073 = vmatprep.subr.bf16.mxu0 %v7235_v53 }
 0x585   :  { %6033 = vmatpush1.bf16.msra.mxu1 %v7232_v49  ;;  %6074 = vmatpush1.bf16.msra.mxu0 %v7234_v13 }
 0x586   :  { %6034 = vmatprep.subr.bf16.mxu1 %v7241_v20  ;;  %6075 = vmatprep.subr.bf16.mxu0 %v7243_v17 }
 0x589   :  { %6035 = vmatpush1.bf16.msra.mxu1 %v7240_v62  ;;  %6076 = vmatpush1.bf16.msra.mxu0 %v7242_v34 }
 0x58c   :  { %6037 = vmatmul.mubr.bf16.vlgmr.msra.gmra.mrb[56].mxu1 %v10878_v47  ;;  %6078 = vmatmul.mubr.bf16.vlgmr.msra.gmra.mrb[56].mxu0 %v10878_v47 }
 0x58d   :  { %8328 = shalt.err (!%p8325_p0)
}
 0x58e   :  { %s8329_s18 = scalar_lea.hbm %s11099_s9, 32 }
 0x58f   :  { %p8330_p1 = scmp.ne.s32.totalorder %s11099_s9, %s8329_s18  ;;  %p8333_p2 = scmp.lt.u32.totalorder %s8329_s18, %s11099_s9 }
 0x591   :  { %p8335_p3 = pnand %p8333_p2, %p8330_p1 }
 0x593   :  { %8338 = shalt.err (!%p8335_p3)
}
 0x594   :  { %6156 = dma.vmem_to_hbm [thread:$0]  %s6154_s14, 32, %s11099_s9, [#allocation3]   ;;  %v5252_v47 = vsub.s32 2, %v10855_v25  ;;  %v5240_v0 = vld [vmem:[%s11098_s8] sm:$0xff]  ;;  %v5256_v38 = vsub.s32 3, %v10855_v25  ;;  %v5260_v37 = vsub.s32 4, %v10855_v25 }
 0x595   :  { %v8378_v61 = vmov 1983009808   ;;  %v5245_v24 = vrot.slane %v5240_v0, %v5035_v32  ;;  %v5249_v54 = vrot.slane %v5240_v0, %v5039_v35  ;;  %v5268_v33 = vsub.s32 6, %v10855_v25  ;;  %s8379_s8 = smov [#allocation8]  }
 0x596   :  { %v6105_v41 = vunpack.c.l.s4 %v8378_v61  ;;  %v5253_v3 = vrot.slane %v5240_v0, %v5252_v47  ;;  %v5257_v7 = vrot.slane %v5240_v0, %v5256_v38  ;;  %v5264_v50 = vsub.s32 5, %v10855_v25  ;;  %s6163_s9 = sshll.u32 %s8379_s8, 4  ;;  %s6164_s9 = int_to_ptr.vmem [resolvable:$true] %s6163_s9 }
 0x597   :  { %v5272_v56 = vsub.s32 7, %v10855_v25  ;;  %v5261_v40 = vrot.slane %v5240_v0, %v5260_v37  ;;  %v5269_v9 = vrot.slane %v5240_v0, %v5268_v33  ;;  %vm6139_vm8 = vcmask 1041408   ;;  %s8339_s22 = scalar_lea.vmem %s6164_s9, 256  ;;  %p8344_p5 = scmp.lt.s32.totalorder %s6164_s9, %s6164_s9 }
 0x598   :  { %v6106_v6 = vunpack.c.0.s8 %v6105_v41  ;;  %v5265_v15 = vrot.slane %v5240_v0, %v5264_v50  ;;  %vm6140_vm9 = vcmask 1043458   ;;  %vm6142_vm11 = vcmask 1045508   ;;  %p8340_p4 = scmp.ne.s32.totalorder %s6164_s9, %s8339_s22  ;;  %p8345_p6 = scmp.lt.s32.totalorder %s8339_s22, %s8339_s22 }
 0x599   :  { %v5273_v10 = vrot.slane %v5240_v0, %v5272_v56  ;;  %vm6141_vm10 = vmor %vm6140_vm9, %vm6139_vm8  ;;  %vm6144_vm13 = vcmask 531462  }
 0x59a   :  { %v6109_v35 = vsub.s32 %v6106_v6, %v10855_v25  ;;  %vm6143_vm12 = vmor %vm6142_vm11, %vm6141_vm10  ;;  %p8346_p7 = por %p8345_p6, %p8344_p5 }
 0x59b   :  { %vm6145_vm14 = vmor %vm6144_vm13, %vm6143_vm12 }
 0x59c   :  { %p8347_p8 = pnand %p8346_p7, %p8340_p4 }
 0x61f   :  { %v5956_v8 = vpop.f32.mrb[52].mxu1  ;;  %v5997_v1 = vpop.f32.mrb[52].mxu0 }
 0x620   :  { %v5957_v45 = vadd.f32 %v5956_v8, %v5245_v24  ;;  %v5998_v51 = vadd.f32 %v5997_v1, %v5253_v3  ;;  %v5958_v58 = vpop.f32.mrb[53].mxu1  ;;  %v5999_v4 = vpop.f32.mrb[53].mxu0 }
 0x621   :  { %v5959_v39 = vadd.f32 %v5958_v58, %v5249_v54  ;;  %v6000_v42 = vadd.f32 %v5999_v4, %v5257_v7  ;;  %v5960_v43 = vpop.f32.mrb[54].mxu1  ;;  %v6001_v36 = vpop.f32.mrb[54].mxu0 }
 0x622   :  { %v6086_v27 = vmax.f32 %v5957_v45, 0.0  ;;  %v6088_v19 = vmax.f32 %v5998_v51, 0.0  ;;  %v5961_v48 = vpop.f32.mrb[55].mxu1  ;;  %v6002_v32 = vpop.f32.mrb[55].mxu0 }
 0x623   :  { %v6087_v59 = vmax.f32 %v5959_v39, 0.0  ;;  %v6089_v14 = vmax.f32 %v6000_v42, 0.0 }
 0x625   :  { %v6102_v63 = vcombine.low %v6086_v27, %v6087_v59  ;;  %v6103_v16 = vcombine.low %v6088_v19, %v6089_v14 }
 0x627   :  { %v6110_v26 = vrot.slane %v6102_v63, %v6109_v35  ;;  %v6117_v2 = vrot.slane %v6103_v16, %v6109_v35 }
 0x629   :  { %v6118_v31 = vcombine.low %v6110_v26, %v6117_v2 }
 0x62b   :  { %6138 = vst [vmem:[#allocation8] sm:$0xff] %v6118_v31 }
 0x65f   :  { %v6038_v57 = vpop.f32.mrb[56].mxu1  ;;  %v6079_v21 = vpop.f32.mrb[56].mxu0 }
 0x660   :  { %v6039_v60 = vadd.f32 %v6038_v57, %v5261_v40  ;;  %v6080_v18 = vadd.f32 %v6079_v21, %v5269_v9  ;;  %v6040_v22 = vpop.f32.mrb[57].mxu1  ;;  %v6081_v30 = vpop.f32.mrb[57].mxu0 }
 0x661   :  { %v6041_v11 = vadd.f32 %v6040_v22, %v5265_v15  ;;  %v6082_v29 = vadd.f32 %v6081_v30, %v5273_v10  ;;  %v6042_v28 = vpop.f32.mrb[58].mxu1  ;;  %v6083_v12 = vpop.f32.mrb[58].mxu0 }
 0x662   :  { %v6090_v46 = vmax.f32 %v6039_v60, 0.0  ;;  %v6092_v5 = vmax.f32 %v6080_v18, 0.0  ;;  %v6043_v53 = vpop.f32.mrb[59].mxu1  ;;  %v6084_v25 = vpop.f32.mrb[59].mxu0 }
 0x663   :  { %v6091_v52 = vmax.f32 %v6041_v11, 0.0  ;;  %v6093_v55 = vmax.f32 %v6082_v29, 0.0 }
 0x665   :  { %v6119_v44 = vcombine.low %v6090_v46, %v6091_v52  ;;  %v6120_v23 = vcombine.low %v6092_v5, %v6093_v55 }
 0x667   :  { %v6127_v49 = vrot.slane %v6119_v44, %v6109_v35  ;;  %v6134_v13 = vrot.slane %v6120_v23, %v6109_v35 }
 0x669   :  { %v6135_v20 = vcombine.low %v6127_v49, %v6134_v13 }
 0x66b   :  { %6146 = vst.msk [vmem:[#allocation8 + $0x8] sm:$0xff] %vm6145_vm14, %v6135_v20 }
 0x66c   :  { %8350 = shalt.err (!%p8347_p8)
}
 0x66d   :  { %s8351_s0 = scalar_lea.hbm %s11100_s10, 256 }
 0x66e   :  { %p8352_p9 = scmp.ne.s32.totalorder %s11100_s10, %s8351_s0  ;;  %p8355_p10 = scmp.lt.u32.totalorder %s8351_s0, %s11100_s10 }
 0x670   :  { %p8357_p11 = pnand %p8355_p10, %p8352_p9 }
 0x672   :  { %8360 = shalt.err (!%p8357_p11)
}
 0x673   :  { %6166 = dma.vmem_to_hbm [thread:$0]  %s6164_s9, 256, %s11100_s10, [#allocation9]  }
 0x674   :  { %8365 = dma.done.wait [#allocation3], 32  }
 0x675   :  { %8366 = vsyncadd [#allocation3], 4294967264 }
 0x676   :  { %8367 = dma.done.wait [#allocation9], 256  }
 0x677   :  { %8368 = vsyncadd [#allocation9], 4294967040 }
 0x678   :  { %6173 = vsyncpa [#allocation3], 1 }
 0x679   :  { %6174 = vsyncpa [#allocation9], 1 }
 0x67a   :  { %6175 = vsyncpa [#allocation4], 1 }
 0x67b   :  { %6176 = vsyncpa [#allocation6], 1 }

</bundles_post_ra>
